<compile_context>
chip_gen: v5e
topology: v5e:2x2
jax: 0.10.0
libtpu: 0.0.40
codegen_flags: <defaults>
</compile_context>

<pallas_src>
import jax
import jax.numpy as jnp
from jax import lax
from jax.experimental import pallas as pl
from jax.experimental.pallas import tpu as pltpu

# ---- model dims (small, deterministic synthetic config) ----
M, N, D, DX = 2, 8, 32, 2
NUM_HEADS, HEAD_DIM = 4, 8
INNER = NUM_HEADS * HEAD_DIM
PHI_HIDDEN = 16
FF_DIM = 64
NUM_LAYERS = 2
LN_EPS = 1e-5
NEG_INF = -1e30

# rows of the packed per-layer (16, 128) parameter slab
VEC_ROWS = 16
_V_LN1W, _V_LN1B, _V_LN2W, _V_LN2B, _V_BO, _V_F2B, _V_F1B, _V_PHI = range(8)
_V_W2 = 8    # rows 8..8+H-1   : phi output weight  (H, P) in lanes [:P]
_V_W1 = 12   # rows 12..12+DX-1: phi hidden weight  (DX, P) in lanes [:P]


def _encoder_kernel(z_ref, slab_ref, wqkv_ref, wo_ref, f1w_ref, f2w_ref, vec_ref, o_ref):
    z = z_ref[...]                         # (N, D)
    slab = slab_ref[...]                   # (N, 128): lanes [:N]=additive mask, [N:N+DX]=x
    maskb = slab[:, :N]                    # (N, N) additive: 0.0 attend, -1e30 masked
    x = slab[:, N:N + DX]                  # (N, DX)

    # pairwise location differences, flattened once (layer independent)
    difff = (x[:, None, :] - x[None, :, :]).reshape(N * N, DX)          # (N*N, DX)

    def layer_norm(v, w, b):
        mu = jnp.mean(v, axis=-1, keepdims=True)
        var = jnp.mean(jnp.square(v - mu), axis=-1, keepdims=True)
        return (v - mu) * lax.rsqrt(var + LN_EPS) * w + b

    scale = HEAD_DIM ** -0.5

    for l in range(NUM_LAYERS):            # static unroll; all weights resident in VMEM
        vec = vec_ref[l]                   # (16, 128) packed small parameters
        ln1w, ln1b = vec[_V_LN1W, :D], vec[_V_LN1B, :D]
        ln2w, ln2b = vec[_V_LN2W, :D], vec[_V_LN2B, :D]
        bo, f2b = vec[_V_BO, :D], vec[_V_F2B, :D]
        f1b = vec[_V_F1B, :FF_DIM]
        p1b = vec[_V_PHI, :PHI_HIDDEN]
        p2b = vec[_V_PHI, PHI_HIDDEN:PHI_HIDDEN + NUM_HEADS]             # (H,)
        w2 = vec[_V_W2:_V_W2 + NUM_HEADS, :PHI_HIDDEN]                   # (H, P)
        w1 = vec[_V_W1:_V_W1 + DX, :PHI_HIDDEN]                          # (DX, P)

        # ---- translation-equivariant multi-head self-attention (pre-norm) ----
        zn = layer_norm(z, ln1w, ln1b)                                   # (N, D)
        # one MXU pass with a 3*H*dh-wide RHS (single weight push) instead of 4 per-head pushes
        qkv = jnp.dot(zn, wqkv_ref[l], preferred_element_type=jnp.float32)   # (N, 3*INNER)
        qkv = jnp.transpose(qkv.reshape(N, 3 * NUM_HEADS, HEAD_DIM), (1, 0, 2))  # (3H, N, dh)
        q = qkv[:NUM_HEADS]                                              # (H, N, dh)
        k = qkv[NUM_HEADS:2 * NUM_HEADS]
        v = qkv[2 * NUM_HEADS:]

        # phi(x_i - x_j): hidden layer on the flattened (N*N, P) slab; all-head projection as a
        # single dot_general contracting P (MXU) -> no (H,N,N,P) broadcast intermediate.
        h1 = p1b
        for t in range(DX):                                              # DX tiny: unrolled
            h1 = h1 + difff[:, t:t + 1] * w1[t]
        h1 = jnp.maximum(h1, 0.0)                                        # (N*N, P)
        bias = lax.dot_general(w2, h1, (((1,), (1,)), ((), ())),
                               preferred_element_type=jnp.float32)       # (H, N*N)
        bias = bias.reshape(NUM_HEADS, N, N) + p2b[:, None, None]        # (H, N, N)

        logits = jnp.einsum('hqd,hkd->hqk', q, k,
                            preferred_element_type=jnp.float32) * scale  # (H, N, N)
        logits = logits + bias + maskb[None]                             # additive mask
        m_ = jnp.max(logits, axis=-1, keepdims=True)
        e = jnp.exp(logits - m_)
        s = jnp.sum(e, axis=-1, keepdims=True)
        attn = e * pl.reciprocal(s, approx=True)                         # EUP reciprocal

        av = jnp.einsum('hqk,hkd->hqd', attn, v,
                        preferred_element_type=jnp.float32)              # (H, N, dh)
        # single (N, H*dh) @ (H*dh, D) output projection instead of H tiny matmuls + head reduce
        avf = jnp.transpose(av, (1, 0, 2)).reshape(N, INNER)             # (N, H*dh)
        z = z + jnp.dot(avf, wo_ref[l], preferred_element_type=jnp.float32) + bo

        # ---- feed-forward block (pre-norm, ReLU) ----
        zn2 = layer_norm(z, ln2w, ln2b)
        hff = jnp.maximum(
            jnp.dot(zn2, f1w_ref[l], preferred_element_type=jnp.float32) + f1b, 0.0)
        z = z + jnp.dot(hff, f2w_ref[l], preferred_element_type=jnp.float32) + f2b

    o_ref[...] = z                                                       # single HBM writeback


def pack_layer_params(layer_params):
    """Pack the 17 per-layer tensors into 5 stacked, VMEM/MXU-friendly arrays."""
    wqkv, wo, f1w, f2w, vecs = [], [], [], [], []
    for p in layer_params:
        wqkv.append(jnp.concatenate([p["wq"], p["wk"], p["wv"]], axis=-1))   # (D, 3*INNER)
        wo.append(p["wo"])                                                   # (INNER, D)
        f1w.append(p["f1w"])                                                 # (D, FF)
        f2w.append(p["f2w"])                                                 # (FF, D)
        vec = jnp.zeros((VEC_ROWS, 128), jnp.float32)
        vec = vec.at[_V_LN1W, :D].set(p["ln1w"].reshape(-1))
        vec = vec.at[_V_LN1B, :D].set(p["ln1b"].reshape(-1))
        vec = vec.at[_V_LN2W, :D].set(p["ln2w"].reshape(-1))
        vec = vec.at[_V_LN2B, :D].set(p["ln2b"].reshape(-1))
        vec = vec.at[_V_BO, :D].set(p["bo"].reshape(-1))
        vec = vec.at[_V_F2B, :D].set(p["f2b"].reshape(-1))
        vec = vec.at[_V_F1B, :FF_DIM].set(p["f1b"].reshape(-1))
        vec = vec.at[_V_PHI, :PHI_HIDDEN].set(p["p1b"].reshape(-1))
        vec = vec.at[_V_PHI, PHI_HIDDEN:PHI_HIDDEN + NUM_HEADS].set(p["p2b"].reshape(-1))
        vec = vec.at[_V_W2:_V_W2 + NUM_HEADS, :PHI_HIDDEN].set(p["p2wt"])
        vec = vec.at[_V_W1:_V_W1 + DX, :PHI_HIDDEN].set(p["p1w"])
        vecs.append(vec)

    stack = lambda xs: jnp.stack(xs, axis=0)
    return stack(wqkv), stack(wo), stack(f1w), stack(f2w), stack(vecs)


def te_transformer_encoder(z, x, layer_params, mask=None):
    """PyTorch: for layer in self.layers: z, x = layer(z, x, mask); return z."""
    m, n, d = z.shape
    dx = x.shape[-1]
    if mask is None:
        maskb = jnp.zeros((m, n, n), jnp.float32)
    else:
        maskb = jnp.where(mask > 0.5, 0.0, NEG_INF).astype(jnp.float32)   # additive mask

    # one lane-dense per-batch slab: lanes [:n] = additive mask, [n:n+dx] = locations x
    slab = jnp.zeros((m, n, 128), jnp.float32)
    slab = slab.at[:, :, :n].set(maskb)
    slab = slab.at[:, :, n:n + dx].set(x)

    packed = pack_layer_params(layer_params)

    def full_spec(a):
        nd = a.ndim
        return pl.BlockSpec(a.shape, lambda i, nd=nd: (0,) * nd)

    in_specs = ([pl.BlockSpec((None, n, d), lambda i: (i, 0, 0)),
                 pl.BlockSpec((None, n, 128), lambda i: (i, 0, 0))]
                + [full_spec(a) for a in packed])

    return pl.pallas_call(
        _encoder_kernel,
        out_shape=jax.ShapeDtypeStruct((m, n, d), jnp.float32),
        grid=(m,),
        in_specs=in_specs,
        out_specs=pl.BlockSpec((None, n, d), lambda i: (i, 0, 0)),
        compiler_params=pltpu.CompilerParams(dimension_semantics=("parallel",)),
    )(z, slab, *packed)


# ---- deterministic parameter init (shapes implied by the module config) ----
def init_layer_params(key):
    ks = jax.random.split(key, 12)

    def lin(k, fan_in, shape):
        return jax.random.normal(k, shape, jnp.float32) / jnp.sqrt(float(fan_in))

    return {
        "wq": lin(ks[0], D, (D, INNER)),
        "wk": lin(ks[1], D, (D, INNER)),
        "wv": lin(ks[2], D, (D, INNER)),
        "wo": lin(ks[3], INNER, (INNER, D)),
        "bo": 0.01 * jax.random.normal(ks[4], (1, D), jnp.float32),
        "p1w": lin(ks[5], DX, (DX, PHI_HIDDEN)),
        "p1b": 0.01 * jax.random.normal(ks[6], (1, PHI_HIDDEN), jnp.float32),
        "p2wt": lin(ks[7], PHI_HIDDEN, (NUM_HEADS, PHI_HIDDEN)),  # phi output weight, transposed
        "p2b": 0.01 * jax.random.normal(ks[8], (1, NUM_HEADS), jnp.float32),
        "ln1w": jnp.ones((1, D), jnp.float32),
        "ln1b": jnp.zeros((1, D), jnp.float32),
        "ln2w": jnp.ones((1, D), jnp.float32),
        "ln2b": jnp.zeros((1, D), jnp.float32),
        "f1w": lin(ks[9], D, (D, FF_DIM)),
        "f1b": 0.01 * jax.random.normal(ks[10], (1, FF_DIM), jnp.float32),
        "f2w": lin(ks[11], FF_DIM, (FF_DIM, D)),
        "f2b": jnp.zeros((1, D), jnp.float32),
    }


# ---- pure-JAX reference (same math) for a sanity check ----
def te_layer_ref(z, x, mask, p):
    def ln(v, w, b):
        mu = v.mean(-1, keepdims=True)
        var = ((v - mu) ** 2).mean(-1, keepdims=True)
        return (v - mu) / jnp.sqrt(var + LN_EPS) * w + b

    m, n, _ = z.shape
    zn = ln(z, p["ln1w"][0], p["ln1b"][0])
    q = (zn @ p["wq"]).reshape(m, n, NUM_HEADS, HEAD_DIM).transpose(0, 2, 1, 3)
    k = (zn @ p["wk"]).reshape(m, n, NUM_HEADS, HEAD_DIM).transpose(0, 2, 1, 3)
    v = (zn @ p["wv"]).reshape(m, n, NUM_HEADS, HEAD_DIM).transpose(0, 2, 1, 3)
    dots = jnp.einsum("mhqd,mhkd->mhqk", q, k) * HEAD_DIM ** -0.5
    diff = x[:, :, None, :] - x[:, None, :, :]
    h1 = jax.nn.relu(jnp.einsum("mqkx,xp->mqkp", diff, p["p1w"]) + p["p1b"][0])
    bias = jnp.einsum("mqkp,hp->mhqk", h1, p["p2wt"]) + p["p2b"][0][None, :, None, None]
    dots = dots + bias
    dots = jnp.where(mask[:, None] > 0.5, dots, -1e30)
    attn = jax.nn.softmax(dots, axis=-1)
    out = jnp.einsum("mhqk,mhkd->mhqd", attn, v).transpose(0, 2, 1, 3).reshape(m, n, -1)
    z = z + out @ p["wo"] + p["bo"][0]
    zn2 = ln(z, p["ln2w"][0], p["ln2b"][0])
    ff = jax.nn.relu(zn2 @ p["f1w"] + p["f1b"][0]) @ p["f2w"] + p["f2b"][0]
    return z + ff


if __name__ == "__main__":
    jax.config.update("jax_default_matmul_precision", "float32")

    key = jax.random.PRNGKey(0)
    kz, kx, km, kp = jax.random.split(key, 4)
    z = jax.random.normal(kz, (M, N, D), jnp.float32)
    x = jax.random.normal(kx, (M, N, DX), jnp.float32)
    mask = (jax.random.uniform(km, (M, N, N)) < 0.8).astype(jnp.float32)
    mask = jnp.maximum(mask, jnp.eye(N, dtype=jnp.float32)[None])  # every token attends to itself

    layer_params = [init_layer_params(k) for k in jax.random.split(kp, NUM_LAYERS)]

    out = te_transformer_encoder(z, x, layer_params, mask)
    out = jax.block_until_ready(out)

    ref = z
    for p in layer_params:
        ref = te_layer_ref(ref, x, mask, p)

    assert out.shape == (M, N, D)
    assert bool(jnp.all(jnp.isfinite(out)))
    max_err = float(jnp.max(jnp.abs(out - ref)))
    assert jnp.allclose(out, ref, rtol=2e-2, atol=2e-2), f"max abs err {max_err}"
    print("KERNEL_OK")
</pallas_src>

<mosaic_0001>
module attributes {stable_mosaic.version = 11 : i64} {
  func.func @_encoder_kernel(%arg0: i32, %arg1: memref<1x8x32xf32, #tpu.memory_space<vmem>>, %arg2: memref<1x8x128xf32, #tpu.memory_space<vmem>>, %arg3: memref<2x32x96xf32, #tpu.memory_space<vmem>>, %arg4: memref<2x32x32xf32, #tpu.memory_space<vmem>>, %arg5: memref<2x32x64xf32, #tpu.memory_space<vmem>>, %arg6: memref<2x64x32xf32, #tpu.memory_space<vmem>>, %arg7: memref<2x16x128xf32, #tpu.memory_space<vmem>>, %arg8: memref<1x8x32xf32, #tpu.memory_space<vmem>>) attributes {dimension_semantics = [#tpu.dimension_semantics<parallel>], iteration_bounds = array<i64: 2>, scalar_prefetch = 0 : i64, scratch_operands = 0 : i64, tpu.core_type = #tpu.core_type<tc>, window_params = [{transform_indices = @transform_0, window_bounds = array<i64: 1, 8, 32>}, {transform_indices = @transform_1, window_bounds = array<i64: 1, 8, 128>}, {pipeline_mode = #tpu.pipeline_mode<synchronous>, transform_indices = @transform_2, window_bounds = array<i64: 2, 32, 96>}, {pipeline_mode = #tpu.pipeline_mode<synchronous>, transform_indices = @transform_3, window_bounds = array<i64: 2, 32, 32>}, {pipeline_mode = #tpu.pipeline_mode<synchronous>, transform_indices = @transform_4, window_bounds = array<i64: 2, 32, 64>}, {pipeline_mode = #tpu.pipeline_mode<synchronous>, transform_indices = @transform_5, window_bounds = array<i64: 2, 64, 32>}, {pipeline_mode = #tpu.pipeline_mode<synchronous>, transform_indices = @transform_6, window_bounds = array<i64: 2, 16, 128>}, {transform_indices = @transform_7, window_bounds = array<i64: 1, 8, 32>}]} {
    %c0 = arith.constant 0 : index
    %c0_0 = arith.constant 0 : index
    %c0_1 = arith.constant 0 : index
    %0 = vector.load %arg1[%c0, %c0_0, %c0_1] : memref<1x8x32xf32, #tpu.memory_space<vmem>>, vector<1x8x32xf32>
    %1 = vector.shape_cast %0 : vector<1x8x32xf32> to vector<8x32xf32>
    %c0_2 = arith.constant 0 : index
    %c0_3 = arith.constant 0 : index
    %c0_4 = arith.constant 0 : index
    %2 = vector.load %arg2[%c0_2, %c0_3, %c0_4] : memref<1x8x128xf32, #tpu.memory_space<vmem>>, vector<1x8x128xf32>
    %3 = vector.shape_cast %2 : vector<1x8x128xf32> to vector<8x128xf32>
    %4 = vector.extract_strided_slice %3 {offsets = [0, 0], sizes = [8, 8], strides = [1, 1]} : vector<8x128xf32> to vector<8x8xf32>
    %5 = vector.extract_strided_slice %3 {offsets = [0, 8], sizes = [8, 2], strides = [1, 1]} : vector<8x128xf32> to vector<8x2xf32>
    %6 = vector.shape_cast %5 : vector<8x2xf32> to vector<8x1x2xf32>
    %7 = vector.shape_cast %5 : vector<8x2xf32> to vector<1x8x2xf32>
    %8 = vector.broadcast %6 : vector<8x1x2xf32> to vector<8x8x2xf32>
    %9 = vector.broadcast %7 : vector<1x8x2xf32> to vector<8x8x2xf32>
    %10 = arith.subf %8, %9 : vector<8x8x2xf32>
    %11 = vector.shape_cast %10 : vector<8x8x2xf32> to vector<64x2xf32>
    %c0_5 = arith.constant 0 : index
    %c0_6 = arith.constant 0 : index
    %c0_7 = arith.constant 0 : index
    %12 = vector.load %arg7[%c0_5, %c0_6, %c0_7] : memref<2x16x128xf32, #tpu.memory_space<vmem>>, vector<1x16x128xf32>
    %13 = vector.shape_cast %12 : vector<1x16x128xf32> to vector<16x128xf32>
    %14 = vector.extract_strided_slice %13 {offsets = [0, 0], sizes = [1, 32], strides = [1, 1]} : vector<16x128xf32> to vector<1x32xf32>
    %15 = vector.shape_cast %14 : vector<1x32xf32> to vector<32xf32>
    %16 = vector.extract_strided_slice %13 {offsets = [1, 0], sizes = [1, 32], strides = [1, 1]} : vector<16x128xf32> to vector<1x32xf32>
    %17 = vector.shape_cast %16 : vector<1x32xf32> to vector<32xf32>
    %18 = vector.extract_strided_slice %13 {offsets = [2, 0], sizes = [1, 32], strides = [1, 1]} : vector<16x128xf32> to vector<1x32xf32>
    %19 = vector.shape_cast %18 : vector<1x32xf32> to vector<32xf32>
    %20 = vector.extract_strided_slice %13 {offsets = [3, 0], sizes = [1, 32], strides = [1, 1]} : vector<16x128xf32> to vector<1x32xf32>
    %21 = vector.shape_cast %20 : vector<1x32xf32> to vector<32xf32>
    %22 = vector.extract_strided_slice %13 {offsets = [4, 0], sizes = [1, 32], strides = [1, 1]} : vector<16x128xf32> to vector<1x32xf32>
    %23 = vector.shape_cast %22 : vector<1x32xf32> to vector<32xf32>
    %24 = vector.extract_strided_slice %13 {offsets = [5, 0], sizes = [1, 32], strides = [1, 1]} : vector<16x128xf32> to vector<1x32xf32>
    %25 = vector.shape_cast %24 : vector<1x32xf32> to vector<32xf32>
    %26 = vector.extract_strided_slice %13 {offsets = [6, 0], sizes = [1, 64], strides = [1, 1]} : vector<16x128xf32> to vector<1x64xf32>
    %27 = vector.shape_cast %26 : vector<1x64xf32> to vector<64xf32>
    %28 = vector.extract_strided_slice %13 {offsets = [7, 0], sizes = [1, 16], strides = [1, 1]} : vector<16x128xf32> to vector<1x16xf32>
    %29 = vector.shape_cast %28 : vector<1x16xf32> to vector<16xf32>
    %30 = vector.extract_strided_slice %13 {offsets = [7, 16], sizes = [1, 4], strides = [1, 1]} : vector<16x128xf32> to vector<1x4xf32>
    %31 = vector.shape_cast %30 : vector<1x4xf32> to vector<4xf32>
    %32 = vector.extract_strided_slice %13 {offsets = [8, 0], sizes = [4, 16], strides = [1, 1]} : vector<16x128xf32> to vector<4x16xf32>
    %33 = vector.extract_strided_slice %13 {offsets = [12, 0], sizes = [2, 16], strides = [1, 1]} : vector<16x128xf32> to vector<2x16xf32>
    %cst = arith.constant dense<0.000000e+00> : vector<8xf32>
    %34 = vector.multi_reduction <add>, %1, %cst [1] : vector<8x32xf32> to vector<8xf32>
    %35 = vector.shape_cast %34 : vector<8xf32> to vector<8x1xf32>
    %cst_8 = arith.constant 3.200000e+01 : f32
    %36 = vector.broadcast %cst_8 : f32 to vector<8x1xf32>
    %37 = arith.divf %35, %36 : vector<8x1xf32>
    %38 = vector.broadcast %37 : vector<8x1xf32> to vector<8x32xf32>
    %39 = arith.subf %1, %38 : vector<8x32xf32>
    %40 = arith.mulf %39, %39 : vector<8x32xf32>
    %cst_9 = arith.constant dense<0.000000e+00> : vector<8xf32>
    %41 = vector.multi_reduction <add>, %40, %cst_9 [1] : vector<8x32xf32> to vector<8xf32>
    %42 = vector.shape_cast %41 : vector<8xf32> to vector<8x1xf32>
    %cst_10 = arith.constant 3.200000e+01 : f32
    %43 = vector.broadcast %cst_10 : f32 to vector<8x1xf32>
    %44 = arith.divf %42, %43 : vector<8x1xf32>
    %45 = vector.broadcast %37 : vector<8x1xf32> to vector<8x32xf32>
    %46 = arith.subf %1, %45 : vector<8x32xf32>
    %cst_11 = arith.constant 9.99999974E-6 : f32
    %47 = vector.broadcast %cst_11 : f32 to vector<8x1xf32>
    %48 = arith.addf %44, %47 : vector<8x1xf32>
    %49 = math.rsqrt %48 : vector<8x1xf32>
    %50 = vector.broadcast %49 : vector<8x1xf32> to vector<8x32xf32>
    %51 = arith.mulf %46, %50 : vector<8x32xf32>
    %52 = vector.shape_cast %15 : vector<32xf32> to vector<1x32xf32>
    %53 = vector.broadcast %52 : vector<1x32xf32> to vector<8x32xf32>
    %54 = arith.mulf %51, %53 : vector<8x32xf32>
    %55 = vector.shape_cast %17 : vector<32xf32> to vector<1x32xf32>
    %56 = vector.broadcast %55 : vector<1x32xf32> to vector<8x32xf32>
    %57 = arith.addf %54, %56 : vector<8x32xf32>
    %c0_12 = arith.constant 0 : index
    %c0_13 = arith.constant 0 : index
    %c0_14 = arith.constant 0 : index
    %58 = vector.load %arg3[%c0_12, %c0_13, %c0_14] : memref<2x32x96xf32, #tpu.memory_space<vmem>>, vector<1x32x96xf32>
    %59 = vector.shape_cast %58 : vector<1x32x96xf32> to vector<32x96xf32>
    %cst_15 = arith.constant dense<0.000000e+00> : vector<8x96xf32>
    %60 = tpu.matmul %57, %59, %cst_15 {dimension_numbers = #tpu.dot_dimension_numbers<[1], [0], [0], [1], [0, 0, 1, 1], [], []>, precision = #tpu.contract_precision<fp32>} : vector<8x32xf32>, vector<32x96xf32>, vector<8x96xf32> -> vector<8x96xf32>
    %61 = vector.shape_cast %60 : vector<8x96xf32> to vector<8x12x8xf32>
    %62 = tpu.transpose %61, [1, 0, 2] : vector<8x12x8xf32> -> vector<12x8x8xf32>
    %63 = vector.extract_strided_slice %62 {offsets = [0, 0, 0], sizes = [4, 8, 8], strides = [1, 1, 1]} : vector<12x8x8xf32> to vector<4x8x8xf32>
    %64 = vector.extract_strided_slice %62 {offsets = [4, 0, 0], sizes = [4, 8, 8], strides = [1, 1, 1]} : vector<12x8x8xf32> to vector<4x8x8xf32>
    %65 = vector.extract_strided_slice %62 {offsets = [8, 0, 0], sizes = [4, 8, 8], strides = [1, 1, 1]} : vector<12x8x8xf32> to vector<4x8x8xf32>
    %66 = vector.extract_strided_slice %11 {offsets = [0, 0], sizes = [64, 1], strides = [1, 1]} : vector<64x2xf32> to vector<64x1xf32>
    %67 = vector.extract_strided_slice %33 {offsets = [0, 0], sizes = [1, 16], strides = [1, 1]} : vector<2x16xf32> to vector<1x16xf32>
    %68 = vector.shape_cast %67 : vector<1x16xf32> to vector<16xf32>
    %69 = vector.shape_cast %68 : vector<16xf32> to vector<1x16xf32>
    %70 = vector.broadcast %66 : vector<64x1xf32> to vector<64x16xf32>
    %71 = vector.broadcast %69 : vector<1x16xf32> to vector<64x16xf32>
    %72 = arith.mulf %70, %71 : vector<64x16xf32>
    %73 = vector.shape_cast %29 : vector<16xf32> to vector<1x16xf32>
    %74 = vector.broadcast %73 : vector<1x16xf32> to vector<64x16xf32>
    %75 = arith.addf %74, %72 : vector<64x16xf32>
    %76 = vector.extract_strided_slice %11 {offsets = [0, 1], sizes = [64, 1], strides = [1, 1]} : vector<64x2xf32> to vector<64x1xf32>
    %77 = vector.extract_strided_slice %33 {offsets = [1, 0], sizes = [1, 16], strides = [1, 1]} : vector<2x16xf32> to vector<1x16xf32>
    %78 = vector.shape_cast %77 : vector<1x16xf32> to vector<16xf32>
    %79 = vector.shape_cast %78 : vector<16xf32> to vector<1x16xf32>
    %80 = vector.broadcast %76 : vector<64x1xf32> to vector<64x16xf32>
    %81 = vector.broadcast %79 : vector<1x16xf32> to vector<64x16xf32>
    %82 = arith.mulf %80, %81 : vector<64x16xf32>
    %83 = arith.addf %75, %82 : vector<64x16xf32>
    %cst_16 = arith.constant 0.000000e+00 : f32
    %84 = vector.broadcast %cst_16 : f32 to vector<64x16xf32>
    %85 = arith.maximumf %83, %84 : vector<64x16xf32>
    %cst_17 = arith.constant dense<0.000000e+00> : vector<4x64xf32>
    %86 = tpu.matmul %32, %85, %cst_17 {dimension_numbers = #tpu.dot_dimension_numbers<[1], [1], [0], [0], [0, 0, 1, 0], [], []>, precision = #tpu.contract_precision<fp32>} : vector<4x16xf32>, vector<64x16xf32>, vector<4x64xf32> -> vector<4x64xf32>
    %87 = vector.shape_cast %86 : vector<4x64xf32> to vector<4x8x8xf32>
    %88 = vector.shape_cast %31 : vector<4xf32> to vector<4x1x1xf32>
    %89 = vector.broadcast %88 : vector<4x1x1xf32> to vector<4x8x8xf32>
    %90 = arith.addf %87, %89 : vector<4x8x8xf32>
    "tpu.trace_start"() <{level = 10 : i32, message = "hqd,hkd->hqk"}> : () -> ()
    %cst_18 = arith.constant dense<0.000000e+00> : vector<4x8x8xf32>
    %91 = tpu.matmul %63, %64, %cst_18 {dimension_numbers = #tpu.dot_dimension_numbers<[2], [2], [1], [1], [0, 0, 0, 1, 1, 1], [0], [0]>, precision = #tpu.contract_precision<fp32>} : vector<4x8x8xf32>, vector<4x8x8xf32>, vector<4x8x8xf32> -> vector<4x8x8xf32>
    "tpu.trace_stop"() : () -> ()
    %cst_19 = arith.constant 0.353553385 : f32
    %92 = vector.broadcast %cst_19 : f32 to vector<4x8x8xf32>
    %93 = arith.mulf %91, %92 : vector<4x8x8xf32>
    %94 = arith.addf %93, %90 : vector<4x8x8xf32>
    %95 = vector.shape_cast %4 : vector<8x8xf32> to vector<1x8x8xf32>
    %96 = vector.broadcast %95 : vector<1x8x8xf32> to vector<4x8x8xf32>
    %97 = arith.addf %94, %96 : vector<4x8x8xf32>
    %cst_20 = arith.constant dense<0xFF800000> : vector<4x8xf32>
    %98 = vector.multi_reduction <maximumf>, %97, %cst_20 [2] : vector<4x8x8xf32> to vector<4x8xf32>
    %99 = vector.shape_cast %98 : vector<4x8xf32> to vector<4x8x1xf32>
    %100 = vector.broadcast %99 : vector<4x8x1xf32> to vector<4x8x8xf32>
    %101 = arith.subf %97, %100 : vector<4x8x8xf32>
    %102 = math.exp %101 : vector<4x8x8xf32>
    %cst_21 = arith.constant dense<0.000000e+00> : vector<4x8xf32>
    %103 = vector.multi_reduction <add>, %102, %cst_21 [2] : vector<4x8x8xf32> to vector<4x8xf32>
    %104 = vector.shape_cast %103 : vector<4x8xf32> to vector<4x8x1xf32>
    %105 = tpu.reciprocal %104 {approx = true} : vector<4x8x1xf32> -> vector<4x8x1xf32>
    %106 = vector.broadcast %105 : vector<4x8x1xf32> to vector<4x8x8xf32>
    %107 = arith.mulf %102, %106 : vector<4x8x8xf32>
    "tpu.trace_start"() <{level = 10 : i32, message = "hqk,hkd->hqd"}> : () -> ()
    %cst_22 = arith.constant dense<0.000000e+00> : vector<4x8x8xf32>
    %108 = tpu.matmul %107, %65, %cst_22 {dimension_numbers = #tpu.dot_dimension_numbers<[2], [1], [1], [2], [0, 0, 0, 1, 1, 2], [0], [0]>, precision = #tpu.contract_precision<fp32>} : vector<4x8x8xf32>, vector<4x8x8xf32>, vector<4x8x8xf32> -> vector<4x8x8xf32>
    "tpu.trace_stop"() : () -> ()
    %109 = tpu.transpose %108, [1, 0, 2] : vector<4x8x8xf32> -> vector<8x4x8xf32>
    %110 = vector.shape_cast %109 : vector<8x4x8xf32> to vector<8x32xf32>
    %c0_23 = arith.constant 0 : index
    %c0_24 = arith.constant 0 : index
    %c0_25 = arith.constant 0 : index
    %111 = vector.load %arg4[%c0_23, %c0_24, %c0_25] : memref<2x32x32xf32, #tpu.memory_space<vmem>>, vector<1x32x32xf32>
    %112 = vector.shape_cast %111 : vector<1x32x32xf32> to vector<32x32xf32>
    %cst_26 = arith.constant dense<0.000000e+00> : vector<8x32xf32>
    %113 = tpu.matmul %110, %112, %cst_26 {dimension_numbers = #tpu.dot_dimension_numbers<[1], [0], [0], [1], [0, 0, 1, 1], [], []>, precision = #tpu.contract_precision<fp32>} : vector<8x32xf32>, vector<32x32xf32>, vector<8x32xf32> -> vector<8x32xf32>
    %114 = arith.addf %1, %113 : vector<8x32xf32>
    %115 = vector.shape_cast %23 : vector<32xf32> to vector<1x32xf32>
    %116 = vector.broadcast %115 : vector<1x32xf32> to vector<8x32xf32>
    %117 = arith.addf %114, %116 : vector<8x32xf32>
    %cst_27 = arith.constant dense<0.000000e+00> : vector<8xf32>
    %118 = vector.multi_reduction <add>, %117, %cst_27 [1] : vector<8x32xf32> to vector<8xf32>
    %119 = vector.shape_cast %118 : vector<8xf32> to vector<8x1xf32>
    %cst_28 = arith.constant 3.200000e+01 : f32
    %120 = vector.broadcast %cst_28 : f32 to vector<8x1xf32>
    %121 = arith.divf %119, %120 : vector<8x1xf32>
    %122 = vector.broadcast %121 : vector<8x1xf32> to vector<8x32xf32>
    %123 = arith.subf %117, %122 : vector<8x32xf32>
    %124 = arith.mulf %123, %123 : vector<8x32xf32>
    %cst_29 = arith.constant dense<0.000000e+00> : vector<8xf32>
    %125 = vector.multi_reduction <add>, %124, %cst_29 [1] : vector<8x32xf32> to vector<8xf32>
    %126 = vector.shape_cast %125 : vector<8xf32> to vector<8x1xf32>
    %cst_30 = arith.constant 3.200000e+01 : f32
    %127 = vector.broadcast %cst_30 : f32 to vector<8x1xf32>
    %128 = arith.divf %126, %127 : vector<8x1xf32>
    %129 = vector.broadcast %121 : vector<8x1xf32> to vector<8x32xf32>
    %130 = arith.subf %117, %129 : vector<8x32xf32>
    %cst_31 = arith.constant 9.99999974E-6 : f32
    %131 = vector.broadcast %cst_31 : f32 to vector<8x1xf32>
    %132 = arith.addf %128, %131 : vector<8x1xf32>
    %133 = math.rsqrt %132 : vector<8x1xf32>
    %134 = vector.broadcast %133 : vector<8x1xf32> to vector<8x32xf32>
    %135 = arith.mulf %130, %134 : vector<8x32xf32>
    %136 = vector.shape_cast %19 : vector<32xf32> to vector<1x32xf32>
    %137 = vector.broadcast %136 : vector<1x32xf32> to vector<8x32xf32>
    %138 = arith.mulf %135, %137 : vector<8x32xf32>
    %139 = vector.shape_cast %21 : vector<32xf32> to vector<1x32xf32>
    %140 = vector.broadcast %139 : vector<1x32xf32> to vector<8x32xf32>
    %141 = arith.addf %138, %140 : vector<8x32xf32>
    %c0_32 = arith.constant 0 : index
    %c0_33 = arith.constant 0 : index
    %c0_34 = arith.constant 0 : index
    %142 = vector.load %arg5[%c0_32, %c0_33, %c0_34] : memref<2x32x64xf32, #tpu.memory_space<vmem>>, vector<1x32x64xf32>
    %143 = vector.shape_cast %142 : vector<1x32x64xf32> to vector<32x64xf32>
    %cst_35 = arith.constant dense<0.000000e+00> : vector<8x64xf32>
    %144 = tpu.matmul %141, %143, %cst_35 {dimension_numbers = #tpu.dot_dimension_numbers<[1], [0], [0], [1], [0, 0, 1, 1], [], []>, precision = #tpu.contract_precision<fp32>} : vector<8x32xf32>, vector<32x64xf32>, vector<8x64xf32> -> vector<8x64xf32>
    %145 = vector.shape_cast %27 : vector<64xf32> to vector<1x64xf32>
    %146 = vector.broadcast %145 : vector<1x64xf32> to vector<8x64xf32>
    %147 = arith.addf %144, %146 : vector<8x64xf32>
    %cst_36 = arith.constant 0.000000e+00 : f32
    %148 = vector.broadcast %cst_36 : f32 to vector<8x64xf32>
    %149 = arith.maximumf %147, %148 : vector<8x64xf32>
    %c0_37 = arith.constant 0 : index
    %c0_38 = arith.constant 0 : index
    %c0_39 = arith.constant 0 : index
    %150 = vector.load %arg6[%c0_37, %c0_38, %c0_39] : memref<2x64x32xf32, #tpu.memory_space<vmem>>, vector<1x64x32xf32>
    %151 = vector.shape_cast %150 : vector<1x64x32xf32> to vector<64x32xf32>
    %cst_40 = arith.constant dense<0.000000e+00> : vector<8x32xf32>
    %152 = tpu.matmul %149, %151, %cst_40 {dimension_numbers = #tpu.dot_dimension_numbers<[1], [0], [0], [1], [0, 0, 1, 1], [], []>, precision = #tpu.contract_precision<fp32>} : vector<8x64xf32>, vector<64x32xf32>, vector<8x32xf32> -> vector<8x32xf32>
    %153 = arith.addf %117, %152 : vector<8x32xf32>
    %154 = vector.shape_cast %25 : vector<32xf32> to vector<1x32xf32>
    %155 = vector.broadcast %154 : vector<1x32xf32> to vector<8x32xf32>
    %156 = arith.addf %153, %155 : vector<8x32xf32>
    %c1 = arith.constant 1 : index
    %c0_41 = arith.constant 0 : index
    %c0_42 = arith.constant 0 : index
    %157 = vector.load %arg7[%c1, %c0_41, %c0_42] : memref<2x16x128xf32, #tpu.memory_space<vmem>>, vector<1x16x128xf32>
    %158 = vector.shape_cast %157 : vector<1x16x128xf32> to vector<16x128xf32>
    %159 = vector.extract_strided_slice %158 {offsets = [0, 0], sizes = [1, 32], strides = [1, 1]} : vector<16x128xf32> to vector<1x32xf32>
    %160 = vector.shape_cast %159 : vector<1x32xf32> to vector<32xf32>
    %161 = vector.extract_strided_slice %158 {offsets = [1, 0], sizes = [1, 32], strides = [1, 1]} : vector<16x128xf32> to vector<1x32xf32>
    %162 = vector.shape_cast %161 : vector<1x32xf32> to vector<32xf32>
    %163 = vector.extract_strided_slice %158 {offsets = [2, 0], sizes = [1, 32], strides = [1, 1]} : vector<16x128xf32> to vector<1x32xf32>
    %164 = vector.shape_cast %163 : vector<1x32xf32> to vector<32xf32>
    %165 = vector.extract_strided_slice %158 {offsets = [3, 0], sizes = [1, 32], strides = [1, 1]} : vector<16x128xf32> to vector<1x32xf32>
    %166 = vector.shape_cast %165 : vector<1x32xf32> to vector<32xf32>
    %167 = vector.extract_strided_slice %158 {offsets = [4, 0], sizes = [1, 32], strides = [1, 1]} : vector<16x128xf32> to vector<1x32xf32>
    %168 = vector.shape_cast %167 : vector<1x32xf32> to vector<32xf32>
    %169 = vector.extract_strided_slice %158 {offsets = [5, 0], sizes = [1, 32], strides = [1, 1]} : vector<16x128xf32> to vector<1x32xf32>
    %170 = vector.shape_cast %169 : vector<1x32xf32> to vector<32xf32>
    %171 = vector.extract_strided_slice %158 {offsets = [6, 0], sizes = [1, 64], strides = [1, 1]} : vector<16x128xf32> to vector<1x64xf32>
    %172 = vector.shape_cast %171 : vector<1x64xf32> to vector<64xf32>
    %173 = vector.extract_strided_slice %158 {offsets = [7, 0], sizes = [1, 16], strides = [1, 1]} : vector<16x128xf32> to vector<1x16xf32>
    %174 = vector.shape_cast %173 : vector<1x16xf32> to vector<16xf32>
    %175 = vector.extract_strided_slice %158 {offsets = [7, 16], sizes = [1, 4], strides = [1, 1]} : vector<16x128xf32> to vector<1x4xf32>
    %176 = vector.shape_cast %175 : vector<1x4xf32> to vector<4xf32>
    %177 = vector.extract_strided_slice %158 {offsets = [8, 0], sizes = [4, 16], strides = [1, 1]} : vector<16x128xf32> to vector<4x16xf32>
    %178 = vector.extract_strided_slice %158 {offsets = [12, 0], sizes = [2, 16], strides = [1, 1]} : vector<16x128xf32> to vector<2x16xf32>
    %cst_43 = arith.constant dense<0.000000e+00> : vector<8xf32>
    %179 = vector.multi_reduction <add>, %156, %cst_43 [1] : vector<8x32xf32> to vector<8xf32>
    %180 = vector.shape_cast %179 : vector<8xf32> to vector<8x1xf32>
    %cst_44 = arith.constant 3.200000e+01 : f32
    %181 = vector.broadcast %cst_44 : f32 to vector<8x1xf32>
    %182 = arith.divf %180, %181 : vector<8x1xf32>
    %183 = vector.broadcast %182 : vector<8x1xf32> to vector<8x32xf32>
    %184 = arith.subf %156, %183 : vector<8x32xf32>
    %185 = arith.mulf %184, %184 : vector<8x32xf32>
    %cst_45 = arith.constant dense<0.000000e+00> : vector<8xf32>
    %186 = vector.multi_reduction <add>, %185, %cst_45 [1] : vector<8x32xf32> to vector<8xf32>
    %187 = vector.shape_cast %186 : vector<8xf32> to vector<8x1xf32>
    %cst_46 = arith.constant 3.200000e+01 : f32
    %188 = vector.broadcast %cst_46 : f32 to vector<8x1xf32>
    %189 = arith.divf %187, %188 : vector<8x1xf32>
    %190 = vector.broadcast %182 : vector<8x1xf32> to vector<8x32xf32>
    %191 = arith.subf %156, %190 : vector<8x32xf32>
    %cst_47 = arith.constant 9.99999974E-6 : f32
    %192 = vector.broadcast %cst_47 : f32 to vector<8x1xf32>
    %193 = arith.addf %189, %192 : vector<8x1xf32>
    %194 = math.rsqrt %193 : vector<8x1xf32>
    %195 = vector.broadcast %194 : vector<8x1xf32> to vector<8x32xf32>
    %196 = arith.mulf %191, %195 : vector<8x32xf32>
    %197 = vector.shape_cast %160 : vector<32xf32> to vector<1x32xf32>
    %198 = vector.broadcast %197 : vector<1x32xf32> to vector<8x32xf32>
    %199 = arith.mulf %196, %198 : vector<8x32xf32>
    %200 = vector.shape_cast %162 : vector<32xf32> to vector<1x32xf32>
    %201 = vector.broadcast %200 : vector<1x32xf32> to vector<8x32xf32>
    %202 = arith.addf %199, %201 : vector<8x32xf32>
    %c1_48 = arith.constant 1 : index
    %c0_49 = arith.constant 0 : index
    %c0_50 = arith.constant 0 : index
    %203 = vector.load %arg3[%c1_48, %c0_49, %c0_50] : memref<2x32x96xf32, #tpu.memory_space<vmem>>, vector<1x32x96xf32>
    %204 = vector.shape_cast %203 : vector<1x32x96xf32> to vector<32x96xf32>
    %cst_51 = arith.constant dense<0.000000e+00> : vector<8x96xf32>
    %205 = tpu.matmul %202, %204, %cst_51 {dimension_numbers = #tpu.dot_dimension_numbers<[1], [0], [0], [1], [0, 0, 1, 1], [], []>, precision = #tpu.contract_precision<fp32>} : vector<8x32xf32>, vector<32x96xf32>, vector<8x96xf32> -> vector<8x96xf32>
    %206 = vector.shape_cast %205 : vector<8x96xf32> to vector<8x12x8xf32>
    %207 = tpu.transpose %206, [1, 0, 2] : vector<8x12x8xf32> -> vector<12x8x8xf32>
    %208 = vector.extract_strided_slice %207 {offsets = [0, 0, 0], sizes = [4, 8, 8], strides = [1, 1, 1]} : vector<12x8x8xf32> to vector<4x8x8xf32>
    %209 = vector.extract_strided_slice %207 {offsets = [4, 0, 0], sizes = [4, 8, 8], strides = [1, 1, 1]} : vector<12x8x8xf32> to vector<4x8x8xf32>
    %210 = vector.extract_strided_slice %207 {offsets = [8, 0, 0], sizes = [4, 8, 8], strides = [1, 1, 1]} : vector<12x8x8xf32> to vector<4x8x8xf32>
    %211 = vector.extract_strided_slice %11 {offsets = [0, 0], sizes = [64, 1], strides = [1, 1]} : vector<64x2xf32> to vector<64x1xf32>
    %212 = vector.extract_strided_slice %178 {offsets = [0, 0], sizes = [1, 16], strides = [1, 1]} : vector<2x16xf32> to vector<1x16xf32>
    %213 = vector.shape_cast %212 : vector<1x16xf32> to vector<16xf32>
    %214 = vector.shape_cast %213 : vector<16xf32> to vector<1x16xf32>
    %215 = vector.broadcast %211 : vector<64x1xf32> to vector<64x16xf32>
    %216 = vector.broadcast %214 : vector<1x16xf32> to vector<64x16xf32>
    %217 = arith.mulf %215, %216 : vector<64x16xf32>
    %218 = vector.shape_cast %174 : vector<16xf32> to vector<1x16xf32>
    %219 = vector.broadcast %218 : vector<1x16xf32> to vector<64x16xf32>
    %220 = arith.addf %219, %217 : vector<64x16xf32>
    %221 = vector.extract_strided_slice %11 {offsets = [0, 1], sizes = [64, 1], strides = [1, 1]} : vector<64x2xf32> to vector<64x1xf32>
    %222 = vector.extract_strided_slice %178 {offsets = [1, 0], sizes = [1, 16], strides = [1, 1]} : vector<2x16xf32> to vector<1x16xf32>
    %223 = vector.shape_cast %222 : vector<1x16xf32> to vector<16xf32>
    %224 = vector.shape_cast %223 : vector<16xf32> to vector<1x16xf32>
    %225 = vector.broadcast %221 : vector<64x1xf32> to vector<64x16xf32>
    %226 = vector.broadcast %224 : vector<1x16xf32> to vector<64x16xf32>
    %227 = arith.mulf %225, %226 : vector<64x16xf32>
    %228 = arith.addf %220, %227 : vector<64x16xf32>
    %cst_52 = arith.constant 0.000000e+00 : f32
    %229 = vector.broadcast %cst_52 : f32 to vector<64x16xf32>
    %230 = arith.maximumf %228, %229 : vector<64x16xf32>
    %cst_53 = arith.constant dense<0.000000e+00> : vector<4x64xf32>
    %231 = tpu.matmul %177, %230, %cst_53 {dimension_numbers = #tpu.dot_dimension_numbers<[1], [1], [0], [0], [0, 0, 1, 0], [], []>, precision = #tpu.contract_precision<fp32>} : vector<4x16xf32>, vector<64x16xf32>, vector<4x64xf32> -> vector<4x64xf32>
    %232 = vector.shape_cast %231 : vector<4x64xf32> to vector<4x8x8xf32>
    %233 = vector.shape_cast %176 : vector<4xf32> to vector<4x1x1xf32>
    %234 = vector.broadcast %233 : vector<4x1x1xf32> to vector<4x8x8xf32>
    %235 = arith.addf %232, %234 : vector<4x8x8xf32>
    "tpu.trace_start"() <{level = 10 : i32, message = "hqd,hkd->hqk"}> : () -> ()
    %cst_54 = arith.constant dense<0.000000e+00> : vector<4x8x8xf32>
    %236 = tpu.matmul %208, %209, %cst_54 {dimension_numbers = #tpu.dot_dimension_numbers<[2], [2], [1], [1], [0, 0, 0, 1, 1, 1], [0], [0]>, precision = #tpu.contract_precision<fp32>} : vector<4x8x8xf32>, vector<4x8x8xf32>, vector<4x8x8xf32> -> vector<4x8x8xf32>
    "tpu.trace_stop"() : () -> ()
    %cst_55 = arith.constant 0.353553385 : f32
    %237 = vector.broadcast %cst_55 : f32 to vector<4x8x8xf32>
    %238 = arith.mulf %236, %237 : vector<4x8x8xf32>
    %239 = arith.addf %238, %235 : vector<4x8x8xf32>
    %240 = vector.shape_cast %4 : vector<8x8xf32> to vector<1x8x8xf32>
    %241 = vector.broadcast %240 : vector<1x8x8xf32> to vector<4x8x8xf32>
    %242 = arith.addf %239, %241 : vector<4x8x8xf32>
    %cst_56 = arith.constant dense<0xFF800000> : vector<4x8xf32>
    %243 = vector.multi_reduction <maximumf>, %242, %cst_56 [2] : vector<4x8x8xf32> to vector<4x8xf32>
    %244 = vector.shape_cast %243 : vector<4x8xf32> to vector<4x8x1xf32>
    %245 = vector.broadcast %244 : vector<4x8x1xf32> to vector<4x8x8xf32>
    %246 = arith.subf %242, %245 : vector<4x8x8xf32>
    %247 = math.exp %246 : vector<4x8x8xf32>
    %cst_57 = arith.constant dense<0.000000e+00> : vector<4x8xf32>
    %248 = vector.multi_reduction <add>, %247, %cst_57 [2] : vector<4x8x8xf32> to vector<4x8xf32>
    %249 = vector.shape_cast %248 : vector<4x8xf32> to vector<4x8x1xf32>
    %250 = tpu.reciprocal %249 {approx = true} : vector<4x8x1xf32> -> vector<4x8x1xf32>
    %251 = vector.broadcast %250 : vector<4x8x1xf32> to vector<4x8x8xf32>
    %252 = arith.mulf %247, %251 : vector<4x8x8xf32>
    "tpu.trace_start"() <{level = 10 : i32, message = "hqk,hkd->hqd"}> : () -> ()
    %cst_58 = arith.constant dense<0.000000e+00> : vector<4x8x8xf32>
    %253 = tpu.matmul %252, %210, %cst_58 {dimension_numbers = #tpu.dot_dimension_numbers<[2], [1], [1], [2], [0, 0, 0, 1, 1, 2], [0], [0]>, precision = #tpu.contract_precision<fp32>} : vector<4x8x8xf32>, vector<4x8x8xf32>, vector<4x8x8xf32> -> vector<4x8x8xf32>
    "tpu.trace_stop"() : () -> ()
    %254 = tpu.transpose %253, [1, 0, 2] : vector<4x8x8xf32> -> vector<8x4x8xf32>
    %255 = vector.shape_cast %254 : vector<8x4x8xf32> to vector<8x32xf32>
    %c1_59 = arith.constant 1 : index
    %c0_60 = arith.constant 0 : index
    %c0_61 = arith.constant 0 : index
    %256 = vector.load %arg4[%c1_59, %c0_60, %c0_61] : memref<2x32x32xf32, #tpu.memory_space<vmem>>, vector<1x32x32xf32>
    %257 = vector.shape_cast %256 : vector<1x32x32xf32> to vector<32x32xf32>
    %cst_62 = arith.constant dense<0.000000e+00> : vector<8x32xf32>
    %258 = tpu.matmul %255, %257, %cst_62 {dimension_numbers = #tpu.dot_dimension_numbers<[1], [0], [0], [1], [0, 0, 1, 1], [], []>, precision = #tpu.contract_precision<fp32>} : vector<8x32xf32>, vector<32x32xf32>, vector<8x32xf32> -> vector<8x32xf32>
    %259 = arith.addf %156, %258 : vector<8x32xf32>
    %260 = vector.shape_cast %168 : vector<32xf32> to vector<1x32xf32>
    %261 = vector.broadcast %260 : vector<1x32xf32> to vector<8x32xf32>
    %262 = arith.addf %259, %261 : vector<8x32xf32>
    %cst_63 = arith.constant dense<0.000000e+00> : vector<8xf32>
    %263 = vector.multi_reduction <add>, %262, %cst_63 [1] : vector<8x32xf32> to vector<8xf32>
    %264 = vector.shape_cast %263 : vector<8xf32> to vector<8x1xf32>
    %cst_64 = arith.constant 3.200000e+01 : f32
    %265 = vector.broadcast %cst_64 : f32 to vector<8x1xf32>
    %266 = arith.divf %264, %265 : vector<8x1xf32>
    %267 = vector.broadcast %266 : vector<8x1xf32> to vector<8x32xf32>
    %268 = arith.subf %262, %267 : vector<8x32xf32>
    %269 = arith.mulf %268, %268 : vector<8x32xf32>
    %cst_65 = arith.constant dense<0.000000e+00> : vector<8xf32>
    %270 = vector.multi_reduction <add>, %269, %cst_65 [1] : vector<8x32xf32> to vector<8xf32>
    %271 = vector.shape_cast %270 : vector<8xf32> to vector<8x1xf32>
    %cst_66 = arith.constant 3.200000e+01 : f32
    %272 = vector.broadcast %cst_66 : f32 to vector<8x1xf32>
    %273 = arith.divf %271, %272 : vector<8x1xf32>
    %274 = vector.broadcast %266 : vector<8x1xf32> to vector<8x32xf32>
    %275 = arith.subf %262, %274 : vector<8x32xf32>
    %cst_67 = arith.constant 9.99999974E-6 : f32
    %276 = vector.broadcast %cst_67 : f32 to vector<8x1xf32>
    %277 = arith.addf %273, %276 : vector<8x1xf32>
    %278 = math.rsqrt %277 : vector<8x1xf32>
    %279 = vector.broadcast %278 : vector<8x1xf32> to vector<8x32xf32>
    %280 = arith.mulf %275, %279 : vector<8x32xf32>
    %281 = vector.shape_cast %164 : vector<32xf32> to vector<1x32xf32>
    %282 = vector.broadcast %281 : vector<1x32xf32> to vector<8x32xf32>
    %283 = arith.mulf %280, %282 : vector<8x32xf32>
    %284 = vector.shape_cast %166 : vector<32xf32> to vector<1x32xf32>
    %285 = vector.broadcast %284 : vector<1x32xf32> to vector<8x32xf32>
    %286 = arith.addf %283, %285 : vector<8x32xf32>
    %c1_68 = arith.constant 1 : index
    %c0_69 = arith.constant 0 : index
    %c0_70 = arith.constant 0 : index
    %287 = vector.load %arg5[%c1_68, %c0_69, %c0_70] : memref<2x32x64xf32, #tpu.memory_space<vmem>>, vector<1x32x64xf32>
    %288 = vector.shape_cast %287 : vector<1x32x64xf32> to vector<32x64xf32>
    %cst_71 = arith.constant dense<0.000000e+00> : vector<8x64xf32>
    %289 = tpu.matmul %286, %288, %cst_71 {dimension_numbers = #tpu.dot_dimension_numbers<[1], [0], [0], [1], [0, 0, 1, 1], [], []>, precision = #tpu.contract_precision<fp32>} : vector<8x32xf32>, vector<32x64xf32>, vector<8x64xf32> -> vector<8x64xf32>
    %290 = vector.shape_cast %172 : vector<64xf32> to vector<1x64xf32>
    %291 = vector.broadcast %290 : vector<1x64xf32> to vector<8x64xf32>
    %292 = arith.addf %289, %291 : vector<8x64xf32>
    %cst_72 = arith.constant 0.000000e+00 : f32
    %293 = vector.broadcast %cst_72 : f32 to vector<8x64xf32>
    %294 = arith.maximumf %292, %293 : vector<8x64xf32>
    %c1_73 = arith.constant 1 : index
    %c0_74 = arith.constant 0 : index
    %c0_75 = arith.constant 0 : index
    %295 = vector.load %arg6[%c1_73, %c0_74, %c0_75] : memref<2x64x32xf32, #tpu.memory_space<vmem>>, vector<1x64x32xf32>
    %296 = vector.shape_cast %295 : vector<1x64x32xf32> to vector<64x32xf32>
    %cst_76 = arith.constant dense<0.000000e+00> : vector<8x32xf32>
    %297 = tpu.matmul %294, %296, %cst_76 {dimension_numbers = #tpu.dot_dimension_numbers<[1], [0], [0], [1], [0, 0, 1, 1], [], []>, precision = #tpu.contract_precision<fp32>} : vector<8x64xf32>, vector<64x32xf32>, vector<8x32xf32> -> vector<8x32xf32>
    %298 = arith.addf %262, %297 : vector<8x32xf32>
    %299 = vector.shape_cast %170 : vector<32xf32> to vector<1x32xf32>
    %300 = vector.broadcast %299 : vector<1x32xf32> to vector<8x32xf32>
    %301 = arith.addf %298, %300 : vector<8x32xf32>
    %c0_77 = arith.constant 0 : index
    %c0_78 = arith.constant 0 : index
    %c0_79 = arith.constant 0 : index
    %302 = vector.load %arg8[%c0_77, %c0_78, %c0_79] : memref<1x8x32xf32, #tpu.memory_space<vmem>>, vector<1x8x32xf32>
    %303 = vector.shape_cast %302 : vector<1x8x32xf32> to vector<8x32xf32>
    %304 = vector.shape_cast %301 : vector<8x32xf32> to vector<1x8x32xf32>
    tpu.vector_store %arg8[%c0_77, %c0_78, %c0_79], %304 {strides = array<i32>} : memref<1x8x32xf32, #tpu.memory_space<vmem>>, vector<1x8x32xf32>,
    return
  }
  func.func @transform_0(%arg0: i32) -> (i32, i32, i32) {
    %c0_i32 = arith.constant 0 : i32
    %c0_i32_0 = arith.constant 0 : i32
    %c0_i32_1 = arith.constant 0 : i32
    return %arg0, %c0_i32, %c0_i32_0 : i32, i32, i32
  }
  func.func @transform_1(%arg0: i32) -> (i32, i32, i32) {
    %c0_i32 = arith.constant 0 : i32
    %c0_i32_0 = arith.constant 0 : i32
    %c0_i32_1 = arith.constant 0 : i32
    return %arg0, %c0_i32, %c0_i32_0 : i32, i32, i32
  }
  func.func @transform_2(%arg0: i32) -> (i32, i32, i32) {
    %c0_i32 = arith.constant 0 : i32
    %c0_i32_0 = arith.constant 0 : i32
    %c0_i32_1 = arith.constant 0 : i32
    %c0_i32_2 = arith.constant 0 : i32
    return %c0_i32, %c0_i32_0, %c0_i32_1 : i32, i32, i32
  }
  func.func @transform_3(%arg0: i32) -> (i32, i32, i32) {
    %c0_i32 = arith.constant 0 : i32
    %c0_i32_0 = arith.constant 0 : i32
    %c0_i32_1 = arith.constant 0 : i32
    %c0_i32_2 = arith.constant 0 : i32
    return %c0_i32, %c0_i32_0, %c0_i32_1 : i32, i32, i32
  }
  func.func @transform_4(%arg0: i32) -> (i32, i32, i32) {
    %c0_i32 = arith.constant 0 : i32
    %c0_i32_0 = arith.constant 0 : i32
    %c0_i32_1 = arith.constant 0 : i32
    %c0_i32_2 = arith.constant 0 : i32
    return %c0_i32, %c0_i32_0, %c0_i32_1 : i32, i32, i32
  }
  func.func @transform_5(%arg0: i32) -> (i32, i32, i32) {
    %c0_i32 = arith.constant 0 : i32
    %c0_i32_0 = arith.constant 0 : i32
    %c0_i32_1 = arith.constant 0 : i32
    %c0_i32_2 = arith.constant 0 : i32
    return %c0_i32, %c0_i32_0, %c0_i32_1 : i32, i32, i32
  }
  func.func @transform_6(%arg0: i32) -> (i32, i32, i32) {
    %c0_i32 = arith.constant 0 : i32
    %c0_i32_0 = arith.constant 0 : i32
    %c0_i32_1 = arith.constant 0 : i32
    %c0_i32_2 = arith.constant 0 : i32
    return %c0_i32, %c0_i32_0, %c0_i32_1 : i32, i32, i32
  }
  func.func @transform_7(%arg0: i32) -> (i32, i32, i32) {
    %c0_i32 = arith.constant 0 : i32
    %c0_i32_0 = arith.constant 0 : i32
    %c0_i32_1 = arith.constant 0 : i32
    return %arg0, %c0_i32, %c0_i32_0 : i32, i32, i32
  }
}

</mosaic_0001>

<bundles_post_ra>
// kernel: tpu_custom_call.1
= control target key start
LH: loop header
LB: loop body
LE: loop exit
PB: predicated region body
PF: predicated region fallthrough
CT: control target
= control target key end

     0   :  { %s8578_s0 = inlined_call_operand.hbm [shape: f32[2,8,32], index: 0, kind: input, shape index: {}]   ;;  %s8579_s1 = inlined_call_operand.hbm [shape: f32[2,8,128], index: 1, kind: input, shape index: {}]   ;;  %s8580_s2 = inlined_call_operand.vmem [shape: f32[2,32,96], index: 2, kind: input, shape index: {}]   ;;  %s8581_s3 = inlined_call_operand.vmem [shape: f32[2,32,32], index: 3, kind: input, shape index: {}]   ;;  %s8582_s4 = inlined_call_operand.vmem [shape: f32[2,32,64], index: 4, kind: input, shape index: {}]   ;;  %s8583_s5 = inlined_call_operand.vmem [shape: f32[2,64,32], index: 5, kind: input, shape index: {}]   ;;  %s8584_s6 = inlined_call_operand.hbm [shape: f32[2,16,128], index: 6, kind: input, shape index: {}]   ;;  %s8585_s7 = inlined_call_operand.hbm [shape: f32[2,8,32], index: 7, kind: output, shape index: {}]  }
   0x1   :  { %8596 = sst [smem:[#allocation18_spill]] %s8584_s6 }
   0x2   :  { %12 = vsyncpa [#allocation3], 0 }
   0x3   :  { %14 = vsyncpa [#allocation3 + $0x1], 0 }
   0x4   :  { %15 = vsyncpa [#allocation6], 0 }
   0x5   :  { %17 = vsyncpa [#allocation6 + $0x1], 0 }
   0x6   :  { %18 = vsyncpa [#allocation4], 0 }
   0x7   :  { %20 = vsyncpa [#allocation4 + $0x1], 0  ;;  %s7077_s24 = smov 0   ;;  %s7079_s25 = smov 0  }
   0x8   :  { %s7081_s26 = smov 0   ;;  %s7083_s27 = smov 0  }
   0x9 LB: > { %8597 = sst [smem:[#allocation13_spill]] %s7009_s26  ;;  %s7101_s8 = sadd.s32 4294967295, %s7013_s27   ;;  %s7013_s27 = sphi %s7083_s27, %s8617_s27   ;;  %s7009_s26 = sphi %s7081_s26, %s8619_s26   ;;  %s7005_s25 = sphi %s7079_s25, %s8621_s25   ;;  %s7001_s24 = sphi %s7077_s24, %s8620_s24  }
   0xa   : > { %8598 = sst [smem:[#allocation14_spill]] %s7013_s27  ;;  %p6671_p0 = scmp.ge.s32.totalorder %s7013_s27, 1 }
   0xb   : > { %s8599_s6 = sld [smem:[#allocation18_spill]]  ;;  %p47_p1 = scmp.eq.s32.totalorder %s7101_s8, 0 }
   0xc   : > { %p214_p2 = scmp.lt.s32.totalorder %s7013_s27, 3  ;;  %s7015_s10 = smov [#allocation7]  }
   0xd   : > { %s239_s11 = sshll.u32 %s7015_s10, 4  ;;  %s7016_s12 = smov 128   ;;  %s240_s11 = int_to_ptr.vmem [resolvable:$true] %s239_s11 }
   0xe   : > { %p7106_p3 = pnand %p6671_p0, %p214_p2  ;;  %s7017_s13 = smov 8  }
   0xf   : > { %s6670_s14 = sadd.s32 4294967294, %s7013_s27   ;;  %s7117_s15 = sadd.s32 1, %s7013_s27  }
  0x10   : > { %p6717_p4 = pneg %p7106_p3  ;;  %8601 = sst [smem:[#allocation15_spill]] %s7117_s15 }
  0x11   : > { %s237_s30 = sshll.u32 %s8599_s6, 4  ;;  %s33_s16 = sadd.s32 1, %s7009_s26  ;;  %s238_s30 = int_to_ptr.hbm [resolvable:$true] %s237_s30 }
  0x12   : > { %p6718_p6 = pnand %p6717_p4, %p47_p1  ;;  %s30_s17 = ssub.s32 %s7013_s27, %s7117_s15 }
  0x13   : > { %p40_p7 = scmp.ne.s32.totalorder %s7009_s26, %s7005_s25  ;;  %p31_p8 = scmp.eq.s32.totalorder %s30_s17, 0 }
  0x14   : > { %6720 = dma.hbm_to_vmem [thread:$0]  (!%p6718_p6), %s238_s30, 512, %s240_s11, [#allocation6], %s7016_s12, %s7016_s12, %s7017_s13  }
  0x15   : > { %p41_p9 = scmp.eq.s32.totalorder %s7013_s27, 0  ;;  %p46_p10 = scmp.ne.s32.totalorder %s7005_s25, %s7001_s24 }
  0x16   : > { %p201_p11 = scmp.eq.s32.totalorder %s7101_s8, 1  ;;  %p207_p2 = scmp.eq.s32.totalorder %s6670_s14, 1 }
  0x17   : > { %s7129_s18 = scalar_select %p31_p8, %s7009_s26, %s33_s16  }
  0x18   : > { %p7131_p12 = por %p41_p9, %p40_p7  ;;  %p7137_p13 = por %p47_p1, %p46_p10 }
  0x19   : > { %8602 = sst [smem:[#allocation16_spill]] %s7129_s18  ;;  %p7141_p0 = por %p201_p11, %p40_p7 }
  0x1a   : > { %p6733_p4 = scmp.lt.s32.totalorder %s7013_s27, 2  ;;  %s253_s22 = sand.u32 1, %s7009_s26  }
  0x1b   : > { %p7147_p6 = por %p207_p2, %p46_p10  ;;  %s6674_s28 = sshll.u32 %s253_s22, 3 }
  0x1c   : > { %s6675_s29 = sshll.u32 %s7013_s27, 3  ;;  %s257_s13 = scalar_lea.vmem [#allocation2], %s6674_s28 }
  0x1d   : > { %s8606_s23 = scalar_select %p7147_p6, 1, 0 }
  0x1e   : > { %s261_s11 = scalar_lea.hbm %s8578_s0, %s6675_s29  ;;  %s265_s16 = sshll.u32 %s257_s13, 4  ;;  %s266_s16 = int_to_ptr.vmem [resolvable:$true] %s265_s16 }
  0x1f   : > { %8607 = sst [smem:[#allocation17_spill]] %s8606_s23  ;;  %s263_s12 = sshll.u32 %s261_s11, 4  ;;  %s264_s12 = int_to_ptr.hbm [resolvable:$true] %s263_s12 }
  0x20   : > { %p7157_p7 = pnand %p6733_p4, %p7131_p12  ;;  %s280_s18 = scalar_lea.hbm %s8579_s1, %s6675_s29 }
  0x21   : > { %s272_s26 = sand.u32 1, %s7013_s27   ;;  %s254_s15 = scalar_lea.sflag [#allocation3], %s253_s22 }
  0x22   : > { %s6879_s30 = sshra.s32 %s264_s12, 4  ;;  %p6883_p9 = pneg %p7157_p7  ;;  %s6880_s30 = int_to_ptr.hbm [resolvable:$true] %s6879_s30 }
  0x23   : > { %s6881_s10 = scalar_lea.hbm %s6880_s30, 8  ;;  %s6886_s13 = scalar_lea.hbm %s8578_s0, 16 }
  0x24   : > { %p6882_p8 = scmp.ne.s32.totalorder %s6880_s30, %s6881_s10  ;;  %p6887_p12 = scmp.lt.s32.totalorder %s6880_s30, %s8578_s0 }
  0x25   : > { %p6888_p2 = scmp.lt.s32.totalorder %s6886_s13, %s6881_s10 }
  0x26   : > { %p6884_p10 = pnand %p6883_p9, %p6882_p8 }
  0x27   : > { %p6889_p4 = por %p6888_p2, %p6887_p12 }
  0x28   : > { %p6885_p11 = pneg %p6884_p10 }
  0x2a   : > { %p6890_p5 = pnand %p6889_p4, %p6885_p11 }
  0x2c   : > { %6893 = shalt.err (!%p6890_p5)
}
  0x2d   : > { %6724 = dma.hbm_to_vmem [thread:$0]  (!%p7157_p7), %s264_s12, 128, %s266_s16, %s254_s15  }
  0x2e   : > { %s282_s22 = sshll.u32 %s280_s18, 4  ;;  %s276_s29 = scalar_lea.vmem [#allocation5], %s6674_s28  ;;  %s283_s22 = int_to_ptr.hbm [resolvable:$true] %s282_s22 }
  0x2f   : > { %s284_s27 = sshll.u32 %s276_s29, 4  ;;  %s273_s23 = scalar_lea.sflag [#allocation6], %s272_s26  ;;  %s285_s27 = int_to_ptr.vmem [resolvable:$true] %s284_s27 }
  0x30   : > { %s6909_s19 = sshra.s32 %s283_s22, 4  ;;  %s6916_s13 = scalar_lea.hbm %s8579_s1, 16  ;;  %s6910_s19 = int_to_ptr.hbm [resolvable:$true] %s6909_s19 }
  0x31   : > { %s6911_s11 = scalar_lea.hbm %s6910_s19, 8  ;;  %p6917_p5 = scmp.lt.s32.totalorder %s6910_s19, %s8579_s1 }
  0x32   : > { %p6912_p8 = scmp.ne.s32.totalorder %s6910_s19, %s6911_s11  ;;  %p6918_p11 = scmp.lt.s32.totalorder %s6916_s13, %s6911_s11 }
  0x34   : > { %p6914_p10 = pnand %p6912_p8, %p6883_p9  ;;  %p6919_p2 = por %p6918_p11, %p6917_p5 }
  0x36   : > { %p6915_p12 = pneg %p6914_p10 }
  0x38   : > { %p6920_p4 = pnand %p6919_p2, %p6915_p12 }
  0x3a   : > { %6923 = shalt.err (!%p6920_p4)
}
  0x3b   : > { %6727 = dma.hbm_to_vmem [thread:$0]  (!%p7157_p7), %s283_s22, 128, %s285_s27, %s273_s23  }
  0x3c   : > { %293 = sbr.rel (%p7106_p3) target bundleno = 4258 (0x10a2), region = 48  ;;  %s7192_s26 = sand.u32 (!%p7106_p3), 1, %s7005_s25  }
  0x3d   : > { %s7195_s18 = sshll.u32 (!%p7106_p3), %s7192_s26, 3  ;;  %s296_s28 = scalar_lea.sflag (!%p7106_p3), [#allocation3], %s7192_s26 }
  0x3e   : > { %s299_s12 = scalar_lea.vmem (!%p7106_p3), [#allocation2], %s7195_s18 }
  0x41   : > { %6984 = dma.done.wait (%p7137_p13), %s296_s28, 128  }
  0x42   : > { %6986 = vsyncadd (%p7137_p13), %s296_s28, 4294967168  ;;  %s305_s27 = sand.u32 1, %s7101_s8   ;;  %s7205_s23 = scalar_lea.vmem [#allocation5], %s7195_s18 }
  0x43   : > { %s306_s9 = scalar_lea.sflag [#allocation6], %s305_s27 }
  0x44   : > { %6988 = dma.done.wait (%p7137_p13), %s306_s9, 128  }
  0x45   : > { %6990 = vsyncadd (%p7137_p13), %s306_s9, 4294967168 }
  0x46   : > { %6992 = dma.done.wait (%p47_p1), [#allocation6], 512  }
  0x47   : > { %6994 = vsyncadd (%p47_p1), [#allocation6], 4294966784  ;;  %vm387_vm0 = vcmask 261120   ;;  %v351_v0 = vld [vmem:[%s299_s12] sm:$0xff]  ;;  %v352_v2 = vld [vmem:[%s7205_s23] sm:$0xff]  ;;  %v7018_v4 = vmov 8  }
  0x48   : > { %v388_v1 = vsel %vm387_vm0, %v351_v0, 0.0  ;;  %v360_v3 = vrot.slane %v352_v2, 7  ;;  %6790 = vset.pattern.permute.xlu1 %v7018_v4  ;;  %6792 = vset.pattern.permute.xlu2 %v7018_v4  ;;  %v7019_v6 = vmov 32.0   ;;  %v359_v8 = vrot.slane %v352_v2, 6  ;;  %v7227_v44 = vld [vmem:[#allocation7 + $0x8] sm:$0xff]  ;;  %v3510_v45 = vld [vmem:[#allocation7 + $0x18] sm:$0xff] }
  0x49   : > { %389 = vadd.xlane.f32.xlu0 %v388_v1  ;;  %6800 = vrcp.f32 %v7019_v6  ;;  %v358_v12 = vrot.slane %v352_v2, 5  ;;  %v7020_v14 = vmov 9   ;;  %v357_v18 = vrot.slane %v352_v2, 4  ;;  %v424_v46 = vld [vmem:[%s8580_s2 + $0x18] sm:$0xff]  ;;  %v423_v51 = vld [vmem:[%s8580_s2 + $0x10] sm:$0xff]  ;;  %v7244_v52 = vld [vmem:[#allocation7] sm:$0xff] }
  0x4a   : > { %v368_v5 = vperm.slane %v360_v3, 0  ;;  %6794 = vset.pattern.permute.xlu0 %v7018_v4  ;;  %v367_v9 = vperm.slane %v359_v8, 0  ;;  %v356_v23 = vrot.slane %v352_v2, 3  ;;  %v355_v31 = vrot.slane %v352_v2, 2  ;;  %v3509_v53 = vld [vmem:[#allocation7 + $0x10] sm:$0xff]  ;;  %v422_v57 = vld [vmem:[%s8580_s2 + $0x8] sm:$0xff] }
  0x4b   : > { %v366_v15 = vperm.slane %v358_v12, 0  ;;  %v365_v20 = vperm.slane %v357_v18, 0  ;;  %v354_v35 = vrot.slane %v352_v2, 1  ;;  %v361_v38 = vperm.slane %v352_v2, 0  ;;  %v421_v1 = vld [vmem:[%s8580_s2] sm:$0xff]  ;;  %s7021_s30 = smov 96  }
  0x4c   : > { %v384_v7 = vsub.f32 %v368_v5, %v352_v2  ;;  %v383_v11 = vsub.f32 %v367_v9, %v352_v2  ;;  %v364_v27 = vperm.slane %v356_v23, 0  ;;  %v363_v33 = vperm.slane %v355_v31, 0  ;;  %s7022_s10 = smov 104   ;;  %s7023_s13 = smov 120  }
  0x4d   : > { %v382_v17 = vsub.f32 %v366_v15, %v352_v2  ;;  %v381_v22 = vsub.f32 %v365_v20, %v352_v2  ;;  %v362_v36 = vperm.slane %v354_v35, 0  ;;  %v377_v39 = vsub.f32 %v361_v38, %v352_v2  ;;  %s7024_s6 = smov 112   ;;  %s7025_s15 = smov 88  }
  0x4e   : > { %1019 = vperm.xlu1 %6790, %v384_v7   ;;  %1014 = vperm.xlu2 %6792, %v383_v11   ;;  %v380_v30 = vsub.f32 %v364_v27, %v352_v2  ;;  %v379_v34 = vsub.f32 %v363_v33, %v352_v2  ;;  %v7232_v47 = vand.u32 4294901760, %v424_v46  ;;  %v7235_v48 = vperm.slane %v7227_v44, 4  ;;  %s7026_s28 = smov 80   ;;  %s7027_s27 = smov 72  }
  0x4f   : > { %v6801_v10 = vpop.eup %6800  ;;  %v378_v37 = vsub.f32 %v362_v36, %v352_v2  ;;  %v7237_v49 = vperm.slane %v3510_v45, 4  ;;  %v7249_v55 = vand.u32 4294901760, %v423_v51  ;;  %v7259_v60 = vand.u32 4294901760, %v422_v57  ;;  %s7028_s9 = smov 64   ;;  %s7031_s20 = smov 40  }
  0x50   : > { %v392_v13 = vmul.f32 32.0, %v6801_v10  ;;  %vm396_vm1 = vweird.f32 %v6801_v10  ;;  %v470_v54 = vsub.f32 %v424_v46, %v7232_v47  ;;  %601 = vmatpush.msra.mxu1 %v7232_v47  ;;  %441 = vmatpush.msra.mxu2 %v7232_v47  ;;  %v7262_v61 = vperm.slane %v7244_v52, 7  ;;  %s8593_s16 = smov 56   ;;  %s8591_s14 = smov 48  }
  0x51   : > { %v476_v59 = vsub.f32 %v423_v51, %v7249_v55  ;;  %v7264_v62 = vperm.slane %v3509_v53, 7  ;;  %v7273_v5 = vand.u32 4294901760, %v421_v1  ;;  %v7277_v6 = vperm.slane %v7227_v44, 5  ;;  %s8592_s17 = smov 16   ;;  %s8594_s22 = smov 24  }
  0x52   : > { %v393_v16 = vsub.f32 1.0, %v392_v13  ;;  %v471_v58 = vand.u32 4294901760, %v470_v54  ;;  %603 = vmatpush.msra.mxu1 %v7249_v55  ;;  %443 = vmatpush.msra.mxu2 %v7249_v55  ;;  %vm1097_vm2 = vcmask 130048   ;;  %vm648_vm6 = vcmask 1047556   ;;  %s8595_s29 = smov 8  }
  0x53   : > { %v477_v3 = vand.u32 4294901760, %v476_v59  ;;  %vm1454_vm7 = vcmask 64512   ;;  %vm2839_vm8 = vcmask 195584   ;;  %vm3264_vm12 = vcmask 523264  }
  0x54   : > { %v394_v19 = vmul.f32 %v6801_v10, %v393_v16  ;;  %v472_v2 = vsub.f32 %v470_v54, %v471_v58  ;;  %570 = vmatpush.msra.mxu0 %v471_v58  ;;  %605 = vmatpush.msra.mxu1 %v7259_v60 }
  0x55   : > { %445 = vmatpush.msra.mxu2 %v7259_v60 }
  0x56   : > { %6791 = vset.pattern.permute.xlu1 %v7020_v14  ;;  %6793 = vset.pattern.permute.xlu2 %v7020_v14  ;;  %v395_v21 = vadd.f32 %v6801_v10, %v394_v19 }
  0x57   : > { %1069 = vperm.xlu1 %6791, %v384_v7   ;;  %1065 = vperm.xlu2 %6793, %v383_v11   ;;  %v473_v7 = vand.u32 4294901760, %v472_v2 }
  0x58   : > { %v7219_v24 = vsel %vm396_vm1, %v6801_v10, %v395_v21  ;;  %574 = vmatpush.msra.mxu0 %v477_v3  ;;  %607 = vmatpush.msra.mxu1 %v7273_v5 }
  0x59   : > { %447 = vmatpush.msra.mxu2 %v7273_v5  ;;  %474 = vmatpush.msra.mxu3 %v473_v7 }
  0x5b   : > { %512 = vmatpush.msrb.mxu2 %v470_v54 }
  0x5d   : > { %515 = vmatpush.msrb.mxu2 %v476_v59 }
  0x5f   : > { %1061 = vperm.xlu1 %6791, %v382_v17   ;;  %6795 = vset.pattern.permute.xlu2 %v7018_v4  ;;  %v482_v4 = vsub.f32 %v422_v57, %v7259_v60 }
  0x60   : > { %1004 = vperm.xlu2 %6795, %v381_v22  }
  0x61   : > { %v483_v8 = vand.u32 4294901760, %v482_v4  ;;  %518 = vmatpush.msrb.mxu2 %v482_v4 }
  0x63   : > { %578 = vmatpush.msra.mxu0 %v483_v8  ;;  %v484_v57 = vsub.f32 %v482_v4, %v483_v8 }
  0x67   : > { %1057 = vperm.xlu1 %6791, %v381_v22  }
  0x68   : > { %999 = vperm.xlu2 %6795, %v380_v30  }
  0x6f   : > { %1053 = vperm.xlu1 %6791, %v380_v30  }
  0x70   : > { %994 = vperm.xlu2 %6795, %v379_v34  }
  0x77   : > { %1049 = vperm.xlu1 %6791, %v379_v34  }
  0x78   : > { %989 = vperm.xlu2 %6795, %v378_v37  }
  0x7f   : > { %1045 = vperm.xlu1 %6791, %v378_v37  }
  0x80   : > { %984 = vperm.xlu2 %6795, %v377_v39  }
  0xa8   : > { %v1015_v41 = vpop.permute.xlu2 %1014 }
  0xa9   : > { %v1029_v12 = vmul.f32 %v7235_v48, %v1015_v41  ;;  %v4105_v13 = vmul.f32 %v7237_v49, %v1015_v41 }
  0xab   : > { %v1038_v18 = vadd.f32 %v7262_v61, %v1029_v12  ;;  %v4114_v19 = vadd.f32 %v7264_v62, %v4105_v13 }
  0xb1   : > { %v1066_v43 = vpop.permute.xlu2 %1065 }
  0xb2   : > { %v1079_v16 = vmul.f32 %v7277_v6, %v1066_v43 }
  0xba   : > { %v7251_v56 = vpop.permute.xlu2 %1004 }
  0xbb   : > { %v4103_v23 = vmul.f32 %v7237_v49, %v7251_v56  ;;  %v1027_v46 = vmul.f32 %v7235_v48, %v7251_v56 }
  0xbc   : > { %v390_v25 = vpop.xlane.xlu0 %389 }
  0xbd   : > { %v398_v26 = vmul.f32 %v7219_v24, %v390_v25  ;;  %v4112_v30 = vadd.f32 %v7264_v62, %v4103_v23 }
  0xbf   : > { %v7222_v28 = vsub.f32 %v351_v0, %v398_v26  ;;  %v1087_v26 = vadd.f32 %v1079_v16, %v1038_v18 }
  0xc0   : > { %v1020_v40 = vpop.permute.xlu1 %1019 }
  0xc1   : > { %v400_v29 = vmul.f32 %v7222_v28, %v7222_v28  ;;  %v1030_v63 = vmul.f32 %v7235_v48, %v1020_v40  ;;  %v4106_v0 = vmul.f32 %v7237_v49, %v1020_v40  ;;  %v1095_v33 = vmax.f32 %v1087_v26, 0.0 }
  0xc3   : > { %v401_v32 = vsel %vm387_vm0, %v400_v29, 0.0  ;;  %v1039_v9 = vadd.f32 %v7262_v61, %v1030_v63  ;;  %v4115_v11 = vadd.f32 %v7264_v62, %v4106_v0  ;;  %v1120_v41 = vsel %vm1097_vm2, %v1095_v33, 0 }
  0xc4   : > { %402 = vadd.xlane.f32.xlu0 %v401_v32  ;;  %v488_v32 = vsub.f32 %v421_v1, %v7273_v5  ;;  %v7313_v51 = vand.u32 4294901760, %v1120_v41  ;;  %v485_v1 = vand.u32 4294901760, %v484_v57  ;;  %v417_v33 = vperm.slane %v7244_v52, 0 }
  0xc6   : > { %521 = vmatpush.msrb.mxu2 %v488_v32  ;;  %v489_v58 = vand.u32 4294901760, %v488_v32 }
  0xc8   : > { %v490_v2 = vsub.f32 %v488_v32, %v489_v58  ;;  %582 = vmatpush.msra.mxu0 %v489_v58 }
  0xc9   : > { %v1070_v42 = vpop.permute.xlu1 %1069 }
  0xca   : > { %v1080_v15 = vmul.f32 %v7277_v6, %v1070_v42 }
  0xcc   : > { %v1088_v22 = vadd.f32 %v1080_v15, %v1039_v9  ;;  %v7333_v15 = vsub.f32 %v1120_v41, %v7313_v51 }
  0xce   : > { %v1096_v29 = vmax.f32 %v1088_v22, 0.0 }
  0xd0   : > { %v1123_v35 = vsel %vm1097_vm2, %v1096_v29, 0 }
  0xd1   : > { %v7239_v50 = vpop.permute.xlu1 %1061 }
  0xd8   : > { %1009 = vperm.xlu0 %6794, %v382_v17   ;;  %v1000_v17 = vpop.permute.xlu2 %999 }
  0xd9   : > { %v1058_v10 = vpop.permute.xlu1 %1057  ;;  %v4102_v40 = vmul.f32 %v7237_v49, %v1000_v17  ;;  %v1026_v4 = vmul.f32 %v7235_v48, %v1000_v17 }
  0xda   : > { %v1077_v56 = vmul.f32 %v7277_v6, %v1058_v10 }
  0xdb   : > { %v4111_v53 = vadd.f32 %v7264_v62, %v4102_v40 }
  0xe0   : > { %6796 = vset.pattern.permute.xlu0 %v7020_v14  ;;  %v7285_v14 = vperm.slane %v3510_v45, 5 }
  0xe1   : > { %1041 = vperm.xlu0 %6796, %v377_v39   ;;  %v1054_v37 = vpop.permute.xlu1 %1053  ;;  %v7306_v39 = vand.u32 4294901760, %v1123_v35 }
  0xe2   : > { %v4124_v20 = vmul.f32 %v7285_v14, %v1070_v42  ;;  %v4123_v21 = vmul.f32 %v7285_v14, %v1066_v43  ;;  %v4121_v31 = vmul.f32 %v7285_v14, %v1058_v10  ;;  %v478_v42 = vsub.f32 %v476_v59, %v477_v3  ;;  %v995_v43 = vpop.permute.xlu2 %994 }
  0xe3   : > { %1266 = vmatpush.xpose.msrb.mxu1 %v7306_v39  ;;  %v7317_v63 = vsub.f32 %v1123_v35, %v7306_v39  ;;  %v1036_v59 = vadd.f32 %v7262_v61, %v1027_v46  ;;  %v4120_v0 = vmul.f32 %v7285_v14, %v1054_v37  ;;  %v4101_v3 = vmul.f32 %v7237_v49, %v995_v43 }
  0xe4   : > { %v7295_v25 = vadd.f32 %v4124_v20, %v4115_v11  ;;  %v7297_v27 = vadd.f32 %v4123_v21, %v4114_v19  ;;  %v7303_v36 = vadd.f32 %v4121_v31, %v4112_v30  ;;  %v479_v54 = vand.u32 4294901760, %v478_v42 }
  0xe5   : > { %v7325_v8 = vadd.f32 %v4120_v0, %v4111_v53  ;;  %1229 = vmatpush.xpose.msrb.mxu0 %v7317_v63  ;;  %v491_v11 = vand.u32 4294901760, %v490_v2  ;;  %v4110_v12 = vadd.f32 %v7264_v62, %v4101_v3  ;;  %v1085_v18 = vadd.f32 %v1077_v56, %v1036_v59 }
  0xe6   : > { %480 = vmatpush.msra.mxu3 %v479_v54  ;;  %v1035_v19 = vadd.f32 %v7262_v61, %v1026_v4  ;;  %v1076_v20 = vmul.f32 %v7277_v6, %v1054_v37  ;;  %v1025_v21 = vmul.f32 %v7235_v48, %v995_v43  ;;  %v1168_v41 = vand.u32 4294901760, %v7317_v63 }
  0xe7   : > { %1268 = vmatpush.xpose.msrb.mxu1 %v7313_v51  ;;  %v1093_v26 = vmax.f32 %v1085_v18, 0.0  ;;  %v419_v59 = vperm.slane %v7244_v52, 1 }
  0xe8   : > { %486 = vmatpush.msra.mxu3 %v485_v1  ;;  %v1084_v29 = vadd.f32 %v1076_v20, %v1035_v19  ;;  %v1034_v30 = vadd.f32 %v7262_v61, %v1025_v21  ;;  %v1169_v3 = vsub.f32 %v7317_v63, %v1168_v41 }
  0xe9   : > { %v1050_v7 = vpop.permute.xlu1 %1049  ;;  %1232 = vmatpush.xpose.msrb.mxu0 %v7333_v15  ;;  %v1114_v43 = vsel %vm1097_vm2, %v1093_v26, 0 }
  0xea   : > { %v4119_v9 = vmul.f32 %v7285_v14, %v1050_v7  ;;  %v7330_v10 = vpop.permute.xlu2 %989  ;;  %492 = vmatpush.msra.mxu3 %v491_v11  ;;  %v1075_v31 = vmul.f32 %v7277_v6, %v1050_v7  ;;  %v7371_v56 = vand.u32 4294901760, %v1114_v43  ;;  %v1170_v19 = vand.u32 4294901760, %v1169_v3 }
  0xeb   : > { %v1024_v32 = vmul.f32 %v7235_v48, %v7330_v10 }
  0xec   : > { %v7335_v17 = vadd.f32 %v4119_v9, %v4110_v12  ;;  %541 = vmatpush.msrb.mxu3 %v7232_v47  ;;  %v1083_v46 = vadd.f32 %v1075_v31, %v1034_v30  ;;  %v1174_v9 = vand.u32 4294901760, %v7333_v15 }
  0xee   : > { %543 = vmatpush.msrb.mxu3 %v7249_v55  ;;  %v1078_v55 = vmul.f32 %v7277_v6, %v7239_v50  ;;  %v1091_v11 = vmax.f32 %v1083_v46, 0.0 }
  0xf0   : > { %545 = vmatpush.msrb.mxu3 %v7259_v60  ;;  %v1108_v30 = vsel %vm1097_vm2, %v1091_v11, 0 }
  0xf1   : > { %v7354_v60 = vpop.permute.xlu1 %1045 }
  0xf2   : > { %547 = vmatpush.msrb.mxu3 %v7273_v5  ;;  %v7359_v42 = vpop.permute.xlu2 %984  ;;  %v1074_v57 = vmul.f32 %v7277_v6, %v7354_v60 }
  0xf3   : > { %v1023_v0 = vmul.f32 %v7235_v48, %v7359_v42 }
 0x137   : > { %v403_v34 = vpop.xlane.xlu0 %402 }
 0x138   : > { %v404_v38 = vmul.f32 %v403_v34, %v7219_v24  ;;  %v4122_v34 = vmul.f32 %v7285_v14, %v7239_v50  ;;  %v1033_v50 = vadd.f32 %v7262_v61, %v1024_v32 }
 0x13a   : > { %v405_v45 = vadd.f32 1e-05, %v404_v38  ;;  %v1082_v52 = vadd.f32 %v1074_v57, %v1033_v50 }
 0x13c   : > { %6802 = vrsqrt.f32 %v405_v45  ;;  %vm412_vm4 = vweird.f32 %v405_v45  ;;  %v1090_v31 = vmax.f32 %v1082_v52, 0.0 }
 0x142   : > { %v6803_v13 = vpop.eup %6802 }
 0x143   : > { %v407_v16 = vmul.f32 %v6803_v13, %v405_v45  ;;  %vm413_vm3 = vweird.f32 %v6803_v13  ;;  %v1092_v45 = vmax.f32 %v1084_v29, 0.0 }
 0x144   : > { %vm414_vm5 = vmor %vm412_vm4, %vm413_vm3 }
 0x145   : > { %v408_v22 = vmul.f32 %v6803_v13, %v407_v16  ;;  %v1111_v4 = vsel %vm1097_vm2, %v1092_v45, 0 }
 0x146   : > { %v7385_v18 = vand.u32 4294901760, %v1111_v4 }
 0x147   : > { %v409_v23 = vmul.f32 0.5, %v408_v22  ;;  %v1175_v22 = vsub.f32 %v7333_v15, %v1174_v9 }
 0x149   : > { %v410_v47 = vsub.f32 1.5, %v409_v23 }
 0x14a   : > { %v1010_v35 = vpop.permute.xlu0 %1009 }
 0x14b   : > { %v411_v37 = vmul.f32 %v6803_v13, %v410_v47  ;;  %v1028_v38 = vmul.f32 %v7235_v48, %v1010_v35  ;;  %v4104_v40 = vmul.f32 %v7237_v49, %v1010_v35  ;;  %v1032_v48 = vadd.f32 %v7262_v61, %v1023_v0 }
 0x14c   : > { %v1176_v35 = vand.u32 4294901760, %v1175_v22 }
 0x14d   : > { %v415_v53 = vsel %vm414_vm5, %v6803_v13, %v411_v37  ;;  %v1037_v5 = vadd.f32 %v7262_v61, %v1028_v38  ;;  %v4113_v54 = vadd.f32 %v7264_v62, %v4104_v40  ;;  %v7382_v13 = vsub.f32 %v1114_v43, %v7371_v56 }
 0x14e   : > { %v416_v58 = vmul.f32 %v415_v53, %v7222_v28  ;;  %v1105_v40 = vsel %vm1097_vm2, %v1090_v31, 0 }
 0x14f   : > { %v1086_v1 = vadd.f32 %v1078_v55, %v1037_v5  ;;  %v7373_v2 = vadd.f32 %v4122_v34, %v4113_v54  ;;  %v1186_v55 = vand.u32 4294901760, %v7382_v13  ;;  %v7404_v34 = vsub.f32 %v1111_v4, %v7385_v18 }
 0x150   : > { %v418_v7 = vmul.f32 %v417_v33, %v416_v58  ;;  %v7421_v5 = vand.u32 4294901760, %v1105_v40 }
 0x151   : > { %v1094_v28 = vmax.f32 %v1086_v1, 0.0  ;;  %v1187_v50 = vsub.f32 %v7382_v13, %v1186_v55  ;;  %v1192_v57 = vand.u32 4294901760, %v7404_v34 }
 0x152   : > { %v420_v12 = vadd.f32 %v419_v59, %v418_v7  ;;  %v1203_v1 = vsub.f32 %v1105_v40, %v7421_v5 }
 0x153   : > { %v1117_v16 = vsel %vm1097_vm2, %v1094_v28, 0  ;;  %v7387_v20 = vpop.permute.xlu0 %1041  ;;  %v1188_v0 = vand.u32 4294901760, %v1187_v50  ;;  %v1193_v7 = vsub.f32 %v7404_v34, %v1192_v57 }
 0x154   : > { %v426_v21 = vsel %vm387_vm0, %v420_v12, 0  ;;  %v7393_v23 = vand.u32 4294901760, %v1117_v16  ;;  %v1073_v26 = vmul.f32 %v7277_v6, %v7387_v20  ;;  %v7406_v6 = vand.u32 4294901760, %v1108_v30 }
 0x155   : > { %v448_v29 = vand.u32 4294901760, %v426_v21  ;;  %v1194_v11 = vand.u32 4294901760, %v1193_v7  ;;  %v1204_v12 = vand.u32 4294901760, %v1203_v1 }
 0x156   : > { %v7399_v32 = vsub.f32 %v1117_v16, %v7393_v23  ;;  %v1081_v47 = vadd.f32 %v1073_v26, %v1032_v48  ;;  %1270 = vmatpush.xpose.msrb.mxu1 %v7393_v23  ;;  %v7419_v53 = vsub.f32 %v1108_v30, %v7406_v6 }
 0x157   : > { %494 = vmatmul.f32.vlgmr.msra.gmra.mxu3 %v448_v29  ;;  %584 = vmatmul.f32.vlgmr.msra.gmra.mxu0 %v448_v29  ;;  %v449_v33 = vsub.f32 %v426_v21, %v448_v29  ;;  %v1205_v16 = vsub.f32 %v1203_v1, %v1204_v12  ;;  %v1099_v21 = vsel %vm1097_vm2, %v7227_v44, 0 }
 0x158   : > { %609 = vmatmul.f32.vlgmr.msra.gmra.mxu1 %v448_v29  ;;  %1171 = vmatpush.xpose.msra.mxu3 %v1170_v19  ;;  %v1180_v37 = vand.u32 4294901760, %v7399_v32  ;;  %v1089_v43 = vmax.f32 %v1081_v47, 0.0  ;;  %v1198_v4 = vand.u32 4294901760, %v7419_v53  ;;  %v1149_v22 = vand.u32 4294901760, %v1099_v21 }
 0x159   : > { %v450_v38 = vand.u32 4294901760, %v449_v33  ;;  %1235 = vmatpush.xpose.msrb.mxu0 %v7399_v32  ;;  %v1206_v26 = vand.u32 4294901760, %v1205_v16 }
 0x15a   : > { %v1181_v45 = vsub.f32 %v7399_v32, %v1180_v37  ;;  %1272 = vmatpush.xpose.msrb.mxu1 %v7371_v56  ;;  %v1102_v59 = vsel %vm1097_vm2, %v1089_v43, 0  ;;  %v1199_v52 = vsub.f32 %v7419_v53, %v1198_v4  ;;  %v1150_v30 = vsub.f32 %v1099_v21, %v1149_v22 }
 0x15b   : > { %v451_v46 = vsub.f32 %v449_v33, %v450_v38  ;;  %v1147_v3 = vand.u32 4294901760, %v1102_v59 }
 0x15c   : > { %1177 = vmatpush.xpose.msra.mxu3 %v1176_v35  ;;  %v1182_v54 = vand.u32 4294901760, %v1181_v45  ;;  %v1200_v48 = vand.u32 4294901760, %v1199_v52  ;;  %v1151_v31 = vand.u32 4294901760, %v1150_v30 }
 0x15d   : > { %v452_v58 = vand.u32 4294901760, %v451_v46  ;;  %1238 = vmatpush.xpose.msrb.mxu0 %v7382_v13  ;;  %v1209_v28 = vsub.f32 %v1102_v59, %v1147_v3  ;;  %v7029_v59 = vmov 1983009808  }
 0x15e   : > { %1274 = vmatpush.xpose.msrb.mxu1 %v7385_v18  ;;  %v1152_v44 = vsub.f32 %v1150_v30, %v1151_v31 }
 0x15f   : > { %453 = vmatmul.f32.vlgmr.msra.gmra.mxu2 %v452_v58  ;;  %551 = vmatmul.f32.vlgmr.msrb.gmra.mxu3 %v450_v38  ;;  %v1210_v19 = vand.u32 4294901760, %v1209_v28 }
 0x160   : > { %1134 = vmatpush.xpose.msra.mxu2 %v7306_v39  ;;  %1183 = vmatpush.xpose.msra.mxu3 %v1182_v54 }
 0x161   : > { %1241 = vmatpush.xpose.msrb.mxu0 %v7404_v34  ;;  %v1211_v29 = vsub.f32 %v1209_v28, %v1210_v19 }
 0x162   : > { %1276 = vmatpush.xpose.msrb.mxu1 %v7406_v6 }
 0x163   : > { %v1212_v47 = vand.u32 4294901760, %v1211_v29 }
 0x164   : > { %1136 = vmatpush.xpose.msra.mxu2 %v7313_v51  ;;  %1189 = vmatpush.xpose.msra.mxu3 %v1188_v0  ;;  %v653_v0 = vunpack.c.l.s4 %v7029_v59 }
 0x165   : > { %1244 = vmatpush.xpose.msrb.mxu0 %v7419_v53 }
 0x166   : > { %1278 = vmatpush.xpose.msrb.mxu1 %v7421_v5 }
 0x167   : > { %524 = vmatmul.f32.vlgmr.msrb.gmra.mxu2 %v449_v33  ;;  %v1153_v33 = vand.u32 4294901760, %v1152_v44  ;;  %v7030_v44 = vmov 1934713408  }
 0x168   : > { %1138 = vmatpush.xpose.msra.mxu2 %v7393_v23  ;;  %1195 = vmatpush.xpose.msra.mxu3 %v1194_v11  ;;  %v7499_v11 = vunpack.c.0.s8 %v653_v0 }
 0x169   : > { %1247 = vmatpush.xpose.msrb.mxu0 %v1203_v1 }
 0x16a   : > { %1280 = vmatpush.xpose.msrb.mxu1 %v1147_v3 }
 0x16c   : > { %1140 = vmatpush.xpose.msra.mxu2 %v7371_v56  ;;  %1201 = vmatpush.xpose.msra.mxu3 %v1200_v48 }
 0x16d   : > { %1250 = vmatpush.xpose.msrb.mxu0 %v1209_v28  ;;  %1284 = vmatmul.f32.vlgmr.msrb.gmra.mxu1 %v1151_v31 }
 0x170   : > { %1142 = vmatpush.xpose.msra.mxu2 %v7385_v18  ;;  %1207 = vmatpush.xpose.msra.mxu3 %v1206_v26 }
 0x171   : > { %1253 = vmatmul.f32.vlgmr.msrb.gmra.mxu0 %v1150_v30 }
 0x174   : > { %1144 = vmatpush.xpose.msra.mxu2 %v7406_v6  ;;  %1213 = vmatpush.xpose.msra.mxu3 %v1212_v47 }
 0x177   : > { %1215 = vmatmul.f32.vlgmr.msra.gmra.mxu3 %v1149_v22 }
 0x178   : > { %1342 = vmatpush.xpose.msrb.mxu3 %v7306_v39  ;;  %1146 = vmatpush.xpose.msra.mxu2 %v7421_v5 }
 0x17c   : > { %1344 = vmatpush.xpose.msrb.mxu3 %v7313_v51  ;;  %1148 = vmatpush.xpose.msra.mxu2 %v1147_v3 }
 0x17f   : > { %1154 = vmatmul.f32.vlgmr.msra.gmra.mxu2 %v1153_v33  ;;  %v701_v33 = vunpack.c.l.s4 %v7030_v44 }
 0x180   : > { %1299 = vmatpush.xpose.msrb.mxu2 %v1168_v41  ;;  %1346 = vmatpush.xpose.msrb.mxu3 %v7393_v23 }
 0x184   : > { %1303 = vmatpush.xpose.msrb.mxu2 %v1174_v9  ;;  %1348 = vmatpush.xpose.msrb.mxu3 %v7371_v56 }
 0x188   : > { %1307 = vmatpush.xpose.msrb.mxu2 %v1180_v37  ;;  %1350 = vmatpush.xpose.msrb.mxu3 %v7385_v18 }
 0x18c   : > { %1311 = vmatpush.xpose.msrb.mxu2 %v1186_v55  ;;  %1352 = vmatpush.xpose.msrb.mxu3 %v7406_v6  ;;  %v1440_v6 = vlaneseq }
 0x18e   : > { %v1441_v38 = vshrl.u32 %v1440_v6, 7 }
 0x190   : > { %1315 = vmatpush.xpose.msrb.mxu2 %v1192_v57  ;;  %1354 = vmatpush.xpose.msrb.mxu3 %v7421_v5  ;;  %v1442_v40 = vadd.s32 16, %v1441_v38 }
 0x192   : > { %6797 = vset.pattern.permute.xlu1 %v1442_v40  ;;  %6798 = vset.pattern.permute.xlu2 %v1442_v40 }
 0x193   : > { %6799 = vset.pattern.permute.xlu0 %v1442_v40 }
 0x194   : > { %1319 = vmatpush.xpose.msrb.mxu2 %v1198_v4  ;;  %1356 = vmatpush.xpose.msrb.mxu3 %v1147_v3 }
 0x197   : > { %1358 = vmatmul.f32.vlgmr.msrb.gmra.mxu3 %v1149_v22 }
 0x198   : > { %1323 = vmatpush.xpose.msrb.mxu2 %v1204_v12 }
 0x19c   : > { %1327 = vmatpush.xpose.msrb.mxu2 %v1210_v19 }
 0x19f   : > { %1329 = vmatmul.f32.vlgmr.msrb.gmra.mxu2 %v1149_v22 }
 0x1d4   : > { %v585_v13 = vpop.f32.mrf.mxu0 }
 0x1d5   : > { %v610_v23 = vpop.f32.mrf.mxu1 }
 0x1da   : > { %v495_v39 = vpop.f32.mrf.mxu3 }
 0x1e2   : > { %v454_v51 = vpop.f32.mrf.mxu2  ;;  %v552_v56 = vpop.f32.mrf.mxu3 }
 0x1e3   : > { %v496_v63 = vadd.f32 %v495_v39, %v454_v51 }
 0x1ea   : > { %v525_v15 = vpop.f32.mrf.mxu2  ;;  %v1285_v45 = vpop.f32.mrf.mxu1 }
 0x1eb   : > { %v526_v41 = vadd.f32 %v525_v15, %v496_v63 }
 0x1ed   : > { %v553_v9 = vadd.f32 %v552_v56, %v526_v41 }
 0x1ee   : > { %v1254_v37 = vpop.f32.mrf.mxu0 }
 0x1ef   : > { %v586_v18 = vadd.f32 %v585_v13, %v553_v9  ;;  %v7512_v9 = vunpack.c.0.s8 %v701_v33 }
 0x1f1   : > { %v7463_v32 = vadd.f32 %v610_v23, %v586_v18 }
 0x1f3   : > { %623 = vrot.lane.b32.xlu0 %v7463_v32, %s7021_s30  ;;  %620 = vrot.lane.b32.xlu2 %v7463_v32, %s7022_s10  ;;  %v650_v28 = vrot.slane %v7463_v32, 4 }
 0x1f4   : > { %614 = vrot.lane.b32.xlu1 %v7463_v32, %s7023_s13 }
 0x1fa   : > { %v1216_v55 = vpop.f32.mrf.mxu3 }
 0x1fb   : > { %617 = vrot.lane.b32.xlu2 %v7463_v32, %s7024_s6 }
 0x1fc   : > { %626 = vrot.lane.b32.xlu1 %v7463_v32, %s7025_s15 }
 0x202   : > { %v1155_v34 = vpop.f32.mrf.mxu2 }
 0x203   : > { %629 = vrot.lane.b32.xlu2 %v7463_v32, %s7026_s28  ;;  %v1217_v35 = vadd.f32 %v1216_v55, %v1155_v34 }
 0x204   : > { %632 = vrot.lane.b32.xlu1 %v7463_v32, %s7027_s27 }
 0x205   : > { %v1255_v43 = vadd.f32 %v1254_v37, %v1217_v35 }
 0x207   : > { %v1286_v46 = vadd.f32 %v1285_v45, %v1255_v43 }
 0x21a   : > { %v1359_v53 = vpop.f32.mrf.mxu3 }
 0x222   : > { %v1330_v50 = vpop.f32.mrf.mxu2 }
 0x223   : > { %v1331_v5 = vadd.f32 %v1330_v50, %v1286_v46 }
 0x225   : > { %v7479_v54 = vadd.f32 %v1359_v53, %v1331_v5 }
 0x227   : > { %1375 = vrot.lane.b32.xlu2 %v7479_v54, %s7025_s15  ;;  %1381 = vrot.lane.b32.xlu0 %v7479_v54, %s7027_s27 }
 0x228   : > { %1369 = vrot.lane.b32.xlu1 %v7479_v54, %s7022_s10 }
 0x22f   : > { %1366 = vrot.lane.b32.xlu2 %v7479_v54, %s7024_s6  ;;  %1378 = vrot.lane.b32.xlu0 %v7479_v54, %s7026_s28 }
 0x230   : > { %1363 = vrot.lane.b32.xlu1 %v7479_v54, %s7023_s13 }
 0x237   : > { %635 = vrot.lane.b32.xlu2 %v7463_v32, %s7028_s9  ;;  %1372 = vrot.lane.b32.xlu0 %v7479_v54, %s7021_s30 }
 0x238   : > { %1444 = vperm.xlu1 %6797, %v7262_v61  }
 0x24d   : > { %v621_v57 = vpop.permute.xlu2 %620 }
 0x24e   : > { %v660_v4 = vrot.slane %v621_v57, 4 }
 0x255   : > { %v618_v58 = vpop.permute.xlu2 %617 }
 0x256   : > { %v647_v3 = vrot.slane %v618_v58, 4  ;;  %v651_v12 = vsel %vm648_vm6, %v618_v58, %v650_v28 }
 0x257   : > { %v659_v22 = vperm.slane %v651_v12, %v7499_v11 }
 0x258   : > { %v649_v61 = vsel %vm648_vm6, %v647_v3, %v7463_v32 }
 0x259   : > { %v655_v30 = vperm.slane %v649_v61, %v7499_v11  ;;  %v710_v51 = vrot.slane %v659_v22, 4 }
 0x25b   : > { %v698_v41 = vrot.slane %v655_v30, 4 }
 0x25d   : > { %v630_v19 = vpop.permute.xlu2 %629 }
 0x25e   : > { %v672_v47 = vrot.slane %v630_v19, 4 }
 0x265   : > { %v624_v52 = vpop.permute.xlu0 %623 }
 0x266   : > { %v615_v1 = vpop.permute.xlu1 %614  ;;  %v674_v21 = vrot.slane %v624_v52, 4  ;;  %v673_v15 = vsel %vm648_vm6, %v672_v47, %v624_v52 }
 0x267   : > { %v662_v7 = vrot.slane %v615_v1, 4  ;;  %v661_v48 = vsel %vm648_vm6, %v660_v4, %v615_v1  ;;  %v679_v55 = vperm.slane %v673_v15, %v7499_v11 }
 0x268   : > { %v667_v26 = vperm.slane %v661_v48, %v7499_v11  ;;  %v675_v39 = vsel %vm648_vm6, %v630_v19, %v674_v21 }
 0x269   : > { %v663_v16 = vsel %vm648_vm6, %v621_v57, %v662_v7  ;;  %v683_v18 = vperm.slane %v675_v39, %v7499_v11  ;;  %v722_v5 = vrot.slane %v679_v55, 4 }
 0x26a   : > { %v671_v31 = vperm.slane %v663_v16, %v7499_v11  ;;  %v696_v63 = vrot.slane %v667_v26, 4  ;;  %v699_v23 = vsel %vm648_vm6, %v667_v26, %v698_v41 }
 0x26b   : > { %v707_v45 = vperm.slane %v699_v23, %v7512_v9  ;;  %v734_v46 = vrot.slane %v683_v18, 4 }
 0x26c   : > { %v708_v56 = vrot.slane %v671_v31, 4  ;;  %v711_v13 = vsel %vm648_vm6, %v671_v31, %v710_v51  ;;  %v697_v6 = vsel %vm648_vm6, %v696_v63, %v655_v30 }
 0x26d   : > { %v719_v38 = vperm.slane %v711_v13, %v7512_v9  ;;  %v703_v53 = vperm.slane %v697_v6, %v7512_v9  ;;  %v750_v4 = vrot.slane %v707_v45, 4 }
 0x26e   : > { %v627_v29 = vpop.permute.xlu1 %626  ;;  %v709_v37 = vsel %vm648_vm6, %v708_v56, %v659_v22 }
 0x26f   : > { %v686_v34 = vrot.slane %v627_v29, 4  ;;  %v715_v58 = vperm.slane %v709_v37, %v7512_v9  ;;  %v758_v3 = vrot.slane %v719_v38, 4  ;;  %v746_v21 = vrot.slane %v703_v53, 4 }
 0x271   : > { %v754_v22 = vrot.slane %v715_v58, 4 }
 0x276   : > { %v633_v35 = vpop.permute.xlu1 %632 }
 0x277   : > { %v684_v40 = vrot.slane %v633_v35, 4  ;;  %v687_v43 = vsel %vm648_vm6, %v633_v35, %v686_v34 }
 0x278   : > { %v695_v50 = vperm.slane %v687_v43, %v7499_v11 }
 0x279   : > { %v685_v57 = vsel %vm648_vm6, %v684_v40, %v627_v29 }
 0x27a   : > { %v691_v59 = vperm.slane %v685_v57, %v7499_v11  ;;  %v732_v0 = vrot.slane %v695_v50, 4  ;;  %v735_v1 = vsel %vm648_vm6, %v695_v50, %v734_v46 }
 0x27b   : > { %v743_v7 = vperm.slane %v735_v1, %v7512_v9 }
 0x27c   : > { %v720_v28 = vrot.slane %v691_v59, 4  ;;  %v723_v52 = vsel %vm648_vm6, %v691_v59, %v722_v5  ;;  %v733_v12 = vsel %vm648_vm6, %v732_v0, %v683_v18 }
 0x27d   : > { %v731_v48 = vperm.slane %v723_v52, %v7512_v9  ;;  %v739_v61 = vperm.slane %v733_v12, %v7512_v9  ;;  %v756_v16 = vrot.slane %v743_v7, 4  ;;  %v759_v19 = vsel %vm648_vm6, %v743_v7, %v758_v3 }
 0x27e   : > { %v721_v26 = vsel %vm648_vm6, %v720_v28, %v679_v55  ;;  %v852_v29 = vrot.slane %v759_v19, 4 }
 0x27f   : > { %v727_v30 = vperm.slane %v721_v26, %v7512_v9  ;;  %v748_v31 = vrot.slane %v731_v48, 4  ;;  %v751_v47 = vsel %vm648_vm6, %v731_v48, %v750_v4  ;;  %v752_v44 = vrot.slane %v739_v61, 4 }
 0x280   : > { %v755_v33 = vsel %vm648_vm6, %v739_v61, %v754_v22  ;;  %v757_v39 = vsel %vm648_vm6, %v756_v16, %v719_v38  ;;  %v828_v51 = vrot.slane %v751_v47, 4 }
 0x281   : > { %v744_v63 = vrot.slane %v727_v30, 4  ;;  %v747_v15 = vsel %vm648_vm6, %v727_v30, %v746_v21  ;;  %v749_v41 = vsel %vm648_vm6, %v748_v31, %v707_v45  ;;  %v753_v56 = vsel %vm648_vm6, %v752_v44, %v715_v58 }
 0x282   : > { %v816_v13 = vrot.slane %v749_v41, 4  ;;  %v829_v18 = vsel %vm648_vm6, %v828_v51, %v747_v15  ;;  %v830_v23 = vrot.slane %v747_v15, 4  ;;  %v840_v55 = vrot.slane %v757_v39, 4 }
 0x283   : > { %v745_v34 = vsel %vm648_vm6, %v744_v63, %v703_v53  ;;  %v835_v6 = vperm.slane %v829_v18, %v7499_v11  ;;  %v842_v35 = vrot.slane %v753_v56, 4  ;;  %v853_v37 = vsel %vm648_vm6, %v852_v29, %v755_v33 }
 0x284   : > { %v817_v38 = vsel %vm648_vm6, %v816_v13, %v745_v34  ;;  %v818_v40 = vrot.slane %v745_v34, 4  ;;  %v831_v43 = vsel %vm648_vm6, %v751_v47, %v830_v23  ;;  %v841_v45 = vsel %vm648_vm6, %v840_v55, %v753_v56 }
 0x285   : > { %v823_v46 = vperm.slane %v817_v38, %v7499_v11  ;;  %v839_v50 = vperm.slane %v831_v43, %v7499_v11  ;;  %v843_v5 = vsel %vm648_vm6, %v757_v39, %v842_v35  ;;  %v847_v53 = vperm.slane %v841_v45, %v7499_v11 }
 0x286   : > { %v851_v57 = vperm.slane %v843_v5, %v7499_v11  ;;  %v854_v58 = vrot.slane %v755_v33, 4  ;;  %v859_v59 = vperm.slane %v853_v37, %v7499_v11  ;;  %v864_v0 = vrot.slane %v835_v6, 4 }
 0x287   : > { %v819_v1 = vsel %vm648_vm6, %v749_v41, %v818_v40  ;;  %v876_v3 = vrot.slane %v839_v50, 4  ;;  %v866_v7 = vrot.slane %v823_v46, 4  ;;  %v890_v34 = vrot.slane %v847_v53, 4 }
 0x288   : > { %v855_v4 = vsel %vm648_vm6, %v759_v19, %v854_v58  ;;  %v888_v28 = vrot.slane %v859_v59, 4  ;;  %v902_v52 = vrot.slane %v851_v57, 4  ;;  %v827_v12 = vperm.slane %v819_v1, %v7499_v11 }
 0x289   : > { %v863_v48 = vperm.slane %v855_v4, %v7499_v11  ;;  %v865_v61 = vsel %vm648_vm6, %v864_v0, %v823_v46  ;;  %v867_v44 = vsel %vm648_vm6, %v835_v6, %v866_v7  ;;  %v891_v46 = vsel %vm648_vm6, %v859_v59, %v890_v34 }
 0x28a   : > { %v877_v16 = vsel %vm648_vm6, %v876_v3, %v827_v12  ;;  %v871_v21 = vperm.slane %v865_v61, %v7512_v9  ;;  %v889_v22 = vsel %vm648_vm6, %v888_v28, %v847_v53  ;;  %v878_v19 = vrot.slane %v827_v12, 4 }
 0x28b   : > { %v900_v26 = vrot.slane %v863_v48, 4  ;;  %v883_v29 = vperm.slane %v877_v16, %v7512_v9  ;;  %v895_v30 = vperm.slane %v889_v22, %v7512_v9  ;;  %v903_v47 = vsel %vm648_vm6, %v863_v48, %v902_v52 }
 0x28c   : > { %v914_v31 = vrot.slane %v871_v21, 4  ;;  %v879_v51 = vsel %vm648_vm6, %v839_v50, %v878_v19  ;;  %v911_v63 = vperm.slane %v903_v47, %v7512_v9  ;;  %v7576_v55 = vperm.slane %v867_v44, %v7512_v9 }
 0x28d   : > { %v901_v33 = vsel %vm648_vm6, %v900_v26, %v851_v57  ;;  %v922_v39 = vrot.slane %v883_v29, 4  ;;  %v887_v56 = vperm.slane %v879_v51, %v7512_v9  ;;  %v912_v13 = vrot.slane %v895_v30, 4 }
 0x28e   : > { %v907_v15 = vperm.slane %v901_v33, %v7512_v9  ;;  %v915_v41 = vsel %vm648_vm6, %v895_v30, %v914_v31  ;;  %v924_v23 = vrot.slane %v911_v63, 4  ;;  %v899_v3 = vperm.slane %v891_v46, %v7512_v9 }
 0x28f   : > { %v1608_v18 = vsel %vm1454_vm7, %v915_v41, 0  ;;  %v913_v38 = vsel %vm648_vm6, %v912_v13, %v871_v21  ;;  %v926_v48 = vrot.slane %v887_v56, 4 }
 0x290   : > { %v920_v6 = vrot.slane %v907_v15, 4  ;;  %v923_v35 = vsel %vm648_vm6, %v907_v15, %v922_v39  ;;  %v7579_v37 = vand.u32 4294901760, %v1608_v18  ;;  %v925_v43 = vsel %vm648_vm6, %v924_v23, %v887_v56 }
 0x291   : > { %v1611_v40 = vsel %vm1454_vm7, %v923_v35, 0  ;;  %v1456_v45 = vsel %vm1454_vm7, %v913_v38, 0  ;;  %v1763_v57 = vsel %vm1454_vm7, %v925_v43, 0  ;;  %v916_v12 = vrot.slane %v899_v3, 4 }
 0x292   : > { %v921_v50 = vsel %vm648_vm6, %v920_v6, %v883_v29  ;;  %v7587_v5 = vand.u32 4294901760, %v1611_v40  ;;  %v7590_v53 = vsub.f32 %v1608_v18, %v7579_v37  ;;  %v7594_v0 = vand.u32 4294901760, %v1763_v57 }
 0x293   : > { %v1459_v58 = vsel %vm1454_vm7, %v921_v50, 0  ;;  %v7596_v1 = vand.u32 4294901760, %v1456_v45  ;;  %v917_v22 = vsel %vm648_vm6, %v916_v12, %v7576_v55  ;;  %v927_v30 = vsel %vm648_vm6, %v911_v63, %v926_v48 }
 0x294   : > { %v1476_v7 = vand.u32 4294901760, %v1459_v58  ;;  %1705 = vmatpush.xpose.msra.mxu3 %v7587_v5  ;;  %v1655_v59 = vsub.f32 %v1611_v40, %v7587_v5  ;;  %v1632_v4 = vand.u32 4294901760, %v7590_v53  ;;  %v7603_v28 = vsub.f32 %v1763_v57, %v7594_v0 }
 0x295   : > { %v1479_v52 = vsub.f32 %v1456_v45, %v7596_v1  ;;  %v1760_v29 = vsel %vm1454_vm7, %v917_v22, 0  ;;  %v1915_v15 = vsel %vm1454_vm7, %v927_v30, 0  ;;  %v918_v56 = vrot.slane %v7576_v55, 4 }
 0x296   : > { %1477 = vmatpush.xpose.msra.mxu0 %v1476_v7  ;;  %v1503_v61 = vsub.f32 %v1459_v58, %v1476_v7  ;;  %1682 = vmatpush.xpose.msra.mxu2 %v1655_v59  ;;  %v1808_v21 = vand.u32 4294901760, %v7603_v28  ;;  %v1782_v47 = vand.u32 4294901760, %v1760_v29  ;;  %v1932_v63 = vand.u32 4294901760, %v1915_v15 }
 0x297   : > { %1709 = vmatmul.f32.vlgmr.msra.gmra.mxu3 %v1632_v4  ;;  %v1480_v16 = vand.u32 4294901760, %v1479_v52  ;;  %v1656_v23 = vand.u32 4294901760, %v1655_v59  ;;  %v919_v34 = vsel %vm648_vm6, %v899_v3, %v918_v56  ;;  %v1633_v50 = vsub.f32 %v7590_v53, %v1632_v4  ;;  %v1376_v4 = vpop.permute.xlu2 %1375 }
 0x298   : > { %v1504_v26 = vand.u32 4294901760, %v1503_v61  ;;  %v1809_v31 = vsub.f32 %v7603_v28, %v1808_v21  ;;  %v1783_v51 = vsub.f32 %v1760_v29, %v1782_v47  ;;  %v1959_v55 = vsub.f32 %v1915_v15, %v1932_v63 }
 0x299   : > { %v1481_v19 = vsub.f32 %v1479_v52, %v1480_v16  ;;  %1685 = vmatmul.f32.vlgmr.msra.gmra.mxu2 %v7590_v53  ;;  %v1912_v35 = vsel %vm1454_vm7, %v919_v34, 0  ;;  %v1657_v38 = vsub.f32 %v1655_v59, %v1656_v23  ;;  %v1634_v57 = vand.u32 4294901760, %v1633_v50 }
 0x29a   : > { %1781 = vmatpush.xpose.msrb.mxu2 %v7594_v0  ;;  %1530 = vmatpush.xpose.msrb.mxu0 %v1503_v61  ;;  %v1505_v44 = vsub.f32 %v1503_v61, %v1504_v26  ;;  %v1810_v39 = vand.u32 4294901760, %v1809_v31  ;;  %v1784_v13 = vand.u32 4294901760, %v1783_v51  ;;  %v1934_v40 = vand.u32 4294901760, %v1912_v35 }
 0x29b   : > { %v1482_v33 = vand.u32 4294901760, %v1481_v19  ;;  %v1658_v43 = vand.u32 4294901760, %v1657_v38  ;;  %v1960_v58 = vand.u32 4294901760, %v1959_v55 }
 0x29c   : > { %v1506_v41 = vand.u32 4294901760, %v1505_v44  ;;  %1811 = vmatpush.xpose.msrb.mxu3 %v1810_v39  ;;  %v1785_v18 = vsub.f32 %v1783_v51, %v1784_v13  ;;  %v1935_v45 = vsub.f32 %v1912_v35, %v1934_v40 }
 0x29d   : > { %1483 = vmatmul.f32.vlgmr.msra.gmra.mxu0 %v1482_v33  ;;  %v1961_v3 = vsub.f32 %v1959_v55, %v1960_v58 }
 0x29e   : > { %1883 = vmatpush.xpose.msra.mxu2 %v1808_v21  ;;  %1579 = vmatpush.xpose.msra.mxu0 %v1504_v26  ;;  %v1786_v6 = vand.u32 4294901760, %v1785_v18  ;;  %v1936_v46 = vand.u32 4294901760, %v1935_v45 }
 0x29f   : > { %1507 = vmatpush.xpose.msra.mxu1 %v1506_v41  ;;  %1813 = vmatmul.f32.vlgmr.msrb.gmra.mxu3 %v1782_v47  ;;  %v1962_v53 = vand.u32 4294901760, %v1961_v3  ;;  %v1367_v21 = vpop.permute.xlu2 %1366 }
 0x2a0   : > { %1905 = vmatpush.xpose.msra.mxu3 %v7594_v0  ;;  %v1384_v26 = vrot.slane %v1367_v21, 4 }
 0x2a1   : > { %1787 = vmatmul.f32.vlgmr.msrb.gmra.mxu2 %v1786_v6 }
 0x2a2   : > { %1509 = vmatmul.f32.vlgmr.msra.gmra.mxu1 %v7596_v1  ;;  %1986 = vmatpush.xpose.msrb.mxu2 %v1959_v55  ;;  %v1385_v33 = vsel %vm648_vm6, %v1384_v26, %v7479_v54 }
 0x2a3   : > { %1553 = vmatpush.xpose.msrb.mxu1 %v1476_v7 }
 0x2a4   : > { %2009 = vmatpush.xpose.msrb.mxu3 %v1932_v63 }
 0x2a5   : > { %1533 = vmatmul.f32.vlgmr.msrb.gmra.mxu0 %v1479_v52 }
 0x2a6   : > { %1629 = vmatpush.xpose.msrb.mxu0 %v7587_v5 }
 0x2a7   : > { %1601 = vmatpush.xpose.msra.mxu1 %v1476_v7  ;;  %1907 = vmatmul.f32.vlgmr.msra.gmra.mxu3 %v1782_v47  ;;  %v1382_v7 = vpop.permute.xlu0 %1381 }
 0x2a9   : > { %1885 = vmatmul.f32.vlgmr.msra.gmra.mxu2 %v1782_v47 }
 0x2aa   : > { %1557 = vmatmul.f32.vlgmr.msrb.gmra.mxu1 %v1480_v16 }
 0x2ab   : > { %1659 = vmatpush.xpose.msrb.mxu1 %v1658_v43 }
 0x2ad   : > { %1581 = vmatmul.f32.vlgmr.msra.gmra.mxu0 %v7596_v1 }
 0x2ae   : > { %1731 = vmatpush.xpose.msra.mxu0 %v1656_v23 }
 0x2af   : > { %2013 = vmatmul.f32.vlgmr.msrb.gmra.mxu3 %v1936_v46  ;;  %v1379_v59 = vpop.permute.xlu0 %1378 }
 0x2b1   : > { %1989 = vmatmul.f32.vlgmr.msrb.gmra.mxu2 %v1935_v45 }
 0x2b2   : > { %1603 = vmatmul.f32.vlgmr.msra.gmra.mxu1 %v7596_v1 }
 0x2b3   : > { %1753 = vmatpush.xpose.msra.mxu1 %v7587_v5  ;;  %v1937_v5 = vsub.f32 %v1935_v45, %v1936_v46 }
 0x2b5   : > { %1635 = vmatmul.f32.vlgmr.msrb.gmra.mxu0 %v1634_v57  ;;  %v1938_v1 = vand.u32 4294901760, %v1937_v5  ;;  %v7648_v5 = vld [vmem:[%s7205_s23] sm:$0xff] }
 0x2b6   : > { %1834 = vmatpush.xpose.msrb.mxu0 %v7603_v28  ;;  %v1402_v28 = vrot.slane %v1382_v7, 4 }
 0x2b7   : > { %v1373_v61 = vpop.permute.xlu0 %1372 }
 0x2b8   : > { %v1403_v52 = vsel %vm648_vm6, %v1402_v28, %v1376_v4 }
 0x2b9   : > { %v1407_v22 = vperm.slane %v1403_v52, %v7499_v11 }
 0x2ba   : > { %1661 = vmatmul.f32.vlgmr.msrb.gmra.mxu1 %v7579_v37 }
 0x2bb   : > { %1857 = vmatpush.xpose.msrb.mxu1 %v7594_v0  ;;  %v1370_v0 = vpop.permute.xlu1 %1369  ;;  %v1420_v31 = vrot.slane %v1407_v22, 4 }
 0x2bc   : > { %v1390_v12 = vrot.slane %v1370_v0, 4 }
 0x2bd   : > { %1733 = vmatmul.f32.vlgmr.msra.gmra.mxu0 %v7579_v37 }
 0x2be   : > { %1933 = vmatpush.xpose.msra.mxu0 %v1932_v63 }
 0x2c2   : > { %1755 = vmatmul.f32.vlgmr.msra.gmra.mxu1 %v7579_v37  ;;  %v1396_v37 = vrot.slane %v1379_v59, 4 }
 0x2c3   : > { %1963 = vmatpush.xpose.msra.mxu1 %v1962_v53  ;;  %v1364_v48 = vpop.permute.xlu1 %1363 }
 0x2c4   : > { %v1391_v29 = vsel %vm648_vm6, %v1390_v12, %v1364_v48  ;;  %v1397_v30 = vsel %vm648_vm6, %v1396_v37, %v1373_v61 }
 0x2c5   : > { %1837 = vmatmul.f32.vlgmr.msrb.gmra.mxu0 %v1783_v51  ;;  %v1395_v47 = vperm.slane %v1391_v29, %v7499_v11  ;;  %v1401_v44 = vperm.slane %v1397_v30, %v7499_v11  ;;  %v1389_v51 = vperm.slane %v1385_v33, %v7499_v11 }
 0x2c6   : > { %2035 = vmatpush.xpose.msrb.mxu0 %v1960_v58 }
 0x2c7   : > { %v1408_v15 = vrot.slane %v1395_v47, 4  ;;  %v1421_v41 = vsel %vm648_vm6, %v1420_v31, %v1401_v44  ;;  %v1422_v37 = vrot.slane %v1401_v44, 4  ;;  %v1410_v30 = vrot.slane %v1389_v51, 4 }
 0x2c9   : > { %v1409_v18 = vsel %vm648_vm6, %v1408_v15, %v1389_v51  ;;  %v1411_v44 = vsel %vm648_vm6, %v1395_v47, %v1410_v30 }
 0x2ca   : > { %1861 = vmatmul.f32.vlgmr.msrb.gmra.mxu1 %v1784_v13  ;;  %v1427_v13 = vperm.slane %v1421_v41, %v7512_v9  ;;  %v1415_v6 = vperm.slane %v1409_v18, %v7512_v9 }
 0x2cb   : > { %2057 = vmatpush.xpose.msrb.mxu1 %v1932_v63  ;;  %v7643_v35 = vpop.permute.xlu1 %1444 }
 0x2cc   : > { %v1432_v55 = vrot.slane %v1427_v13, 4  ;;  %v1446_v38 = vperm.slane %v7643_v35, 0  ;;  %v1434_v12 = vrot.slane %v1415_v6, 4  ;;  %v1447_v61 = vperm.slane %v7643_v35, 1 }
 0x2cd   : > { %1939 = vmatmul.f32.vlgmr.msra.gmra.mxu0 %v1938_v1 }
 0x2ce   : > { %v1433_v43 = vsel %vm648_vm6, %v1432_v55, %v1415_v6  ;;  %v1435_v26 = vsel %vm648_vm6, %v1427_v13, %v1434_v12  ;;  %v1419_v13 = vperm.slane %v1411_v44, %v7512_v9 }
 0x2cf   : > { %v1450_v50 = vadd.f32 %v1446_v38, %v1433_v43  ;;  %v1448_v38 = vperm.slane %v7643_v35, 2 }
 0x2d2   : > { %1965 = vmatmul.f32.vlgmr.msra.gmra.mxu1 %v1934_v40 }
 0x2d5   : > { %2037 = vmatmul.f32.vlgmr.msrb.gmra.mxu0 %v1934_v40 }
 0x2da   : > { %2059 = vmatmul.f32.vlgmr.msrb.gmra.mxu1 %v1934_v40 }
 0x31a   : > { %v1484_v16 = vpop.f32.mrf.mxu0  ;;  %v1710_v7 = vpop.f32.mrf.mxu3 }
 0x31c   : > { %v1686_v53 = vpop.f32.mrf.mxu2 }
 0x31f   : > { %v1510_v19 = vpop.f32.mrf.mxu1 }
 0x320   : > { %v1511_v56 = vadd.f32 %v1510_v19, %v1484_v16  ;;  %v1423_v19 = vsel %vm648_vm6, %v1407_v22, %v1422_v37 }
 0x321   : > { %v1431_v41 = vperm.slane %v1423_v19, %v7512_v9 }
 0x322   : > { %v1534_v39 = vpop.f32.mrf.mxu0  ;;  %v1814_v33 = vpop.f32.mrf.mxu3 }
 0x323   : > { %v1535_v23 = vadd.f32 %v1534_v39, %v1511_v56  ;;  %v1451_v39 = vadd.f32 %v1447_v61, %v1435_v26  ;;  %v1436_v51 = vrot.slane %v1431_v41, 4  ;;  %v1438_v61 = vrot.slane %v1419_v13, 4 }
 0x324   : > { %v1788_v21 = vpop.f32.mrf.mxu2 }
 0x325   : > { %v1437_v47 = vsel %vm648_vm6, %v1436_v51, %v1419_v13  ;;  %v1439_v26 = vsel %vm648_vm6, %v1431_v41, %v1438_v61 }
 0x327   : > { %v1558_v63 = vpop.f32.mrf.mxu1 }
 0x328   : > { %v1559_v34 = vadd.f32 %v1558_v63, %v1535_v23  ;;  %v1815_v63 = vadd.f32 %v1814_v33, %v1788_v21  ;;  %v1449_v21 = vperm.slane %v7643_v35, 3 }
 0x32a   : > { %v1582_v54 = vpop.f32.mrf.mxu0  ;;  %v1908_v43 = vpop.f32.mrf.mxu3  ;;  %v1453_v30 = vadd.f32 %v1449_v21, %v1439_v26 }
 0x32b   : > { %v1583_v40 = vadd.f32 %v1582_v54, %v1559_v34 }
 0x32c   : > { %v1886_v54 = vpop.f32.mrf.mxu2 }
 0x32f   : > { %v1604_v45 = vpop.f32.mrf.mxu1 }
 0x330   : > { %v1605_v46 = vadd.f32 %v1604_v45, %v1583_v40 }
 0x332   : > { %v2063_v57 = vmul.f32 0.35355338, %v1605_v46  ;;  %v1636_v58 = vpop.f32.mrf.mxu0 }
 0x334   : > { %v2067_v3 = vadd.f32 %v2063_v57, %v1450_v50  ;;  %v1452_v50 = vadd.f32 %v1448_v38, %v1437_v47 }
 0x336   : > { %v7651_v1 = vadd.f32 %v7648_v5, %v2067_v3 }
 0x337   : > { %v1662_v0 = vpop.f32.mrf.mxu1 }
 0x338   : > { %v1663_v59 = vadd.f32 %v1662_v0, %v1636_v58  ;;  %v2075_v4 = vsel %vm1454_vm7, %v7651_v1, -inf }
 0x339   : > { %2076 = vmax.xlane.f32.xlu2 %v2075_v4 }
 0x33a   : > { %v1687_v28 = vadd.f32 %v1686_v53, %v1663_v59  ;;  %v1734_v52 = vpop.f32.mrf.mxu0  ;;  %v1990_v59 = vpop.f32.mrf.mxu2 }
 0x33c   : > { %v1711_v48 = vadd.f32 %v1710_v7, %v1687_v28  ;;  %v2014_v28 = vpop.f32.mrf.mxu3 }
 0x33e   : > { %v1735_v16 = vadd.f32 %v1734_v52, %v1711_v48 }
 0x33f   : > { %v1756_v29 = vpop.f32.mrf.mxu1 }
 0x340   : > { %v1757_v31 = vadd.f32 %v1756_v29, %v1735_v16 }
 0x342   : > { %v2064_v15 = vmul.f32 0.35355338, %v1757_v31  ;;  %v1838_v56 = vpop.f32.mrf.mxu0 }
 0x343   : > { %v1839_v23 = vadd.f32 %v1838_v56, %v1815_v63 }
 0x344   : > { %v2068_v18 = vadd.f32 %v2064_v15, %v1451_v39 }
 0x346   : > { %v2072_v34 = vadd.f32 %v7648_v5, %v2068_v18 }
 0x347   : > { %v1862_v6 = vpop.f32.mrf.mxu1 }
 0x348   : > { %v1863_v55 = vadd.f32 %v1862_v6, %v1839_v23  ;;  %v2078_v22 = vsel %vm1454_vm7, %v2072_v34, -inf }
 0x349   : > { %2079 = vmax.xlane.f32.xlu0 %v2078_v22 }
 0x34a   : > { %v1887_v40 = vadd.f32 %v1886_v54, %v1863_v55  ;;  %v1940_v7 = vpop.f32.mrf.mxu0 }
 0x34c   : > { %v1909_v45 = vadd.f32 %v1908_v43, %v1887_v40 }
 0x34e   : > { %v2065_v46 = vmul.f32 0.35355338, %v1909_v45 }
 0x34f   : > { %v1966_v53 = vpop.f32.mrf.mxu1 }
 0x350   : > { %v2069_v57 = vadd.f32 %v2065_v46, %v1452_v50  ;;  %v1967_v0 = vadd.f32 %v1966_v53, %v1940_v7 }
 0x351   : > { %644 = vrot.lane.b32.xlu2 %v7463_v32, %s7031_s20 }
 0x352   : > { %v2073_v58 = vadd.f32 %v7648_v5, %v2069_v57  ;;  %v1991_v4 = vadd.f32 %v1990_v59, %v1967_v0  ;;  %v2038_v12 = vpop.f32.mrf.mxu0 }
 0x354   : > { %v2081_v3 = vsel %vm1454_vm7, %v2073_v58, -inf  ;;  %v2015_v52 = vadd.f32 %v2014_v28, %v1991_v4 }
 0x355   : > { %2082 = vmax.xlane.f32.xlu1 %v2081_v3 }
 0x356   : > { %v2039_v37 = vadd.f32 %v2038_v12, %v2015_v52 }
 0x357   : > { %v2060_v48 = vpop.f32.mrf.mxu1 }
 0x358   : > { %v2061_v16 = vadd.f32 %v2060_v48, %v2039_v37 }
 0x35a   : > { %v2066_v29 = vmul.f32 0.35355338, %v2061_v16 }
 0x35c   : > { %v2070_v19 = vadd.f32 %v2066_v29, %v1453_v30 }
 0x35d   : > { %638 = vrot.lane.b32.xlu0 %v7463_v32, %s8593_s16 }
 0x35e   : > { %v7676_v31 = vadd.f32 %v7648_v5, %v2070_v19 }
 0x360   : > { %v2084_v33 = vsel %vm1454_vm7, %v7676_v31, -inf }
 0x36e   : > { %641 = vrot.lane.b32.xlu1 %v7463_v32, %s8591_s14  ;;  %v636_v32 = vpop.permute.xlu2 %635 }
 0x36f   : > { %v762_v45 = vrot.slane %v636_v32, 4 }
 0x387   : > { %2085 = vmax.xlane.f32.xlu0 %v2084_v33 }
 0x3ac   : > { %v2077_v39 = vpop.xlane.xlu2 %2076 }
 0x3ad   : > { %v2087_v15 = vsub.f32 %v7651_v1, %v2077_v39 }
 0x3af   : > { %v2091_v56 = vmul.f32 1.442695, %v2087_v15 }
 0x3b1   : > { %6804 = vpow2.f32 %v2091_v56 }
 0x3b4   : > { %v645_v54 = vpop.permute.xlu2 %644 }
 0x3b5   : > { %v772_v38 = vrot.slane %v645_v54, 4 }
 0x3b7   : > { %v7681_v44 = vpop.eup %6804 }
 0x3b8   : > { %v2099_v35 = vsel %vm1454_vm7, %v7681_v44, 0.0 }
 0x3b9   : > { %2100 = vadd.xlane.f32.xlu2 %v2099_v35 }
 0x3bc   : > { %v2080_v41 = vpop.xlane.xlu0 %2079 }
 0x3bd   : > { %v2088_v63 = vsub.f32 %v2072_v34, %v2080_v41 }
 0x3bf   : > { %v2093_v5 = vmul.f32 1.442695, %v2088_v63 }
 0x3c1   : > { %6806 = vpow2.f32 %v2093_v5 }
 0x3c7   : > { %v7685_v18 = vpop.eup %6806 }
 0x3c8   : > { %v2083_v23 = vpop.xlane.xlu1 %2082  ;;  %v2102_v13 = vsel %vm1454_vm7, %v7685_v18, 0.0 }
 0x3c9   : > { %v2089_v6 = vsub.f32 %v2073_v58, %v2083_v23  ;;  %2103 = vadd.xlane.f32.xlu1 %v2102_v13 }
 0x3cb   : > { %v2095_v1 = vmul.f32 1.442695, %v2089_v6 }
 0x3cd   : > { %6808 = vpow2.f32 %v2095_v1 }
 0x3cf   : > { %v639_v55 = vpop.permute.xlu0 %638 }
 0x3d0   : > { %v774_v34 = vrot.slane %v639_v55, 4  ;;  %v773_v43 = vsel %vm648_vm6, %v772_v38, %v639_v55 }
 0x3d1   : > { %v779_v46 = vperm.slane %v773_v43, %v7499_v11 }
 0x3d2   : > { %v775_v40 = vsel %vm648_vm6, %v645_v54, %v774_v34 }
 0x3d3   : > { %v7689_v51 = vpop.eup %6808  ;;  %v783_v47 = vperm.slane %v775_v40, %v7499_v11  ;;  %v784_v0 = vrot.slane %v779_v46, 4 }
 0x3d4   : > { %v2105_v22 = vsel %vm1454_vm7, %v7689_v51, 0.0 }
 0x3d5   : > { %2106 = vadd.xlane.f32.xlu0 %v2105_v22  ;;  %v796_v3 = vrot.slane %v783_v47, 4 }
 0x3e0   : > { %v642_v50 = vpop.permute.xlu1 %641 }
 0x3e1   : > { %v760_v57 = vrot.slane %v642_v50, 4  ;;  %v763_v58 = vsel %vm648_vm6, %v642_v50, %v762_v45 }
 0x3e2   : > { %v771_v53 = vperm.slane %v763_v58, %v7499_v11 }
 0x3e3   : > { %v761_v7 = vsel %vm648_vm6, %v760_v57, %v636_v32 }
 0x3e4   : > { %v767_v59 = vperm.slane %v761_v7, %v7499_v11  ;;  %v797_v4 = vsel %vm648_vm6, %v796_v3, %v771_v53  ;;  %v798_v28 = vrot.slane %v771_v53, 4 }
 0x3e5   : > { %v803_v52 = vperm.slane %v797_v4, %v7512_v9 }
 0x3e6   : > { %v785_v12 = vsel %vm648_vm6, %v784_v0, %v767_v59  ;;  %v786_v37 = vrot.slane %v767_v59, 4  ;;  %v799_v48 = vsel %vm648_vm6, %v783_v47, %v798_v28 }
 0x3e7   : > { %v791_v61 = vperm.slane %v785_v12, %v7512_v9  ;;  %v807_v16 = vperm.slane %v799_v48, %v7512_v9  ;;  %v812_v29 = vrot.slane %v803_v52, 4 }
 0x3e8   : > { %v787_v21 = vsel %vm648_vm6, %v779_v46, %v786_v37 }
 0x3e9   : > { %v795_v26 = vperm.slane %v787_v21, %v7512_v9  ;;  %v814_v30 = vrot.slane %v807_v16, 4  ;;  %v808_v19 = vrot.slane %v791_v61, 4  ;;  %v813_v41 = vsel %vm648_vm6, 0.0, %v812_v29 }
 0x3eb   : > { %v810_v33 = vrot.slane %v795_v26, 4  ;;  %v815_v32 = vsel %vm648_vm6, 0.0, %v814_v30  ;;  %v939_v39 = vsel %vm648_vm6, %v814_v30, %v803_v52  ;;  %v809_v1 = vsel %vm648_vm6, 0.0, %v808_v19 }
 0x3ec   : > { %v943_v15 = vperm.slane %v939_v39, %v7499_v11  ;;  %v944_v56 = vrot.slane %v815_v32, 4 }
 0x3ed   : > { %v811_v35 = vsel %vm648_vm6, 0.0, %v810_v33  ;;  %v928_v63 = vsel %vm648_vm6, %v810_v33, %v791_v61 }
 0x3ee   : > { %v932_v5 = vperm.slane %v928_v63, %v7499_v11  ;;  %v933_v23 = vrot.slane %v811_v35, 4  ;;  %v945_v13 = vsel %vm648_vm6, %v944_v56, %v813_v41  ;;  %v964_v6 = vrot.slane %v943_v15, 4 }
 0x3ef   : > { %v949_v55 = vperm.slane %v945_v13, %v7499_v11 }
 0x3f0   : > { %v934_v22 = vsel %vm648_vm6, %v933_v23, %v809_v1  ;;  %v952_v34 = vrot.slane %v932_v5, 4 }
 0x3f1   : > { %v938_v54 = vperm.slane %v934_v22, %v7499_v11  ;;  %v962_v38 = vrot.slane %v949_v55, 4  ;;  %v965_v40 = vsel %vm648_vm6, %v949_v55, %v964_v6 }
 0x3f2   : > { %v973_v43 = vperm.slane %v965_v40, %v7512_v9 }
 0x3f3   : > { %v950_v47 = vrot.slane %v938_v54, 4  ;;  %v963_v45 = vsel %vm648_vm6, %v962_v38, %v943_v15  ;;  %v953_v46 = vsel %vm648_vm6, %v938_v54, %v952_v34 }
 0x3f4   : > { %v969_v50 = vperm.slane %v963_v45, %v7512_v9  ;;  %v961_v57 = vperm.slane %v953_v46, %v7512_v9  ;;  %v978_v58 = vrot.slane %v973_v43, 4 }
 0x3f5   : > { %v951_v3 = vsel %vm648_vm6, %v950_v47, %v932_v5 }
 0x3f6   : > { %v957_v53 = vperm.slane %v951_v3, %v7512_v9  ;;  %v974_v7 = vrot.slane %v969_v50, 4  ;;  %v979_v0 = vsel %vm648_vm6, %v978_v58, %v961_v57  ;;  %v980_v59 = vrot.slane %v961_v57, 4 }
 0x3f7   : > { %v2435_v41 = vand.u32 4294901760, %v979_v0 }
 0x3f8   : > { %v975_v4 = vsel %vm648_vm6, %v974_v7, %v957_v53  ;;  %v976_v28 = vrot.slane %v957_v53, 4  ;;  %v981_v52 = vsel %vm648_vm6, %v973_v43, %v980_v59 }
 0x3f9   : > { %v2137_v12 = vand.u32 4294901760, %v975_v4  ;;  %v2462_v23 = vsub.f32 %v979_v0, %v2435_v41 }
 0x3fa   : > { %v2086_v37 = vpop.xlane.xlu0 %2085  ;;  %v977_v48 = vsel %vm648_vm6, %v969_v50, %v976_v28 }
 0x3fb   : > { %v2090_v61 = vsub.f32 %v7676_v31, %v2086_v37  ;;  %2138 = vmatpush.msra.mxu2 %v2137_v12  ;;  %2214 = vmatpush.msra.mxu1 %v2137_v12  ;;  %v2164_v16 = vsub.f32 %v975_v4, %v2137_v12  ;;  %v2286_v21 = vand.u32 4294901760, %v977_v48  ;;  %v2463_v1 = vand.u32 4294901760, %v2462_v23 }
 0x3fd   : > { %v2097_v26 = vmul.f32 1.442695, %v2090_v61  ;;  %2191 = vmatpush.msra.mxu0 %v2164_v16  ;;  %v2313_v29 = vsub.f32 %v977_v48, %v2286_v21  ;;  %v2165_v30 = vand.u32 4294901760, %v2164_v16  ;;  %v2464_v54 = vsub.f32 %v2462_v23, %v2463_v1 }
 0x3ff   : > { %2287 = vmatpush.msrb.mxu0 %v2286_v21  ;;  %6810 = vpow2.f32 %v2097_v26  ;;  %2240 = vmatpush.msrb.mxu2 %v2165_v30  ;;  %v2166_v19 = vsub.f32 %v2164_v16, %v2165_v30  ;;  %v2314_v33 = vand.u32 4294901760, %v2313_v29  ;;  %v2465_v43 = vand.u32 4294901760, %v2464_v54 }
 0x401   : > { %v2167_v32 = vand.u32 4294901760, %v2166_v19  ;;  %v2315_v39 = vsub.f32 %v2313_v29, %v2314_v33 }
 0x403   : > { %2168 = vmatpush.msra.mxu3 %v2167_v32  ;;  %v2316_v15 = vand.u32 4294901760, %v2315_v39 }
 0x405   : > { %2262 = vmatpush.msrb.mxu3 %v2137_v12  ;;  %v7734_v56 = vpop.eup %6810  ;;  %2317 = vmatpush.msrb.mxu1 %v2316_v15 }
 0x406   : > { %v2108_v31 = vsel %vm1454_vm7, %v7734_v56, 0.0 }
 0x407   : > { %2109 = vadd.xlane.f32.xlu2 %v2108_v31 }
 0x42c   : > { %v2101_v35 = vpop.xlane.xlu2 %2100 }
 0x42d   : > { %6812 = vrcp.f32 %v2101_v35 }
 0x433   : > { %v6813_v63 = vpop.eup %6812 }
 0x434   : > { %v2115_v5 = vmul.f32 %v6813_v63, %v7681_v44  ;;  %v2584_v44 = vand.u32 4294901760, %v981_v52 }
 0x436   : > { %v2120_v13 = vsel %vm1454_vm7, %v2115_v5, 0  ;;  %v2611_v46 = vsub.f32 %v981_v52, %v2584_v44 }
 0x437   : > { %v2139_v6 = vand.u32 4294901760, %v2120_v13 }
 0x438   : > { %v2612_v53 = vand.u32 4294901760, %v2611_v46 }
 0x439   : > { %2170 = vmatmul.f32.vlgmr.msra.gmra.mxu3 %v2139_v6  ;;  %v2140_v55 = vsub.f32 %v2120_v13, %v2139_v6 }
 0x43a   : > { %2363 = vmatpush.msra.mxu3 %v2286_v21  ;;  %v2613_v59 = vsub.f32 %v2611_v46, %v2612_v53 }
 0x43b   : > { %2194 = vmatmul.f32.vlgmr.msra.gmra.mxu0 %v2140_v55  ;;  %v2141_v22 = vand.u32 4294901760, %v2140_v55 }
 0x43c   : > { %2389 = vmatpush.msra.mxu0 %v2314_v33  ;;  %v2104_v34 = vpop.xlane.xlu1 %2103  ;;  %v2614_v52 = vand.u32 4294901760, %v2613_v59 }
 0x43d   : > { %6814 = vrcp.f32 %v2104_v34  ;;  %2218 = vmatmul.f32.vlgmr.msra.gmra.mxu1 %v2141_v22  ;;  %v2142_v38 = vsub.f32 %v2140_v55, %v2141_v22 }
 0x43e   : > { %2411 = vmatpush.msra.mxu1 %v2286_v21 }
 0x43f   : > { %v2143_v40 = vand.u32 4294901760, %v2142_v38 }
 0x441   : > { %2144 = vmatmul.f32.vlgmr.msra.gmra.mxu2 %v2143_v40  ;;  %2264 = vmatmul.f32.vlgmr.msrb.gmra.mxu3 %v2139_v6 }
 0x442   : > { %2340 = vmatpush.msra.mxu2 %v2313_v29  ;;  %2466 = vmatpush.msrb.mxu3 %v2465_v43 }
 0x443   : > { %v6815_v47 = vpop.eup %6814 }
 0x444   : > { %v2116_v45 = vmul.f32 %v6815_v47, %v7685_v18 }
 0x446   : > { %v2269_v50 = vsel %vm1454_vm7, %v2116_v45, 0 }
 0x447   : > { %v2288_v57 = vand.u32 4294901760, %v2269_v50 }
 0x448   : > { %v2107_v58 = vpop.xlane.xlu0 %2106 }
 0x449   : > { %6816 = vrcp.f32 %v2107_v58  ;;  %2242 = vmatmul.f32.vlgmr.msrb.gmra.mxu2 %v2139_v6  ;;  %v2289_v3 = vsub.f32 %v2269_v50, %v2288_v57  ;;  %2319 = vmatmul.f32.vlgmr.msrb.gmra.mxu1 %v2288_v57 }
 0x44a   : > { %2436 = vmatpush.msrb.mxu2 %v2435_v41  ;;  %2512 = vmatpush.msrb.mxu1 %v2435_v41 }
 0x44b   : > { %v2290_v7 = vand.u32 4294901760, %v2289_v3 }
 0x44d   : > { %2367 = vmatmul.f32.vlgmr.msra.gmra.mxu3 %v2290_v7  ;;  %v2291_v0 = vsub.f32 %v2289_v3, %v2290_v7 }
 0x44e   : > { %2560 = vmatpush.msra.mxu3 %v2435_v41 }
 0x44f   : > { %v6817_v4 = vpop.eup %6816  ;;  %v2292_v28 = vand.u32 4294901760, %v2291_v0 }
 0x450   : > { %v2117_v18 = vmul.f32 %v6817_v4, %v7689_v51 }
 0x451   : > { %2293 = vmatmul.f32.vlgmr.msrb.gmra.mxu0 %v2292_v28  ;;  %2343 = vmatmul.f32.vlgmr.msra.gmra.mxu2 %v2289_v3 }
 0x452   : > { %2413 = vmatmul.f32.vlgmr.msra.gmra.mxu1 %v2288_v57  ;;  %2489 = vmatpush.msrb.mxu0 %v2462_v23  ;;  %v2418_v12 = vsel %vm1454_vm7, %v2117_v18, 0 }
 0x453   : > { %2538 = vmatpush.msra.mxu2 %v2463_v1  ;;  %2615 = vmatpush.msra.mxu1 %v2614_v52  ;;  %v2437_v37 = vand.u32 4294901760, %v2418_v12 }
 0x455   : > { %v2438_v48 = vsub.f32 %v2418_v12, %v2437_v37  ;;  %2468 = vmatmul.f32.vlgmr.msrb.gmra.mxu3 %v2437_v37 }
 0x456   : > { %2661 = vmatpush.msrb.mxu3 %v2584_v44 }
 0x457   : > { %v2439_v61 = vand.u32 4294901760, %v2438_v48 }
 0x459   : > { %2391 = vmatmul.f32.vlgmr.msra.gmra.mxu0 %v2288_v57  ;;  %v2440_v16 = vsub.f32 %v2438_v48, %v2439_v61 }
 0x45a   : > { %2516 = vmatmul.f32.vlgmr.msrb.gmra.mxu1 %v2439_v61  ;;  %2585 = vmatpush.msra.mxu0 %v2584_v44 }
 0x45b   : > { %2709 = vmatpush.msrb.mxu1 %v2584_v44  ;;  %v2441_v51 = vand.u32 4294901760, %v2440_v16 }
 0x45d   : > { %2442 = vmatmul.f32.vlgmr.msrb.gmra.mxu2 %v2441_v51  ;;  %2562 = vmatmul.f32.vlgmr.msra.gmra.mxu3 %v2437_v37 }
 0x45e   : > { %2638 = vmatpush.msrb.mxu2 %v2611_v46 }
 0x461   : > { %2492 = vmatmul.f32.vlgmr.msrb.gmra.mxu0 %v2438_v48 }
 0x462   : > { %2687 = vmatpush.msrb.mxu0 %v2612_v53 }
 0x465   : > { %2540 = vmatmul.f32.vlgmr.msra.gmra.mxu2 %v2437_v37 }
 0x47a   : > { %v2110_v21 = vpop.xlane.xlu2 %2109 }
 0x47b   : > { %6818 = vrcp.f32 %v2110_v21 }
 0x481   : > { %v6819_v26 = vpop.eup %6818 }
 0x482   : > { %v2118_v29 = vmul.f32 %v6819_v26, %v7734_v56 }
 0x484   : > { %v2567_v30 = vsel %vm1454_vm7, %v2118_v29, 0 }
 0x485   : > { %v2586_v19 = vand.u32 4294901760, %v2567_v30 }
 0x487   : > { %2617 = vmatmul.f32.vlgmr.msra.gmra.mxu1 %v2586_v19  ;;  %v2587_v33 = vsub.f32 %v2567_v30, %v2586_v19 }
 0x489   : > { %2641 = vmatmul.f32.vlgmr.msrb.gmra.mxu2 %v2587_v33  ;;  %v2588_v32 = vand.u32 4294901760, %v2587_v33 }
 0x48b   : > { %2665 = vmatmul.f32.vlgmr.msrb.gmra.mxu3 %v2588_v32  ;;  %v2589_v39 = vsub.f32 %v2587_v33, %v2588_v32 }
 0x48d   : > { %v2590_v15 = vand.u32 4294901760, %v2589_v39 }
 0x48f   : > { %2591 = vmatmul.f32.vlgmr.msra.gmra.mxu0 %v2590_v15  ;;  %2711 = vmatmul.f32.vlgmr.msrb.gmra.mxu1 %v2586_v19 }
 0x497   : > { %2689 = vmatmul.f32.vlgmr.msrb.gmra.mxu0 %v2586_v19 }
 0x4b8   : > { %v2195_v41 = vpop.f32.mrf.mxu0 }
 0x4ba   : > { %v2219_v63 = vpop.f32.mrf.mxu1 }
 0x4bc   : > { %v2171_v35 = vpop.f32.mrf.mxu3 }
 0x4c4   : > { %v2145_v31 = vpop.f32.mrf.mxu2  ;;  %v2265_v23 = vpop.f32.mrf.mxu3 }
 0x4c5   : > { %v2172_v38 = vadd.f32 %v2171_v35, %v2145_v31 }
 0x4c6   : > { %v2320_v13 = vpop.f32.mrf.mxu1 }
 0x4c7   : > { %v2196_v44 = vadd.f32 %v2195_v41, %v2172_v38 }
 0x4c9   : > { %v2220_v57 = vadd.f32 %v2219_v63, %v2196_v44 }
 0x4cc   : > { %v2243_v5 = vpop.f32.mrf.mxu2 }
 0x4cd   : > { %v2244_v53 = vadd.f32 %v2243_v5, %v2220_v57 }
 0x4ce   : > { %v2294_v56 = vpop.f32.mrf.mxu0 }
 0x4cf   : > { %v2414_v22 = vpop.f32.mrf.mxu1  ;;  %v2321_v46 = vadd.f32 %v2320_v13, %v2294_v56  ;;  %v2266_v18 = vadd.f32 %v2265_v23, %v2244_v53 }
 0x4d0   : > { %v2368_v6 = vpop.f32.mrf.mxu3 }
 0x4d1   : > { %v2717_v16 = vrot.slane %v2266_v18, 4 }
 0x4d4   : > { %v2344_v1 = vpop.f32.mrf.mxu2 }
 0x4d5   : > { %v2345_v58 = vadd.f32 %v2344_v1, %v2321_v46 }
 0x4d6   : > { %v2392_v55 = vpop.f32.mrf.mxu0 }
 0x4d7   : > { %v2517_v45 = vpop.f32.mrf.mxu1  ;;  %v2369_v59 = vadd.f32 %v2368_v6, %v2345_v58 }
 0x4d8   : > { %v2469_v54 = vpop.f32.mrf.mxu3 }
 0x4d9   : > { %v2393_v48 = vadd.f32 %v2392_v55, %v2369_v59 }
 0x4db   : > { %v2415_v26 = vadd.f32 %v2414_v22, %v2393_v48 }
 0x4dd   : > { %v2729_v31 = vrot.slane %v2415_v26, 4 }
 0x4de   : > { %v2493_v43 = vpop.f32.mrf.mxu0 }
 0x4e0   : > { %v2443_v34 = vpop.f32.mrf.mxu2  ;;  %v2563_v0 = vpop.f32.mrf.mxu3 }
 0x4e1   : > { %v2470_v40 = vadd.f32 %v2469_v54, %v2443_v34 }
 0x4e3   : > { %v2494_v47 = vadd.f32 %v2493_v43, %v2470_v40 }
 0x4e5   : > { %v2518_v3 = vadd.f32 %v2517_v45, %v2494_v47 }
 0x4e8   : > { %v2541_v50 = vpop.f32.mrf.mxu2 }
 0x4e9   : > { %v2542_v7 = vadd.f32 %v2541_v50, %v2518_v3 }
 0x4eb   : > { %v2564_v52 = vadd.f32 %v2563_v0, %v2542_v7 }
 0x4ed   : > { %v2715_v51 = vrot.slane %v2564_v52, 4  ;;  %v2718_v29 = vsel %vm648_vm6, %v2564_v52, %v2717_v16 }
 0x4ee   : > { %v2726_v39 = vperm.slane %v2718_v29, %v7499_v11 }
 0x4ef   : > { %v2716_v33 = vsel %vm648_vm6, %v2715_v51, %v2266_v18 }
 0x4f0   : > { %v2722_v41 = vperm.slane %v2716_v33, %v7499_v11  ;;  %v2753_v23 = vrot.slane %v2726_v39, 4 }
 0x4f2   : > { %v2741_v6 = vrot.slane %v2722_v41, 4 }
 0x504   : > { %v2618_v4 = vpop.f32.mrf.mxu1 }
 0x50c   : > { %v2592_v28 = vpop.f32.mrf.mxu0  ;;  %v2642_v37 = vpop.f32.mrf.mxu2 }
 0x50d   : > { %v2619_v12 = vadd.f32 %v2618_v4, %v2592_v28  ;;  %v2712_v15 = vpop.f32.mrf.mxu1 }
 0x50e   : > { %v2666_v21 = vpop.f32.mrf.mxu3 }
 0x50f   : > { %v2643_v61 = vadd.f32 %v2642_v37, %v2619_v12 }
 0x511   : > { %v2667_v30 = vadd.f32 %v2666_v21, %v2643_v61 }
 0x514   : > { %v2690_v19 = vpop.f32.mrf.mxu0 }
 0x515   : > { %v2691_v32 = vadd.f32 %v2690_v19, %v2667_v30 }
 0x517   : > { %v2713_v35 = vadd.f32 %v2712_v15, %v2691_v32 }
 0x519   : > { %v2727_v63 = vrot.slane %v2713_v35, 4  ;;  %v2730_v5 = vsel %vm648_vm6, %v2713_v35, %v2729_v31 }
 0x51a   : > { %v2738_v56 = vperm.slane %v2730_v5, %v7499_v11 }
 0x51b   : > { %v2728_v13 = vsel %vm648_vm6, %v2727_v63, %v2415_v26 }
 0x51c   : > { %v2734_v1 = vperm.slane %v2728_v13, %v7499_v11  ;;  %v2751_v55 = vrot.slane %v2738_v56, 4  ;;  %v2754_v22 = vsel %vm648_vm6, %v2738_v56, %v2753_v23 }
 0x51d   : > { %v2762_v34 = vperm.slane %v2754_v22, %v7512_v9 }
 0x51e   : > { %v2739_v54 = vrot.slane %v2734_v1, 4  ;;  %v2742_v38 = vsel %vm648_vm6, %v2734_v1, %v2741_v6  ;;  %v2752_v40 = vsel %vm648_vm6, %v2751_v55, %v2726_v39  ;;  %v2844_v55 = vld [vmem:[%s8581_s3 + $0x18] sm:$0xff] }
 0x51f   : > { %v2750_v43 = vperm.slane %v2742_v38, %v7512_v9  ;;  %v2758_v44 = vperm.slane %v2752_v40, %v7512_v9  ;;  %v2769_v47 = vrot.slane %v2762_v34, 4  ;;  %v2860_v22 = vand.u32 4294901760, %v2844_v55  ;;  %v2843_v34 = vld [vmem:[%s8581_s3 + $0x10] sm:$0xff]  ;;  %v2842_v40 = vld [vmem:[%s8581_s3 + $0x8] sm:$0xff] }
 0x520   : > { %v2740_v45 = vsel %vm648_vm6, %v2739_v54, %v2722_v41  ;;  %v2862_v38 = vand.u32 4294901760, %v2843_v34 }
 0x521   : > { %v2746_v46 = vperm.slane %v2740_v45, %v7512_v9  ;;  %v2765_v50 = vrot.slane %v2750_v43, 4  ;;  %v2767_v57 = vrot.slane %v2758_v44, 4  ;;  %v2770_v58 = vsel %vm648_vm6, 0.0, %v2769_v47  ;;  %2961 = vmatpush.msra.mxu1 %v2860_v22  ;;  %2861 = vmatpush.msra.mxu2 %v2860_v22  ;;  %v2841_v45 = vld [vmem:[%s8581_s3] sm:$0xff] }
 0x522   : > { %v2787_v3 = vrot.slane %v2770_v58, 4  ;;  %v2782_v53 = vsel %vm648_vm6, %v2769_v47, %v2758_v44  ;;  %v2890_v54 = vsub.f32 %v2844_v55, %v2860_v22  ;;  %v2896_v44 = vsub.f32 %v2843_v34, %v2862_v38 }
 0x523   : > { %v2763_v7 = vrot.slane %v2746_v46, 4  ;;  %v2766_v0 = vsel %vm648_vm6, 0.0, %v2765_v50  ;;  %v2768_v59 = vsel %vm648_vm6, 0.0, %v2767_v57  ;;  %v2771_v4 = vsel %vm648_vm6, %v2765_v50, %v2746_v46  ;;  %2963 = vmatpush.msra.mxu1 %v2862_v38  ;;  %2863 = vmatpush.msra.mxu2 %v2862_v38 }
 0x524   : > { %v2775_v28 = vperm.slane %v2771_v4, %v7499_v11  ;;  %v2776_v18 = vrot.slane %v2766_v0, 4  ;;  %v2786_v52 = vperm.slane %v2782_v53, %v7499_v11  ;;  %v2788_v12 = vsel %vm648_vm6, %v2787_v3, %v2768_v59  ;;  %2932 = vmatpush.msra.mxu0 %v2890_v54 }
 0x525   : > { %v2764_v37 = vsel %vm648_vm6, 0.0, %v2763_v7  ;;  %v2792_v48 = vperm.slane %v2788_v12, %v7499_v11  ;;  %v2891_v43 = vand.u32 4294901760, %v2890_v54  ;;  %v2864_v47 = vand.u32 4294901760, %v2842_v40 }
 0x526   : > { %v2777_v61 = vsel %vm648_vm6, %v2776_v18, %v2764_v37  ;;  %v2795_v16 = vrot.slane %v2775_v28, 4  ;;  %v2807_v51 = vrot.slane %v2786_v52, 4  ;;  %v2897_v50 = vand.u32 4294901760, %v2896_v44  ;;  %2935 = vmatpush.msra.mxu0 %v2896_v44 }
 0x527   : > { %v2781_v21 = vperm.slane %v2777_v61, %v7499_v11  ;;  %v2805_v26 = vrot.slane %v2792_v48, 4  ;;  %v2892_v46 = vsub.f32 %v2890_v54, %v2891_v43  ;;  %v2902_v57 = vsub.f32 %v2842_v40, %v2864_v47  ;;  %2965 = vmatpush.msra.mxu1 %v2864_v47  ;;  %2865 = vmatpush.msra.mxu2 %v2864_v47 }
 0x528   : > { %v2808_v29 = vsel %vm648_vm6, %v2792_v48, %v2807_v51  ;;  %v2866_v58 = vand.u32 4294901760, %v2841_v45  ;;  %v2898_v53 = vsub.f32 %v2896_v44, %v2897_v50 }
 0x529   : > { %v2796_v30 = vsel %vm648_vm6, %v2781_v21, %v2795_v16  ;;  %v2816_v19 = vperm.slane %v2808_v29, %v7512_v9  ;;  %v2793_v33 = vrot.slane %v2781_v21, 4  ;;  %v2806_v32 = vsel %vm648_vm6, %v2805_v26, %v2786_v52  ;;  %2938 = vmatpush.msra.mxu0 %v2902_v57 }
 0x52a   : > { %v2804_v39 = vperm.slane %v2796_v30, %v7512_v9  ;;  %v2812_v15 = vperm.slane %v2806_v32, %v7512_v9  ;;  %v2893_v3 = vand.u32 4294901760, %v2892_v46  ;;  %v2903_v7 = vand.u32 4294901760, %v2902_v57  ;;  %2967 = vmatpush.msra.mxu1 %v2866_v58  ;;  %2867 = vmatpush.msra.mxu2 %v2866_v58  ;;  %v3065_v46 = vld [vmem:[%s8582_s4 + $0x18] sm:$0xff] }
 0x52b   : > { %v2821_v31 = vrot.slane %v2816_v19, 4  ;;  %v2794_v35 = vsel %vm648_vm6, %v2793_v33, %v2775_v28  ;;  %v2908_v0 = vsub.f32 %v2841_v45, %v2866_v58  ;;  %v2899_v59 = vand.u32 4294901760, %v2898_v53  ;;  %v3063_v53 = vld [vmem:[%s8582_s4 + $0x8] sm:$0xff] }
 0x52c   : > { %v2823_v41 = vrot.slane %v2804_v39, 4  ;;  %v2800_v63 = vperm.slane %v2794_v35, %v7512_v9  ;;  %v2817_v5 = vrot.slane %v2812_v15, 4  ;;  %2894 = vmatpush.msra.mxu3 %v2893_v3  ;;  %v2904_v4 = vsub.f32 %v2902_v57, %v2903_v7  ;;  %2990 = vmatpush.msrb.mxu2 %v2891_v43  ;;  %v3064_v57 = vld [vmem:[%s8582_s4 + $0x10] sm:$0xff] }
 0x52d   : > { %v2822_v23 = vsel %vm648_vm6, %v2821_v31, %v2804_v39  ;;  %v2909_v28 = vand.u32 4294901760, %v2908_v0  ;;  %2941 = vmatpush.msra.mxu0 %v2908_v0  ;;  %v3084_v3 = vand.u32 4294901760, %v3064_v57 }
 0x52e   : > { %2830 = vrot.lane.b32.xlu0 %v2822_v23, %s8592_s17  ;;  %v2824_v56 = vsel %vm648_vm6, %v2816_v19, %v2823_v41  ;;  %v2819_v13 = vrot.slane %v2800_v63, 4  ;;  %v2818_v6 = vsel %vm648_vm6, %v2817_v5, %v2800_v63  ;;  %2900 = vmatpush.msra.mxu3 %v2899_v59  ;;  %v2905_v18 = vand.u32 4294901760, %v2904_v4 }
 0x52f   : > { %2834 = vrot.lane.b32.xlu2 %v2824_v56, %s8594_s22  ;;  %v2910_v52 = vsub.f32 %v2908_v0, %v2909_v28  ;;  %2994 = vmatpush.msrb.mxu2 %v2897_v50  ;;  %v3082_v50 = vand.u32 4294901760, %v3065_v46  ;;  %v3118_v59 = vsub.f32 %v3064_v57, %v3084_v3  ;;  %v3086_v4 = vand.u32 4294901760, %v3063_v53 }
 0x530   : > { %v2820_v1 = vsel %vm648_vm6, %v2812_v15, %v2819_v13  ;;  %2906 = vmatpush.msra.mxu3 %v2905_v18 }
 0x531   : > { %2826 = vrot.lane.b32.xlu1 %v2820_v1, %s8595_s29  ;;  %v2911_v12 = vand.u32 4294901760, %v2910_v52  ;;  %2998 = vmatpush.msrb.mxu2 %v2903_v7  ;;  %v7805_v1 = vld [vmem:[#allocation7] sm:$0xff]  ;;  %v3119_v52 = vand.u32 4294901760, %v3118_v59 }
 0x532   : > { %v3034_v55 = vperm.slane %v7805_v1, 4  ;;  %3083 = vmatpush.msrb.mxu0 %v3082_v50  ;;  %v3062_v7 = vld [vmem:[%s8582_s4] sm:$0xff] }
 0x533   : > { %2912 = vmatpush.msra.mxu3 %v2911_v12  ;;  %3002 = vmatpush.msrb.mxu2 %v2909_v28  ;;  %v3088_v28 = vand.u32 4294901760, %v3062_v7  ;;  %v3124_v12 = vsub.f32 %v3063_v53, %v3086_v4 }
 0x534   : > { %3085 = vmatpush.msrb.mxu0 %v3084_v3 }
 0x535   : > { %3021 = vmatpush.msrb.mxu3 %v2860_v22  ;;  %v6844_v22 = vld [vmem:[%s299_s12] sm:$0xff] }
 0x536   : > { %3087 = vmatpush.msrb.mxu0 %v3086_v4 }
 0x537   : > { %3023 = vmatpush.msrb.mxu3 %v2862_v38 }
 0x538   : > { %3089 = vmatpush.msrb.mxu0 %v3088_v28 }
 0x539   : > { %3025 = vmatpush.msrb.mxu3 %v2864_v47 }
 0x53b   : > { %3027 = vmatpush.msrb.mxu3 %v2866_v58  ;;  %v3112_v58 = vsub.f32 %v3065_v46, %v3082_v50 }
 0x53d   : > { %v3113_v0 = vand.u32 4294901760, %v3112_v58 }
 0x53f   : > { %v3114_v18 = vsub.f32 %v3112_v58, %v3113_v0 }
 0x589   : > { %v2835_v16 = vpop.permute.xlu2 %2834 }
 0x5a0   : > { %v2831_v48 = vpop.permute.xlu0 %2830 }
 0x5a3   : > { %v2827_v37 = vpop.permute.xlu1 %2826 }
 0x5a4   : > { %v2837_v61 = vsel %vm1454_vm7, %v2818_v6, %v2827_v37  ;;  %v3130_v37 = vsub.f32 %v3062_v7, %v3088_v28 }
 0x5a5   : > { %v2838_v51 = vsel %vm1097_vm2, %v2837_v61, %v2831_v48  ;;  %v3115_v48 = vand.u32 4294901760, %v3114_v18  ;;  %v3120_v61 = vsub.f32 %v3118_v59, %v3119_v52  ;;  %v3261_v18 = vld [vmem:[%s8583_s5 + $0x28] sm:$0xff] }
 0x5a6   : > { %v2840_v21 = vsel %vm2839_vm8, %v2838_v51, %v2835_v16  ;;  %v3125_v16 = vand.u32 4294901760, %v3124_v12  ;;  %v3131_v51 = vand.u32 4294901760, %v3130_v37 }
 0x5a7   : > { %v2846_v26 = vsel %vm387_vm0, %v2840_v21, 0  ;;  %3116 = vmatpush.msrb.mxu1 %v3115_v48 }
 0x5a8   : > { %v2868_v29 = vand.u32 4294901760, %v2846_v26 }
 0x5aa   : > { %2914 = vmatmul.f32.vlgmr.msra.gmra.mxu3 %v2868_v29  ;;  %v2869_v30 = vsub.f32 %v2846_v26, %v2868_v29  ;;  %v3121_v26 = vand.u32 4294901760, %v3120_v61  ;;  %v3259_v61 = vld [vmem:[%s8583_s5 + $0x18] sm:$0xff] }
 0x5ab   : > { %3183 = vmatpush.msra.mxu3 %v3082_v50 }
 0x5ac   : > { %2944 = vmatmul.f32.vlgmr.msra.gmra.mxu0 %v2869_v30  ;;  %v2870_v19 = vand.u32 4294901760, %v2869_v30  ;;  %3122 = vmatpush.msrb.mxu1 %v3121_v26 }
 0x5ad   : > { %3185 = vmatpush.msra.mxu3 %v3084_v3  ;;  %3212 = vmatpush.msra.mxu0 %v3113_v0 }
 0x5ae   : > { %2971 = vmatmul.f32.vlgmr.msra.gmra.mxu1 %v2870_v19  ;;  %v2871_v33 = vsub.f32 %v2869_v30, %v2870_v19  ;;  %v3132_v30 = vsub.f32 %v3130_v37, %v3131_v51 }
 0x5af   : > { %3187 = vmatpush.msra.mxu3 %v3086_v4  ;;  %3216 = vmatpush.msra.mxu0 %v3119_v52  ;;  %v7871_v52 = vand.u32 4294901760, %v3261_v18 }
 0x5b0   : > { %v2872_v32 = vand.u32 4294901760, %v2871_v33 }
 0x5b1   : > { %3189 = vmatpush.msra.mxu3 %v3088_v28  ;;  %3220 = vmatpush.msra.mxu0 %v3125_v16 }
 0x5b2   : > { %2873 = vmatmul.f32.vlgmr.msra.gmra.mxu2 %v2872_v32  ;;  %3029 = vmatmul.f32.vlgmr.msrb.gmra.mxu3 %v2868_v29  ;;  %v3133_v32 = vand.u32 4294901760, %v3132_v30 }
 0x5b3   : > { %3154 = vmatpush.msra.mxu2 %v3112_v58  ;;  %3224 = vmatpush.msra.mxu0 %v3131_v51  ;;  %v7887_v51 = vand.u32 4294901760, %v3259_v61 }
 0x5b5   : > { %3157 = vmatpush.msra.mxu2 %v3118_v59  ;;  %v3334_v30 = vsub.f32 %v3259_v61, %v7887_v51 }
 0x5b7   : > { %3160 = vmatpush.msra.mxu2 %v3124_v12 }
 0x5b9   : > { %3163 = vmatpush.msra.mxu2 %v3130_v37  ;;  %v3322_v37 = vsub.f32 %v3261_v18, %v7871_v52 }
 0x5ba   : > { %3004 = vmatmul.f32.vlgmr.msrb.gmra.mxu2 %v2868_v29  ;;  %v3126_v29 = vsub.f32 %v3124_v12, %v3125_v16  ;;  %v3260_v12 = vld [vmem:[%s8583_s5 + $0x20] sm:$0xff]  ;;  %v3258_v16 = vld [vmem:[%s8583_s5 + $0x10] sm:$0xff] }
 0x5bb   : > { %v7877_v48 = vand.u32 4294901760, %v3260_v12  ;;  %v3323_v26 = vand.u32 4294901760, %v3322_v37 }
 0x5bc   : > { %v3127_v33 = vand.u32 4294901760, %v3126_v29 }
 0x5bd   : > { %v3328_v29 = vsub.f32 %v3260_v12, %v7877_v48 }
 0x5be   : > { %3128 = vmatpush.msrb.mxu1 %v3127_v33  ;;  %v3324_v33 = vsub.f32 %v3322_v37, %v3323_v26 }
 0x5c0   : > { %3134 = vmatpush.msrb.mxu1 %v3133_v32  ;;  %v3329_v32 = vand.u32 4294901760, %v3328_v29 }
 0x5c2   : > { %3243 = vmatpush.msra.mxu1 %v3082_v50 }
 0x5c4   : > { %3245 = vmatpush.msra.mxu1 %v3084_v3 }
 0x5c6   : > { %3247 = vmatpush.msra.mxu1 %v3086_v4 }
 0x5c8   : > { %3249 = vmatpush.msra.mxu1 %v3088_v28 }
 0x629   : > { %v2945_v35 = vpop.f32.mrf.mxu0 }
 0x62b   : > { %v2972_v63 = vpop.f32.mrf.mxu1 }
 0x62d   : > { %v2915_v39 = vpop.f32.mrf.mxu3 }
 0x635   : > { %v2874_v15 = vpop.f32.mrf.mxu2  ;;  %v3030_v13 = vpop.f32.mrf.mxu3 }
 0x636   : > { %v2916_v31 = vadd.f32 %v2915_v39, %v2874_v15 }
 0x638   : > { %v2946_v41 = vadd.f32 %v2945_v35, %v2916_v31 }
 0x63a   : > { %v2973_v5 = vadd.f32 %v2972_v63, %v2946_v41  ;;  %v3263_v63 = vld [vmem:[%s8583_s5 + $0x38] sm:$0xff] }
 0x63d   : > { %v3005_v23 = vpop.f32.mrf.mxu2 }
 0x63e   : > { %v3006_v56 = vadd.f32 %v3005_v23, %v2973_v5  ;;  %v3262_v5 = vld [vmem:[%s8583_s5 + $0x30] sm:$0xff]  ;;  %v7840_v23 = vand.u32 4294901760, %v3263_v63 }
 0x640   : > { %v3031_v6 = vadd.f32 %v3030_v13, %v3006_v56  ;;  %v7842_v56 = vand.u32 4294901760, %v3262_v5  ;;  %3277 = vmatpush.msrb.mxu2 %v7840_v23 }
 0x642   : > { %v3033_v34 = vadd.f32 %v6844_v22, %v3031_v6  ;;  %v7845_v6 = vsub.f32 %v3263_v63, %v7840_v23  ;;  %3279 = vmatpush.msrb.mxu2 %v7842_v56 }
 0x644   : > { %v7810_v54 = vadd.f32 %v3034_v55, %v3033_v34  ;;  %v7848_v55 = vsub.f32 %v3262_v5, %v7842_v56  ;;  %v3058_v34 = vperm.slane %v7805_v1, 2  ;;  %3281 = vmatpush.msrb.mxu2 %v7871_v52 }
 0x646   : > { %v3036_v38 = vsel %vm387_vm0, %v7810_v54, 0.0  ;;  %3283 = vmatpush.msrb.mxu2 %v7877_v48 }
 0x647   : > { %3037 = vadd.xlane.f32.xlu0 %v3036_v38  ;;  %v3311_v38 = vand.u32 4294901760, %v7845_v6 }
 0x648   : > { %3285 = vmatpush.msrb.mxu2 %v7887_v51 }
 0x649   : > { %v3312_v46 = vsub.f32 %v7845_v6, %v3311_v38 }
 0x64b   : > { %v3313_v58 = vand.u32 4294901760, %v3312_v46 }
 0x64d   : > { %3314 = vmatpush.msrb.mxu3 %v3313_v58 }
 0x6ba   : > { %v3038_v40 = vpop.xlane.xlu0 %3037 }
 0x6bb   : > { %v3039_v43 = vmul.f32 %v3038_v40, %v7219_v24  ;;  %v3317_v40 = vand.u32 4294901760, %v7848_v55 }
 0x6bd   : > { %v7816_v44 = vsub.f32 %v7810_v54, %v3039_v43  ;;  %v3318_v50 = vsub.f32 %v7848_v55, %v3317_v40 }
 0x6bf   : > { %v3041_v47 = vmul.f32 %v7816_v44, %v7816_v44  ;;  %v3319_v3 = vand.u32 4294901760, %v3318_v50 }
 0x6c1   : > { %v3042_v45 = vsel %vm387_vm0, %v3041_v47, 0.0  ;;  %3320 = vmatpush.msrb.mxu3 %v3319_v3 }
 0x6c2   : > { %3043 = vadd.xlane.f32.xlu1 %v3042_v45  ;;  %v3060_v45 = vperm.slane %v7805_v1, 3 }
 0x735   : > { %v3044_v21 = vpop.xlane.xlu1 %3043 }
 0x736   : > { %v3045_v19 = vmul.f32 %v3044_v21, %v7219_v24  ;;  %v7889_v21 = vand.u32 4294901760, %v3258_v16 }
 0x738   : > { %v3046_v39 = vadd.f32 1e-05, %v3045_v19  ;;  %v3340_v19 = vsub.f32 %v3258_v16, %v7889_v21  ;;  %3287 = vmatpush.msrb.mxu2 %v7889_v21 }
 0x73a   : > { %6820 = vrsqrt.f32 %v3046_v39  ;;  %vm3053_vm10 = vweird.f32 %v3046_v39 }
 0x740   : > { %v6821_v15 = vpop.eup %6820 }
 0x741   : > { %v3048_v31 = vmul.f32 %v6821_v15, %v3046_v39  ;;  %vm3054_vm9 = vweird.f32 %v6821_v15  ;;  %v3335_v39 = vand.u32 4294901760, %v3334_v30 }
 0x742   : > { %vm3055_vm11 = vmor %vm3053_vm10, %vm3054_vm9 }
 0x743   : > { %v3049_v35 = vmul.f32 %v6821_v15, %v3048_v31  ;;  %v3257_v31 = vld [vmem:[%s8583_s5 + $0x8] sm:$0xff]  ;;  %v3336_v5 = vsub.f32 %v3334_v30, %v3335_v39 }
 0x744   : > { %v3288_v63 = vand.u32 4294901760, %v3257_v31 }
 0x745   : > { %v3050_v41 = vmul.f32 0.5, %v3049_v35  ;;  %v3325_v35 = vand.u32 4294901760, %v3324_v33 }
 0x746   : > { %3289 = vmatpush.msrb.mxu2 %v3288_v63 }
 0x747   : > { %v3051_v13 = vsub.f32 1.5, %v3050_v41  ;;  %v3330_v41 = vsub.f32 %v3328_v29, %v3329_v32  ;;  %3326 = vmatpush.msrb.mxu3 %v3325_v35 }
 0x749   : > { %v3052_v22 = vmul.f32 %v6821_v15, %v3051_v13 }
 0x74b   : > { %v3056_v43 = vsel %vm3055_vm11, %v6821_v15, %v3052_v22  ;;  %v3341_v15 = vand.u32 4294901760, %v3340_v19  ;;  %v3256_v22 = vld [vmem:[%s8583_s5] sm:$0xff] }
 0x74c   : > { %v3057_v47 = vmul.f32 %v3056_v43, %v7816_v44  ;;  %v3346_v43 = vsub.f32 %v3257_v31, %v3288_v63 }
 0x74d   : > { %v3342_v13 = vsub.f32 %v3340_v19, %v3341_v15 }
 0x74e   : > { %v3059_v57 = vmul.f32 %v3058_v34, %v3057_v47  ;;  %v3331_v34 = vand.u32 4294901760, %v3330_v41  ;;  %v3290_v47 = vand.u32 4294901760, %v3256_v22  ;;  %v3347_v50 = vand.u32 4294901760, %v3346_v43 }
 0x74f   : > { %v3343_v46 = vand.u32 4294901760, %v3342_v13 }
 0x750   : > { %v3061_v53 = vadd.f32 %v3060_v45, %v3059_v57  ;;  %v3337_v45 = vand.u32 4294901760, %v3336_v5  ;;  %3332 = vmatpush.msrb.mxu3 %v3331_v34  ;;  %v3352_v57 = vsub.f32 %v3256_v22, %v3290_v47  ;;  %3291 = vmatpush.msrb.mxu2 %v3290_v47  ;;  %v3348_v58 = vsub.f32 %v3346_v43, %v3347_v50 }
 0x752   : > { %v3068_v7 = vsel %vm387_vm0, %v3061_v53, 0  ;;  %3338 = vmatpush.msrb.mxu3 %v3337_v45  ;;  %v3353_v3 = vand.u32 4294901760, %v3352_v57  ;;  %v3349_v53 = vand.u32 4294901760, %v3348_v58  ;;  %v4138_v45 = vmax.f32 %v7373_v2, 0.0 }
 0x753   : > { %v3090_v0 = vand.u32 4294901760, %v3068_v7  ;;  %v4137_v2 = vmax.f32 %v7303_v36, 0.0 }
 0x754   : > { %3344 = vmatpush.msrb.mxu3 %v3343_v46  ;;  %v4160_v58 = vsel %vm1097_vm2, %v4138_v45, 0 }
 0x755   : > { %3136 = vmatmul.f32.vlgmr.msrb.gmra.mxu1 %v3090_v0  ;;  %v3091_v44 = vsub.f32 %v3068_v7, %v3090_v0  ;;  %v3354_v7 = vsub.f32 %v3352_v57, %v3353_v3  ;;  %v4157_v36 = vsel %vm1097_vm2, %v4137_v2, 0  ;;  %v3506_v2 = vperm.slane %v7805_v1, 5 }
 0x756   : > { %3409 = vmatpush.msrb.mxu1 %v7840_v23  ;;  %3350 = vmatpush.msrb.mxu3 %v3349_v53 }
 0x757   : > { %3166 = vmatmul.f32.vlgmr.msra.gmra.mxu2 %v3091_v44  ;;  %v3092_v59 = vand.u32 4294901760, %v3091_v44 }
 0x758   : > { %3411 = vmatpush.msrb.mxu1 %v7842_v56  ;;  %3442 = vmatpush.msra.mxu2 %v3311_v38  ;;  %v6684_v38 = vld [vmem:[%s8580_s2 + $0x28] sm:$0xff] }
 0x759   : > { %3193 = vmatmul.f32.vlgmr.msra.gmra.mxu3 %v3092_v59  ;;  %v3093_v4 = vsub.f32 %v3091_v44, %v3092_v59  ;;  %v6683_v44 = vld [vmem:[%s8580_s2 + $0x20] sm:$0xff] }
 0x75a   : > { %3413 = vmatpush.msrb.mxu1 %v7871_v52  ;;  %3446 = vmatpush.msra.mxu2 %v3317_v40  ;;  %v7930_v40 = vand.u32 4294901760, %v6684_v38  ;;  %v7936_v59 = vand.u32 4294901760, %v6683_v44 }
 0x75b   : > { %v3094_v28 = vand.u32 4294901760, %v3093_v4  ;;  %v3066_v4 = vperm.slane %v7805_v1, 6 }
 0x75c   : > { %3415 = vmatpush.msrb.mxu1 %v7877_v48  ;;  %3450 = vmatpush.msra.mxu2 %v3323_v26  ;;  %v7957_v13 = vsub.f32 %v6684_v38, %v7930_v40 }
 0x75d   : > { %3095 = vmatmul.f32.vlgmr.msrb.gmra.mxu0 %v3094_v28  ;;  %3251 = vmatmul.f32.vlgmr.msra.gmra.mxu1 %v3090_v0 }
 0x75e   : > { %3372 = vmatpush.msrb.mxu0 %v7845_v6  ;;  %3417 = vmatpush.msrb.mxu1 %v7887_v51  ;;  %v6686_v6 = vld [vmem:[%s8580_s2 + $0x38] sm:$0xff]  ;;  %v3600_v46 = vand.u32 4294901760, %v7957_v13 }
 0x75f   : > { %3454 = vmatpush.msra.mxu2 %v3329_v32  ;;  %v4140_v32 = vmax.f32 %v7295_v25, 0.0  ;;  %v4139_v25 = vmax.f32 %v7297_v27, 0.0  ;;  %v7965_v27 = vsub.f32 %v6683_v44, %v7936_v59 }
 0x760   : > { %3375 = vmatpush.msrb.mxu0 %v7848_v55  ;;  %3419 = vmatpush.msrb.mxu1 %v7889_v21  ;;  %v7918_v55 = vand.u32 4294901760, %v6686_v6 }
 0x761   : > { %3458 = vmatpush.msra.mxu2 %v3335_v39  ;;  %v4166_v41 = vsel %vm1097_vm2, %v4140_v32, 0 }
 0x762   : > { %3378 = vmatpush.msrb.mxu0 %v3322_v37  ;;  %3421 = vmatpush.msrb.mxu1 %v3288_v63  ;;  %v7960_v34 = vand.u32 4294901760, %v4166_v41 }
 0x763   : > { %3462 = vmatpush.msra.mxu2 %v3341_v15  ;;  %v7944_v15 = vsub.f32 %v6686_v6, %v7918_v55 }
 0x764   : > { %3381 = vmatpush.msrb.mxu0 %v3328_v29  ;;  %3423 = vmatpush.msrb.mxu1 %v3290_v47  ;;  %v7988_v53 = vsub.f32 %v4166_v41, %v7960_v34 }
 0x765   : > { %3226 = vmatmul.f32.vlgmr.msra.gmra.mxu0 %v3090_v0  ;;  %v3355_v0 = vand.u32 4294901760, %v3354_v7  ;;  %3466 = vmatpush.msra.mxu2 %v3347_v50  ;;  %v3588_v5 = vand.u32 4294901760, %v7944_v15  ;;  %v4136_v7 = vmax.f32 %v7325_v8, 0.0  ;;  %v8003_v8 = vand.u32 4294901760, %v4157_v36 }
 0x766   : > { %3384 = vmatpush.msrb.mxu0 %v3334_v30 }
 0x767   : > { %3356 = vmatpush.msrb.mxu3 %v3355_v0  ;;  %3470 = vmatpush.msra.mxu2 %v3353_v3  ;;  %v4100_v3 = vmul.f32 %v7237_v49, %v7330_v10  ;;  %v7993_v0 = vand.u32 4294901760, %v4160_v58  ;;  %v4118_v10 = vmul.f32 %v7285_v14, %v7354_v60  ;;  %v4154_v38 = vsel %vm1097_vm2, %v4136_v7, 0 }
 0x768   : > { %3387 = vmatpush.msrb.mxu0 %v3340_v19  ;;  %v3589_v1 = vsub.f32 %v7944_v15, %v3588_v5 }
 0x769   : > { %3485 = vmatpush.msra.mxu3 %v7840_v23  ;;  %v6685_v23 = vld [vmem:[%s8580_s2 + $0x30] sm:$0xff]  ;;  %v4109_v6 = vadd.f32 %v7264_v62, %v4100_v3 }
 0x76a   : > { %3390 = vmatpush.msrb.mxu0 %v3346_v43 }
 0x76b   : > { %3487 = vmatpush.msra.mxu3 %v7842_v56  ;;  %v7924_v56 = vand.u32 4294901760, %v6685_v23 }
 0x76c   : > { %3393 = vmatpush.msrb.mxu0 %v3352_v57  ;;  %v3606_v57 = vand.u32 4294901760, %v7965_v27 }
 0x76d   : > { %3489 = vmatpush.msra.mxu3 %v7871_v52  ;;  %v7949_v35 = vsub.f32 %v6685_v23, %v7924_v56  ;;  %v4099_v23 = vmul.f32 %v7237_v49, %v7359_v42  ;;  %v4117_v49 = vmul.f32 %v7285_v14, %v7387_v20  ;;  %v8015_v42 = vand.u32 4294901760, %v4154_v38 }
 0x76e   : > { %3558 = vmatpush.msra.mxu0 %v7918_v55  ;;  %v8026_v14 = vsub.f32 %v4157_v36, %v8003_v8 }
 0x76f   : > { %3491 = vmatpush.msra.mxu3 %v7877_v48  ;;  %v3594_v43 = vand.u32 4294901760, %v7949_v35  ;;  %v4108_v60 = vadd.f32 %v7264_v62, %v4099_v23 }
 0x770   : > { %3560 = vmatpush.msra.mxu0 %v7924_v56 }
 0x771   : > { %3493 = vmatpush.msra.mxu3 %v7887_v51 }
 0x772   : > { %3562 = vmatpush.msra.mxu0 %v7930_v40 }
 0x773   : > { %3495 = vmatpush.msra.mxu3 %v7889_v21 }
 0x774   : > { %3564 = vmatpush.msra.mxu0 %v7936_v59 }
 0x775   : > { %3497 = vmatpush.msra.mxu3 %v3288_v63 }
 0x777   : > { %3499 = vmatpush.msra.mxu3 %v3290_v47  ;;  %v4163_v47 = vsel %vm1097_vm2, %v4139_v25, 0 }
 0x778   : > { %v7975_v50 = vand.u32 4294901760, %v4163_v47 }
 0x77a   : > { %v8007_v44 = vsub.f32 %v4163_v47, %v7975_v50 }
 0x7d2   : > { %v3137_v28 = vpop.f32.mrf.mxu1 }
 0x7da   : > { %v3096_v18 = vpop.f32.mrf.mxu0  ;;  %v3167_v37 = vpop.f32.mrf.mxu2 }
 0x7db   : > { %v3097_v52 = vadd.f32 %v3096_v18, %v3066_v4  ;;  %v3252_v26 = vpop.f32.mrf.mxu1  ;;  %v4135_v4 = vmax.f32 %v7335_v17, 0.0  ;;  %v8018_v18 = vsub.f32 %v4160_v58, %v7993_v0 }
 0x7dc   : > { %v3194_v61 = vpop.f32.mrf.mxu3 }
 0x7dd   : > { %v3138_v12 = vadd.f32 %v3137_v28, %v3097_v52  ;;  %v4126_v28 = vadd.f32 %v4118_v10, %v4109_v6  ;;  %v4151_v52 = vsel %vm1097_vm2, %v4135_v4, 0  ;;  %v3595_v4 = vsub.f32 %v7949_v35, %v3594_v43 }
 0x7de   : > { %v8023_v17 = vand.u32 4294901760, %v4151_v52 }
 0x7df   : > { %v3168_v48 = vadd.f32 %v3167_v37, %v3138_v12  ;;  %v4134_v12 = vmax.f32 %v4126_v28, 0.0  ;;  %v4125_v37 = vadd.f32 %v4117_v49, %v4108_v60  ;;  %v3596_v28 = vand.u32 4294901760, %v3595_v4 }
 0x7e0   : > { %v3601_v60 = vsub.f32 %v7957_v13, %v3600_v46  ;;  %v3607_v49 = vsub.f32 %v7965_v27, %v3606_v57 }
 0x7e1   : > { %v3195_v16 = vadd.f32 %v3194_v61, %v3168_v48  ;;  %v4148_v20 = vsel %vm1097_vm2, %v4134_v12, 0  ;;  %v4133_v48 = vmax.f32 %v4125_v37, 0.0 }
 0x7e2   : > { %v3227_v51 = vpop.f32.mrf.mxu0  ;;  %v8031_v61 = vand.u32 4294901760, %v4148_v20  ;;  %v3608_v12 = vand.u32 4294901760, %v3607_v49 }
 0x7e3   : > { %v3228_v21 = vadd.f32 %v3227_v51, %v3195_v16  ;;  %v8034_v16 = vsub.f32 %v4154_v38, %v8015_v42  ;;  %v4145_v51 = vsel %vm1097_vm2, %v4133_v48, 0 }
 0x7e5   : > { %v3253_v29 = vadd.f32 %v3252_v26, %v3228_v21  ;;  %v8039_v21 = vand.u32 4294901760, %v4145_v51  ;;  %v8042_v26 = vsub.f32 %v4151_v52, %v8023_v17  ;;  %v3602_v52 = vand.u32 4294901760, %v3601_v60 }
 0x7e7   : > { %v3255_v30 = vmax.f32 %v3253_v29, 0.0  ;;  %v8047_v29 = vsub.f32 %v4148_v20, %v8031_v61  ;;  %v6845_v20 = vld [vmem:[#allocation7 + $0x10] sm:$0xff] }
 0x7e9   : > { %v3266_v19 = vsel %vm3264_vm12, %v3255_v30, 0  ;;  %v8051_v30 = vsub.f32 %v4145_v51, %v8039_v21 }
 0x7ea   : > { %v3292_v33 = vand.u32 4294901760, %v3266_v19 }
 0x7eb   : > { %v4253_v49 = vand.u32 4294901760, %v8051_v30 }
 0x7ec   : > { %v3293_v39 = vsub.f32 %v3266_v19, %v3292_v33  ;;  %3358 = vmatmul.f32.vlgmr.msrb.gmra.mxu3 %v3292_v33 }
 0x7ed   : > { %3718 = vmatpush.msrb.mxu3 %v7918_v55 }
 0x7ee   : > { %3396 = vmatmul.f32.vlgmr.msrb.gmra.mxu0 %v3293_v39  ;;  %v3294_v31 = vand.u32 4294901760, %v3293_v39 }
 0x7ef   : > { %3720 = vmatpush.msrb.mxu3 %v7924_v56  ;;  %3629 = vmatpush.msrb.mxu0 %v7944_v15 }
 0x7f0   : > { %3427 = vmatmul.f32.vlgmr.msrb.gmra.mxu1 %v3294_v31  ;;  %v3295_v63 = vsub.f32 %v3293_v39, %v3294_v31 }
 0x7f1   : > { %3722 = vmatpush.msrb.mxu3 %v7930_v40  ;;  %3632 = vmatpush.msrb.mxu0 %v7949_v35 }
 0x7f2   : > { %v3296_v22 = vand.u32 4294901760, %v3295_v63 }
 0x7f3   : > { %3724 = vmatpush.msrb.mxu3 %v7936_v59  ;;  %3635 = vmatpush.msrb.mxu0 %v7957_v13 }
 0x7f4   : > { %3297 = vmatmul.f32.vlgmr.msrb.gmra.mxu2 %v3296_v22  ;;  %3501 = vmatmul.f32.vlgmr.msra.gmra.mxu3 %v3292_v33 }
 0x7f5   : > { %4309 = vmatpush.xpose.msra.mxu3 %v7960_v34  ;;  %3687 = vmatpush.msrb.mxu2 %v3588_v5 }
 0x7f6   : > { %3638 = vmatpush.msrb.mxu0 %v7965_v27 }
 0x7f7   : > { %3691 = vmatpush.msrb.mxu2 %v3594_v43 }
 0x7f9   : > { %4311 = vmatpush.xpose.msra.mxu3 %v7975_v50  ;;  %3695 = vmatpush.msrb.mxu2 %v3600_v46 }
 0x7fb   : > { %3699 = vmatpush.msrb.mxu2 %v3606_v57 }
 0x7fc   : > { %3472 = vmatmul.f32.vlgmr.msra.gmra.mxu2 %v3292_v33 }
 0x7fd   : > { %4272 = vmatpush.xpose.msra.mxu2 %v7988_v53  ;;  %4313 = vmatpush.xpose.msra.mxu3 %v7993_v0 }
 0x801   : > { %4275 = vmatpush.xpose.msra.mxu2 %v8007_v44  ;;  %4315 = vmatpush.xpose.msra.mxu3 %v8003_v8 }
 0x805   : > { %4278 = vmatpush.xpose.msra.mxu2 %v8018_v18  ;;  %4317 = vmatpush.xpose.msra.mxu3 %v8015_v42 }
 0x809   : > { %4281 = vmatpush.xpose.msra.mxu2 %v8026_v14  ;;  %4319 = vmatpush.xpose.msra.mxu3 %v8023_v17 }
 0x80d   : > { %4284 = vmatpush.xpose.msra.mxu2 %v8034_v16  ;;  %4321 = vmatpush.xpose.msra.mxu3 %v8031_v61 }
 0x811   : > { %4287 = vmatpush.xpose.msra.mxu2 %v8042_v26  ;;  %4323 = vmatpush.xpose.msra.mxu3 %v8039_v21 }
 0x815   : > { %4290 = vmatpush.xpose.msra.mxu2 %v8047_v29 }
 0x819   : > { %4293 = vmatpush.xpose.msra.mxu2 %v8051_v30 }
 0x86b   : > { %v3397_v39 = vpop.f32.mrf.mxu0 }
 0x86d   : > { %v3428_v41 = vpop.f32.mrf.mxu1 }
 0x86f   : > { %v3359_v19 = vpop.f32.mrf.mxu3 }
 0x877   : > { %v3298_v33 = vpop.f32.mrf.mxu2  ;;  %v3502_v47 = vpop.f32.mrf.mxu3 }
 0x878   : > { %v3360_v32 = vadd.f32 %v3359_v19, %v3298_v33  ;;  %v4211_v19 = vand.u32 4294901760, %v7988_v53 }
 0x87a   : > { %v3398_v31 = vadd.f32 %v3397_v39, %v3360_v32  ;;  %v4217_v32 = vand.u32 4294901760, %v8007_v44 }
 0x87c   : > { %v3429_v25 = vadd.f32 %v3428_v41, %v3398_v31 }
 0x87f   : > { %v3473_v63 = vpop.f32.mrf.mxu2 }
 0x880   : > { %v3474_v22 = vadd.f32 %v3473_v63, %v3429_v25  ;;  %v4218_v25 = vsub.f32 %v8007_v44, %v4217_v32  ;;  %v4223_v63 = vand.u32 4294901760, %v8018_v18 }
 0x882   : > { %v3503_v45 = vadd.f32 %v3502_v47, %v3474_v22 }
 0x884   : > { %v3505_v58 = vadd.f32 %v3503_v45, %v7810_v54  ;;  %v3590_v54 = vand.u32 4294901760, %v3589_v1  ;;  %v4219_v45 = vand.u32 4294901760, %v4218_v25 }
 0x886   : > { %v8056_v3 = vadd.f32 %v3506_v2, %v3505_v58  ;;  %3591 = vmatpush.msra.mxu1 %v3590_v54  ;;  %v4224_v2 = vsub.f32 %v8018_v18, %v4223_v63  ;;  %v4229_v58 = vand.u32 4294901760, %v8026_v14  ;;  %v4241_v18 = vand.u32 4294901760, %v8042_v26 }
 0x888   : > { %v3511_v7 = vsel %vm387_vm0, %v8056_v3, 0.0  ;;  %3597 = vmatpush.msra.mxu1 %v3596_v28  ;;  %v4242_v4 = vsub.f32 %v8042_v26, %v4241_v18 }
 0x889   : > { %3512 = vadd.xlane.f32.xlu2 %v3511_v7 }
 0x88a   : > { %3603 = vmatpush.msra.mxu1 %v3602_v52  ;;  %v4243_v28 = vand.u32 4294901760, %v4242_v4  ;;  %v4254_v52 = vsub.f32 %v8051_v30, %v4253_v49 }
 0x88c   : > { %3609 = vmatpush.msra.mxu1 %v3608_v12  ;;  %v6846_v12 = vld [vmem:[#allocation7 + $0x18] sm:$0xff] }
 0x88d   : > { %v4142_v26 = vsel %vm1097_vm2, %v6846_v12, 0 }
 0x88e   : > { %3658 = vmatpush.msrb.mxu1 %v7918_v55  ;;  %v3533_v55 = vperm.slane %v6845_v20, 0 }
 0x890   : > { %3660 = vmatpush.msrb.mxu1 %v7924_v56  ;;  %v3535_v56 = vperm.slane %v6845_v20, 1 }
 0x892   : > { %3662 = vmatpush.msrb.mxu1 %v7930_v40 }
 0x894   : > { %3664 = vmatpush.msrb.mxu1 %v7936_v59  ;;  %v4212_v59 = vsub.f32 %v7988_v53, %v4211_v19 }
 0x896   : > { %v4213_v41 = vand.u32 4294901760, %v4212_v59 }
 0x8fc   : > { %v3513_v36 = vpop.xlane.xlu2 %3512 }
 0x8fd   : > { %v3514_v6 = vmul.f32 %v3513_v36, %v7219_v24 }
 0x8ff   : > { %v3515_v10 = vsub.f32 %v8056_v3, %v3514_v6  ;;  %v4225_v6 = vand.u32 4294901760, %v4224_v2 }
 0x901   : > { %v3516_v23 = vmul.f32 %v3515_v10, %v3515_v10 }
 0x903   : > { %v3517_v38 = vsel %vm387_vm0, %v3516_v23, 0.0  ;;  %v4235_v23 = vand.u32 4294901760, %v8034_v16 }
 0x904   : > { %3518 = vadd.xlane.f32.xlu0 %v3517_v38 }
 0x905   : > { %v4236_v1 = vsub.f32 %v8034_v16, %v4235_v23 }
 0x907   : > { %v4237_v54 = vand.u32 4294901760, %v4236_v1 }
 0x977   : > { %v3519_v15 = vpop.xlane.xlu0 %3518 }
 0x978   : > { %v3520_v35 = vmul.f32 %v3519_v15, %v7219_v24  ;;  %v4192_v15 = vand.u32 4294901760, %v4142_v26 }
 0x97a   : > { %v3521_v5 = vadd.f32 1e-05, %v3520_v35  ;;  %v4255_v35 = vand.u32 4294901760, %v4254_v52 }
 0x97c   : > { %6822 = vrsqrt.f32 %v3521_v5  ;;  %vm3528_vm14 = vweird.f32 %v3521_v5 }
 0x982   : > { %v6823_v13 = vpop.eup %6822 }
 0x983   : > { %v3523_v43 = vmul.f32 %v6823_v13, %v3521_v5  ;;  %vm3529_vm13 = vweird.f32 %v6823_v13  ;;  %v4193_v5 = vsub.f32 %v4142_v26, %v4192_v15 }
 0x984   : > { %vm3530_vm15 = vmor %vm3528_vm14, %vm3529_vm13 }
 0x985   : > { %v3524_v27 = vmul.f32 %v6823_v13, %v3523_v43 }
 0x987   : > { %v3525_v46 = vmul.f32 0.5, %v3524_v27 }
 0x989   : > { %v3526_v57 = vsub.f32 1.5, %v3525_v46 }
 0x98b   : > { %v3527_v37 = vmul.f32 %v6823_v13, %v3526_v57 }
 0x98d   : > { %v3531_v48 = vsel %vm3530_vm15, %v6823_v13, %v3527_v37 }
 0x98e   : > { %v3532_v51 = vmul.f32 %v3531_v48, %v3515_v10  ;;  %v4230_v10 = vsub.f32 %v8026_v14, %v4229_v58  ;;  %v4247_v14 = vand.u32 4294901760, %v8047_v29 }
 0x990   : > { %v3534_v40 = vmul.f32 %v3533_v55, %v3532_v51  ;;  %v4231_v38 = vand.u32 4294901760, %v4230_v10  ;;  %v4248_v60 = vsub.f32 %v8047_v29, %v4247_v14  ;;  %v4194_v29 = vand.u32 4294901760, %v4193_v5 }
 0x992   : > { %v3536_v33 = vadd.f32 %v3535_v56, %v3534_v40  ;;  %v4249_v16 = vand.u32 4294901760, %v4248_v60  ;;  %v4195_v13 = vsub.f32 %v4193_v5, %v4194_v29 }
 0x994   : > { %v3543_v39 = vsel %vm387_vm0, %v3536_v33, 0  ;;  %v4196_v30 = vand.u32 4294901760, %v4195_v13 }
 0x995   : > { %v3565_v31 = vand.u32 4294901760, %v3543_v39 }
 0x997   : > { %v3566_v22 = vsub.f32 %v3543_v39, %v3565_v31  ;;  %3611 = vmatmul.f32.vlgmr.msra.gmra.mxu1 %v3565_v31  ;;  %3701 = vmatmul.f32.vlgmr.msrb.gmra.mxu2 %v3565_v31 }
 0x998   : > { %3726 = vmatmul.f32.vlgmr.msrb.gmra.mxu3 %v3565_v31  ;;  %4214 = vmatpush.xpose.msra.mxu1 %v4213_v41 }
 0x999   : > { %v3567_v47 = vand.u32 4294901760, %v3566_v22 }
 0x99b   : > { %v3568_v7 = vsub.f32 %v3566_v22, %v3567_v47 }
 0x99c   : > { %4220 = vmatpush.xpose.msra.mxu1 %v4219_v45 }
 0x99d   : > { %v3569_v36 = vand.u32 4294901760, %v3568_v7 }
 0x99f   : > { %3570 = vmatmul.f32.vlgmr.msra.gmra.mxu0 %v3569_v36  ;;  %3668 = vmatmul.f32.vlgmr.msrb.gmra.mxu1 %v3567_v47 }
 0x9a0   : > { %4177 = vmatpush.xpose.msra.mxu0 %v7960_v34  ;;  %4226 = vmatpush.xpose.msra.mxu1 %v4225_v6 }
 0x9a1   : > { %4296 = vmatmul.f32.vlgmr.msra.gmra.mxu2 %v4193_v5  ;;  %4327 = vmatmul.f32.vlgmr.msra.gmra.mxu3 %v4194_v29 }
 0x9a4   : > { %4179 = vmatpush.xpose.msra.mxu0 %v7975_v50  ;;  %4232 = vmatpush.xpose.msra.mxu1 %v4231_v38 }
 0x9a7   : > { %3641 = vmatmul.f32.vlgmr.msrb.gmra.mxu0 %v3566_v22 }
 0x9a8   : > { %4181 = vmatpush.xpose.msra.mxu0 %v7993_v0  ;;  %4238 = vmatpush.xpose.msra.mxu1 %v4237_v54 }
 0x9ac   : > { %4183 = vmatpush.xpose.msra.mxu0 %v8003_v8  ;;  %4244 = vmatpush.xpose.msra.mxu1 %v4243_v28 }
 0x9b0   : > { %4185 = vmatpush.xpose.msra.mxu0 %v8015_v42  ;;  %4250 = vmatpush.xpose.msra.mxu1 %v4249_v16 }
 0x9b4   : > { %4187 = vmatpush.xpose.msra.mxu0 %v8023_v17  ;;  %4256 = vmatpush.xpose.msra.mxu1 %v4255_v35 }
 0x9b7   : > { %4258 = vmatmul.f32.vlgmr.msra.gmra.mxu1 %v4192_v15 }
 0x9b8   : > { %4385 = vmatpush.xpose.msrb.mxu1 %v7960_v34  ;;  %4189 = vmatpush.xpose.msra.mxu0 %v8031_v61 }
 0x9bc   : > { %4387 = vmatpush.xpose.msrb.mxu1 %v7975_v50  ;;  %4191 = vmatpush.xpose.msra.mxu0 %v8039_v21 }
 0x9bf   : > { %4197 = vmatmul.f32.vlgmr.msra.gmra.mxu0 %v4196_v30 }
 0x9c0   : > { %4342 = vmatpush.xpose.msrb.mxu0 %v4211_v19  ;;  %4389 = vmatpush.xpose.msrb.mxu1 %v7993_v0 }
 0x9c4   : > { %4346 = vmatpush.xpose.msrb.mxu0 %v4217_v32  ;;  %4391 = vmatpush.xpose.msrb.mxu1 %v8003_v8 }
 0x9c8   : > { %4350 = vmatpush.xpose.msrb.mxu0 %v4223_v63  ;;  %4393 = vmatpush.xpose.msrb.mxu1 %v8015_v42 }
 0x9cc   : > { %4354 = vmatpush.xpose.msrb.mxu0 %v4229_v58  ;;  %4395 = vmatpush.xpose.msrb.mxu1 %v8023_v17 }
 0x9d0   : > { %4358 = vmatpush.xpose.msrb.mxu0 %v4235_v23  ;;  %4397 = vmatpush.xpose.msrb.mxu1 %v8031_v61 }
 0x9d4   : > { %4362 = vmatpush.xpose.msrb.mxu0 %v4241_v18  ;;  %4399 = vmatpush.xpose.msrb.mxu1 %v8039_v21 }
 0x9d7   : > { %4401 = vmatmul.f32.vlgmr.msrb.gmra.mxu1 %v4192_v15 }
 0x9d8   : > { %4366 = vmatpush.xpose.msrb.mxu0 %v4247_v14 }
 0x9dc   : > { %4370 = vmatpush.xpose.msrb.mxu0 %v4253_v49 }
 0x9df   : > { %4372 = vmatmul.f32.vlgmr.msrb.gmra.mxu0 %v4192_v15 }
 0xa14   : > { %v3612_v34 = vpop.f32.mrf.mxu1 }
 0xa1a   : > { %v3702_v43 = vpop.f32.mrf.mxu2 }
 0xa1b   : > { %v3727_v17 = vpop.f32.mrf.mxu3 }
 0xa1c   : > { %v3571_v50 = vpop.f32.mrf.mxu0  ;;  %v3669_v44 = vpop.f32.mrf.mxu1 }
 0xa1d   : > { %v3613_v53 = vadd.f32 %v3612_v34, %v3571_v50 }
 0xa24   : > { %v3642_v0 = vpop.f32.mrf.mxu0  ;;  %v4297_v37 = vpop.f32.mrf.mxu2 }
 0xa25   : > { %v3643_v8 = vadd.f32 %v3642_v0, %v3613_v53  ;;  %v4328_v55 = vpop.f32.mrf.mxu3 }
 0xa27   : > { %v3670_v42 = vadd.f32 %v3669_v44, %v3643_v8 }
 0xa29   : > { %v3703_v27 = vadd.f32 %v3702_v43, %v3670_v42 }
 0xa2b   : > { %v8122_v46 = vadd.f32 %v3727_v17, %v3703_v27 }
 0xa2d   : > { %3743 = vrot.lane.b32.xlu0 %v8122_v46, %s7025_s15  ;;  %3737 = vrot.lane.b32.xlu2 %v8122_v46, %s7022_s10  ;;  %v3766_v22 = vrot.slane %v8122_v46, 4 }
 0xa2e   : > { %3731 = vrot.lane.b32.xlu1 %v8122_v46, %s7023_s13 }
 0xa34   : > { %v4259_v61 = vpop.f32.mrf.mxu1 }
 0xa35   : > { %3740 = vrot.lane.b32.xlu0 %v8122_v46, %s7021_s30  ;;  %3749 = vrot.lane.b32.xlu2 %v8122_v46, %s7027_s27 }
 0xa36   : > { %3734 = vrot.lane.b32.xlu1 %v8122_v46, %s7024_s6 }
 0xa3c   : > { %v4198_v21 = vpop.f32.mrf.mxu0 }
 0xa3d   : > { %v4260_v57 = vadd.f32 %v4259_v61, %v4198_v21 }
 0xa3e   : > { %3746 = vrot.lane.b32.xlu1 %v8122_v46, %s7026_s28 }
 0xa3f   : > { %v4298_v20 = vadd.f32 %v4297_v37, %v4260_v57 }
 0xa41   : > { %v4329_v48 = vadd.f32 %v4328_v55, %v4298_v20 }
 0xa54   : > { %v4402_v56 = vpop.f32.mrf.mxu1 }
 0xa5c   : > { %v4373_v51 = vpop.f32.mrf.mxu0 }
 0xa5d   : > { %v4374_v19 = vadd.f32 %v4373_v51, %v4329_v48 }
 0xa5f   : > { %v8138_v40 = vadd.f32 %v4402_v56, %v4374_v19 }
 0xa61   : > { %4424 = vrot.lane.b32.xlu0 %v8138_v40, %s7027_s27  ;;  %4418 = vrot.lane.b32.xlu1 %v8138_v40, %s7025_s15  ;;  %s350_s15 = scalar_lea.vmem [#allocation8], %s7195_s18  ;;  %s6959_s18 = scalar_lea.hbm %s8585_s7, 16 }
 0xa62   : > { %4412 = vrot.lane.b32.xlu2 %v8138_v40, %s7022_s10  ;;  %s8611_s10 = smov 16  }
 0xa69   : > { %4421 = vrot.lane.b32.xlu0 %v8138_v40, %s7026_s28  ;;  %4409 = vrot.lane.b32.xlu1 %v8138_v40, %s7024_s6  ;;  %s8613_s6 = smov 8   ;;  %s6565_s28 = sshll.u32 %s350_s15, 4  ;;  %s6566_s28 = int_to_ptr.vmem [resolvable:$true] %s6565_s28 }
 0xa6a   : > { %4406 = vrot.lane.b32.xlu2 %v8138_v40, %s7023_s13  ;;  %s8612_s13 = smov 24  }
 0xa71   : > { %4415 = vrot.lane.b32.xlu0 %v8138_v40, %s7021_s30  ;;  %s8610_s30 = smov 48  }
 0xa72   : > { %4487 = vperm.xlu2 %6798, %v7264_v62  }
 0xa79   : > { %3752 = vrot.lane.b32.xlu0 %v8122_v46, %s7028_s9 }
 0xa87   : > { %v3738_v33 = vpop.permute.xlu2 %3737 }
 0xa88   : > { %v3776_v31 = vrot.slane %v3738_v33, 4 }
 0xa8f   : > { %v3750_v47 = vpop.permute.xlu2 %3749 }
 0xa90   : > { %v3800_v6 = vrot.slane %v3750_v47, 4 }
 0xa9f   : > { %v3744_v39 = vpop.permute.xlu0 %3743 }
 0xaa0   : > { %v3732_v59 = vpop.permute.xlu1 %3731  ;;  %v3802_v63 = vrot.slane %v3744_v39, 4  ;;  %v3801_v54 = vsel %vm648_vm6, %v3800_v6, %v3744_v39 }
 0xaa1   : > { %v3778_v32 = vrot.slane %v3732_v59, 4  ;;  %v3777_v25 = vsel %vm648_vm6, %v3776_v31, %v3732_v59  ;;  %v3807_v52 = vperm.slane %v3801_v54, %v7499_v11 }
 0xaa2   : > { %v3783_v62 = vperm.slane %v3777_v25, %v7499_v11  ;;  %v3803_v10 = vsel %vm648_vm6, %v3750_v47, %v3802_v63 }
 0xaa3   : > { %v3779_v41 = vsel %vm648_vm6, %v3738_v33, %v3778_v32  ;;  %v3811_v28 = vperm.slane %v3803_v10, %v7499_v11  ;;  %v3836_v44 = vrot.slane %v3807_v52, 4 }
 0xaa4   : > { %v3787_v45 = vperm.slane %v3779_v41, %v7499_v11  ;;  %v3812_v4 = vrot.slane %v3783_v62, 4 }
 0xaa5   : > { %v3848_v13 = vrot.slane %v3811_v28, 4 }
 0xaa6   : > { %v3824_v38 = vrot.slane %v3787_v45, 4 }
 0xaa7   : > { %v3741_v14 = vpop.permute.xlu0 %3740 }
 0xaa8   : > { %v3735_v2 = vpop.permute.xlu1 %3734  ;;  %v3790_v12 = vrot.slane %v3741_v14, 4 }
 0xaa9   : > { %v3764_v58 = vrot.slane %v3735_v2, 4  ;;  %v3767_v7 = vsel %vm648_vm6, %v3735_v2, %v3766_v22 }
 0xaaa   : > { %v3775_v36 = vperm.slane %v3767_v7, %v7499_v11 }
 0xaab   : > { %v3765_v23 = vsel %vm648_vm6, %v3764_v58, %v8122_v46 }
 0xaac   : > { %v3771_v1 = vperm.slane %v3765_v23, %v7499_v11  ;;  %v3826_v18 = vrot.slane %v3775_v36, 4  ;;  %v3825_v49 = vsel %vm648_vm6, %v3824_v38, %v3775_v36 }
 0xaad   : > { %v3831_v5 = vperm.slane %v3825_v49, %v7512_v9 }
 0xaae   : > { %v3814_v60 = vrot.slane %v3771_v1, 4  ;;  %v3813_v16 = vsel %vm648_vm6, %v3812_v4, %v3771_v1  ;;  %v3827_v15 = vsel %vm648_vm6, %v3787_v45, %v3826_v18 }
 0xaaf   : > { %v3819_v30 = vperm.slane %v3813_v16, %v7512_v9  ;;  %v3835_v53 = vperm.slane %v3827_v15, %v7512_v9  ;;  %v3870_v43 = vrot.slane %v3831_v5, 4 }
 0xab0   : > { %v3815_v26 = vsel %vm648_vm6, %v3783_v62, %v3814_v60  ;;  %v3747_v35 = vpop.permute.xlu1 %3746 }
 0xab1   : > { %v3788_v29 = vrot.slane %v3747_v35, 4  ;;  %v3791_v34 = vsel %vm648_vm6, %v3747_v35, %v3790_v12  ;;  %v3823_v50 = vperm.slane %v3815_v26, %v7512_v9  ;;  %v3862_v61 = vrot.slane %v3819_v30, 4 }
 0xab2   : > { %v3799_v8 = vperm.slane %v3791_v34, %v7499_v11  ;;  %v3874_v55 = vrot.slane %v3835_v53, 4 }
 0xab3   : > { %v3789_v0 = vsel %vm648_vm6, %v3788_v29, %v3741_v14  ;;  %v3866_v20 = vrot.slane %v3823_v50, 4 }
 0xab4   : > { %v3795_v42 = vperm.slane %v3789_v0, %v7499_v11  ;;  %v3849_v27 = vsel %vm648_vm6, %v3848_v13, %v3799_v8  ;;  %v3850_v17 = vrot.slane %v3799_v8, 4 }
 0xab5   : > { %v3855_v37 = vperm.slane %v3849_v27, %v7512_v9 }
 0xab6   : > { %v3837_v21 = vsel %vm648_vm6, %v3836_v44, %v3795_v42  ;;  %v3838_v57 = vrot.slane %v3795_v42, 4  ;;  %v3851_v51 = vsel %vm648_vm6, %v3811_v28, %v3850_v17 }
 0xab7   : > { %v3843_v48 = vperm.slane %v3837_v21, %v7512_v9  ;;  %v3859_v19 = vperm.slane %v3851_v51, %v7512_v9  ;;  %v3868_v33 = vrot.slane %v3855_v37, 4  ;;  %v3871_v59 = vsel %vm648_vm6, %v3855_v37, %v3870_v43 }
 0xab8   : > { %v3839_v56 = vsel %vm648_vm6, %v3807_v52, %v3838_v57  ;;  %v3970_v41 = vrot.slane %v3871_v59, 4 }
 0xab9   : > { %v3847_v32 = vperm.slane %v3839_v56, %v7512_v9  ;;  %v3860_v39 = vrot.slane %v3843_v48, 4  ;;  %v3863_v31 = vsel %vm648_vm6, %v3843_v48, %v3862_v61  ;;  %v3869_v25 = vsel %vm648_vm6, %v3868_v33, %v3831_v5 }
 0xaba   : > { %v3872_v63 = vrot.slane %v3859_v19, 4  ;;  %v3875_v22 = vsel %vm648_vm6, %v3859_v19, %v3874_v55  ;;  %v3946_v47 = vrot.slane %v3863_v31, 4  ;;  %v3958_v58 = vrot.slane %v3869_v25, 4 }
 0xabb   : > { %v3861_v45 = vsel %vm648_vm6, %v3860_v39, %v3819_v30  ;;  %v3864_v2 = vrot.slane %v3847_v32, 4  ;;  %v3867_v62 = vsel %vm648_vm6, %v3847_v32, %v3866_v20  ;;  %v3968_v18 = vrot.slane %v3875_v22, 4 }
 0xabc   : > { %v3873_v7 = vsel %vm648_vm6, %v3872_v63, %v3835_v53  ;;  %v3934_v36 = vrot.slane %v3861_v45, 4  ;;  %v3944_v6 = vrot.slane %v3867_v62, 4  ;;  %v3947_v10 = vsel %vm648_vm6, %v3867_v62, %v3946_v47 }
 0xabd   : > { %v3865_v23 = vsel %vm648_vm6, %v3864_v2, %v3823_v50  ;;  %v3956_v38 = vrot.slane %v3873_v7, 4  ;;  %v3959_v1 = vsel %vm648_vm6, %v3873_v7, %v3958_v58  ;;  %v3971_v28 = vsel %vm648_vm6, %v3875_v22, %v3970_v41 }
 0xabe   : > { %v3932_v54 = vrot.slane %v3865_v23, 4  ;;  %v3945_v4 = vsel %vm648_vm6, %v3944_v6, %v3863_v31  ;;  %v3967_v14 = vperm.slane %v3959_v1, %v7499_v11  ;;  %v3969_v16 = vsel %vm648_vm6, %v3968_v18, %v3871_v59 }
 0xabf   : > { %v3951_v60 = vperm.slane %v3945_v4, %v7499_v11  ;;  %v3957_v49 = vsel %vm648_vm6, %v3956_v38, %v3869_v25  ;;  %v3979_v52 = vperm.slane %v3971_v28, %v7499_v11  ;;  %v3975_v15 = vperm.slane %v3969_v16, %v7499_v11 }
 0xac0   : > { %v3933_v12 = vsel %vm648_vm6, %v3932_v54, %v3861_v45  ;;  %v3963_v26 = vperm.slane %v3957_v49, %v7499_v11  ;;  %v3935_v35 = vsel %vm648_vm6, %v3865_v23, %v3934_v36  ;;  %v3955_v53 = vperm.slane %v3947_v10, %v7499_v11 }
 0xac1   : > { %v3939_v5 = vperm.slane %v3933_v12, %v7499_v11  ;;  %v3980_v29 = vrot.slane %v3951_v60, 4  ;;  %v4016_v13 = vrot.slane %v3979_v52, 4  ;;  %v3943_v30 = vperm.slane %v3935_v35, %v7499_v11 }
 0xac2   : > { %v4004_v34 = vrot.slane %v3975_v15, 4  ;;  %v4006_v50 = vrot.slane %v3963_v26, 4  ;;  %v4018_v0 = vrot.slane %v3967_v14, 4  ;;  %v3992_v17 = vrot.slane %v3955_v53, 4 }
 0xac3   : > { %v3982_v8 = vrot.slane %v3939_v5, 4  ;;  %v4017_v44 = vsel %vm648_vm6, %v4016_v13, %v3967_v14  ;;  %v3994_v42 = vrot.slane %v3943_v30, 4  ;;  %v3981_v43 = vsel %vm648_vm6, %v3980_v29, %v3939_v5 }
 0xac4   : > { %v4007_v27 = vsel %vm648_vm6, %v3975_v15, %v4006_v50  ;;  %v4023_v61 = vperm.slane %v4017_v44, %v7512_v9  ;;  %v4019_v21 = vsel %vm648_vm6, %v3979_v52, %v4018_v0  ;;  %v3987_v55 = vperm.slane %v3981_v43, %v7512_v9 }
 0xac5   : > { %v8221_v57 = vperm.slane %v4007_v27, %v7512_v9  ;;  %v3995_v37 = vsel %vm648_vm6, %v3955_v53, %v3994_v42  ;;  %v4027_v20 = vperm.slane %v4019_v21, %v7512_v9  ;;  %v3993_v48 = vsel %vm648_vm6, %v3992_v17, %v3943_v30 }
 0xac6   : > { %v4036_v51 = vrot.slane %v4023_v61, 4  ;;  %v4003_v56 = vperm.slane %v3995_v37, %v7512_v9  ;;  %v4005_v19 = vsel %vm648_vm6, %v4004_v34, %v3963_v26  ;;  %v3999_v33 = vperm.slane %v3993_v48, %v7512_v9 }
 0xac7   : > { %v4040_v59 = vrot.slane %v4027_v20, 4  ;;  %v4011_v32 = vperm.slane %v4005_v19, %v7512_v9  ;;  %v4030_v39 = vrot.slane %v3987_v55, 4  ;;  %v3983_v31 = vsel %vm648_vm6, %v3951_v60, %v3982_v8 }
 0xac8   : > { %v4032_v41 = vrot.slane %v8221_v57, 4  ;;  %v4037_v25 = vsel %vm648_vm6, %v4036_v51, %v3999_v33  ;;  %v4038_v63 = vrot.slane %v3999_v33, 4  ;;  %v3991_v1 = vperm.slane %v3983_v31, %v7512_v9 }
 0xac9   : > { %v4041_v22 = vsel %vm648_vm6, %v4040_v59, %v4003_v56  ;;  %v4031_v47 = vsel %vm648_vm6, %v4011_v32, %v4030_v39  ;;  %v4501_v45 = vsel %vm1454_vm7, %v4037_v25, 0  ;;  %v4028_v58 = vrot.slane %v4011_v32, 4 }
 0xaca   : > { %v4805_v2 = vsel %vm1454_vm7, %v4041_v22, 0  ;;  %v4650_v62 = vsel %vm1454_vm7, %v4031_v47, 0  ;;  %v4518_v7 = vand.u32 4294901760, %v4501_v45  ;;  %v4039_v36 = vsel %vm648_vm6, %v4023_v61, %v4038_v63 }
 0xacb   : > { %v8240_v6 = vand.u32 4294901760, %v4805_v2  ;;  %v8242_v10 = vand.u32 4294901760, %v4650_v62  ;;  %v4653_v23 = vsel %vm1454_vm7, %v4039_v36, 0  ;;  %v4029_v38 = vsel %vm648_vm6, %v4028_v58, %v3987_v55 }
 0xacc   : > { %v4042_v18 = vrot.slane %v4003_v56, 4  ;;  %4519 = vmatpush.xpose.msrb.mxu2 %v4518_v7  ;;  %v4545_v54 = vsub.f32 %v4501_v45, %v4518_v7  ;;  %v4670_v4 = vand.u32 4294901760, %v4653_v23  ;;  %v4498_v60 = vsel %vm1454_vm7, %v4029_v38, 0  ;;  %v4413_v45 = vpop.permute.xlu2 %4412 }
 0xacd   : > { %v8248_v14 = vsub.f32 %v4805_v2, %v8240_v6  ;;  %v8251_v28 = vsub.f32 %v4650_v62, %v8242_v10  ;;  %v4033_v49 = vsel %vm648_vm6, %v4032_v41, %v3991_v1  ;;  %v4520_v15 = vand.u32 4294901760, %v4498_v60 }
 0xace   : > { %4747 = vmatpush.xpose.msra.mxu1 %v4670_v4  ;;  %v4697_v16 = vsub.f32 %v4653_v23, %v4670_v4  ;;  %v4546_v52 = vand.u32 4294901760, %v4545_v54  ;;  %v4802_v35 = vsel %vm1454_vm7, %v4033_v49, 0  ;;  %v4043_v30 = vsel %vm648_vm6, %v4027_v20, %v4042_v18 }
 0xacf   : > { %v4674_v12 = vand.u32 4294901760, %v8251_v28  ;;  %v4850_v26 = vand.u32 4294901760, %v8248_v14  ;;  %v4824_v13 = vand.u32 4294901760, %v4802_v35  ;;  %v4521_v34 = vsub.f32 %v4498_v60, %v4520_v15 }
 0xad0   : > { %4572 = vmatpush.xpose.msra.mxu2 %v4545_v54  ;;  %4724 = vmatpush.xpose.msra.mxu0 %v4697_v16  ;;  %v4547_v5 = vsub.f32 %v4545_v54, %v4546_v52  ;;  %v4957_v44 = vsel %vm1454_vm7, %v4043_v30, 0  ;;  %v4034_v27 = vrot.slane %v3991_v1, 4  ;;  %v4698_v21 = vand.u32 4294901760, %v4697_v16 }
 0xad1   : > { %v4851_v29 = vsub.f32 %v8248_v14, %v4850_v26  ;;  %4751 = vmatmul.f32.vlgmr.msra.gmra.mxu1 %v4674_v12  ;;  %v4825_v0 = vsub.f32 %v4802_v35, %v4824_v13  ;;  %v4522_v8 = vand.u32 4294901760, %v4521_v34  ;;  %v4974_v61 = vand.u32 4294901760, %v4957_v44 }
 0xad2   : > { %v4548_v50 = vand.u32 4294901760, %v4547_v5  ;;  %v4035_v55 = vsel %vm648_vm6, %v8221_v57, %v4034_v27  ;;  %v4699_v51 = vsub.f32 %v4697_v16, %v4698_v21  ;;  %v4675_v57 = vsub.f32 %v8251_v28, %v4674_v12 }
 0xad3   : > { %v4852_v53 = vand.u32 4294901760, %v4851_v29  ;;  %4727 = vmatmul.f32.vlgmr.msra.gmra.mxu0 %v8251_v28  ;;  %v4826_v42 = vand.u32 4294901760, %v4825_v0  ;;  %v4523_v43 = vsub.f32 %v4521_v34, %v4522_v8  ;;  %v5001_v48 = vsub.f32 %v4957_v44, %v4974_v61  ;;  %v4425_v47 = vpop.permute.xlu0 %4424  ;;  %v4419_v2 = vpop.permute.xlu1 %4418 }
 0xad4   : > { %4823 = vmatpush.xpose.msrb.mxu0 %v8240_v6  ;;  %4549 = vmatpush.xpose.msrb.mxu3 %v4548_v50  ;;  %v4954_v56 = vsel %vm1454_vm7, %v4035_v55, 0  ;;  %v4700_v19 = vand.u32 4294901760, %v4699_v51  ;;  %v4676_v31 = vand.u32 4294901760, %v4675_v57  ;;  %v4445_v58 = vrot.slane %v4425_v47, 4 }
 0xad5   : > { %4853 = vmatpush.xpose.msrb.mxu1 %v4852_v53  ;;  %v4827_v17 = vsub.f32 %v4825_v0, %v4826_v42  ;;  %v4524_v37 = vand.u32 4294901760, %v4523_v43  ;;  %v4976_v33 = vand.u32 4294901760, %v4954_v56  ;;  %v5002_v39 = vand.u32 4294901760, %v5001_v48 }
 0xad6   : > { %v4433_v36 = vrot.slane %v4413_v45, 4 }
 0xad7   : > { %4551 = vmatmul.f32.vlgmr.msrb.gmra.mxu3 %v4520_v15  ;;  %4525 = vmatmul.f32.vlgmr.msrb.gmra.mxu2 %v4524_v37  ;;  %v4828_v20 = vand.u32 4294901760, %v4827_v17  ;;  %v4977_v59 = vsub.f32 %v4954_v56, %v4976_v33  ;;  %v5003_v41 = vsub.f32 %v5001_v48, %v5002_v39 }
 0xad8   : > { %4925 = vmatpush.xpose.msra.mxu0 %v4850_v26  ;;  %4595 = vmatpush.xpose.msra.mxu3 %v4518_v7 }
 0xad9   : > { %4947 = vmatpush.xpose.msra.mxu1 %v8240_v6  ;;  %4621 = vmatpush.xpose.msrb.mxu2 %v4546_v52  ;;  %v4978_v32 = vand.u32 4294901760, %v4977_v59  ;;  %v5004_v25 = vand.u32 4294901760, %v5003_v41 }
 0xada   : > { %4855 = vmatmul.f32.vlgmr.msrb.gmra.mxu1 %v4824_v13 }
 0xadb   : > { %4829 = vmatmul.f32.vlgmr.msrb.gmra.mxu0 %v4828_v20  ;;  %v4979_v63 = vsub.f32 %v4977_v59, %v4978_v32  ;;  %v4422_v62 = vpop.permute.xlu0 %4421  ;;  %v4410_v23 = vpop.permute.xlu1 %4409 }
 0xadc   : > { %4643 = vmatpush.xpose.msrb.mxu3 %v4518_v7  ;;  %5028 = vmatpush.xpose.msrb.mxu0 %v5001_v48  ;;  %v4439_v7 = vrot.slane %v4422_v62, 4 }
 0xadd   : > { %5051 = vmatpush.xpose.msrb.mxu1 %v4974_v61  ;;  %v4980_v22 = vand.u32 4294901760, %v4979_v63 }
 0xadf   : > { %4599 = vmatmul.f32.vlgmr.msra.gmra.mxu3 %v4522_v8  ;;  %4575 = vmatmul.f32.vlgmr.msra.gmra.mxu2 %v4521_v34 }
 0xae0   : > { %4701 = vmatpush.xpose.msra.mxu3 %v4700_v19  ;;  %4671 = vmatpush.xpose.msra.mxu2 %v4670_v4  ;;  %v8291_v19 = vld [vmem:[%s7205_s23] sm:$0xff]  ;;  %s8609_s23 = smov 56  }
 0xae2   : > { %4949 = vmatmul.f32.vlgmr.msra.gmra.mxu1 %v4824_v13 }
 0xae3   : > { %4927 = vmatmul.f32.vlgmr.msra.gmra.mxu0 %v4824_v13  ;;  %v4416_v1 = vpop.permute.xlu0 %4415 }
 0xae4   : > { %v4440_v54 = vsel %vm648_vm6, %v4439_v7, %v4416_v1 }
 0xae5   : > { %v4444_v60 = vperm.slane %v4440_v54, %v7499_v11 }
 0xae7   : > { %4645 = vmatmul.f32.vlgmr.msrb.gmra.mxu3 %v4520_v15  ;;  %4623 = vmatmul.f32.vlgmr.msrb.gmra.mxu2 %v4520_v15 }
 0xae8   : > { %4795 = vmatpush.xpose.msrb.mxu3 %v4670_v4  ;;  %4773 = vmatpush.xpose.msrb.mxu2 %v4698_v21 }
 0xaea   : > { %5055 = vmatmul.f32.vlgmr.msrb.gmra.mxu1 %v4978_v32 }
 0xaeb   : > { %5031 = vmatmul.f32.vlgmr.msrb.gmra.mxu0 %v4977_v59 }
 0xaef   : > { %4703 = vmatmul.f32.vlgmr.msra.gmra.mxu3 %v8242_v10  ;;  %4677 = vmatmul.f32.vlgmr.msra.gmra.mxu2 %v4676_v31 }
 0xaf0   : > { %4899 = vmatpush.xpose.msra.mxu3 %v8240_v6  ;;  %4876 = vmatpush.xpose.msra.mxu2 %v8248_v14  ;;  %v4446_v6 = vsel %vm648_vm6, %v4445_v58, %v4419_v2  ;;  %v4427_v14 = vrot.slane %v4410_v23, 4 }
 0xaf1   : > { %v4450_v18 = vperm.slane %v4446_v6, %v7499_v11 }
 0xaf2   : > { %v4428_v52 = vsel %vm648_vm6, %v4427_v14, %v8138_v40 }
 0xaf3   : > { %v4463_v49 = vrot.slane %v4450_v18, 4  ;;  %v4432_v35 = vperm.slane %v4428_v52, %v7499_v11 }
 0xaf5   : > { %v4464_v26 = vsel %vm648_vm6, %v4463_v49, %v4444_v60  ;;  %v4453_v58 = vrot.slane %v4432_v35, 4 }
 0xaf6   : > { %v4470_v13 = vperm.slane %v4464_v26, %v7512_v9 }
 0xaf7   : > { %4797 = vmatmul.f32.vlgmr.msrb.gmra.mxu3 %v8242_v10  ;;  %4775 = vmatmul.f32.vlgmr.msrb.gmra.mxu2 %v8242_v10  ;;  %v4407_v10 = vpop.permute.xlu2 %4406 }
 0xaf8   : > { %5005 = vmatpush.xpose.msrb.mxu3 %v5004_v25  ;;  %4975 = vmatpush.xpose.msrb.mxu2 %v4974_v61  ;;  %v4434_v4 = vsel %vm648_vm6, %v4433_v36, %v4407_v10  ;;  %v4465_v25 = vrot.slane %v4444_v60, 4 }
 0xaf9   : > { %v4438_v16 = vperm.slane %v4434_v4, %v7499_v11 }
 0xafa   : > { %v4466_v62 = vsel %vm648_vm6, %v4450_v18, %v4465_v25 }
 0xafb   : > { %v4451_v15 = vrot.slane %v4438_v16, 4  ;;  %v4474_v10 = vperm.slane %v4466_v62, %v7512_v9 }
 0xafd   : > { %v4452_v30 = vsel %vm648_vm6, %v4451_v15, %v4432_v35  ;;  %v4479_v49 = vrot.slane %v4474_v10, 4 }
 0xafe   : > { %v4458_v53 = vperm.slane %v4452_v30, %v7512_v9 }
 0xaff   : > { %4903 = vmatmul.f32.vlgmr.msra.gmra.mxu3 %v4826_v42  ;;  %4879 = vmatmul.f32.vlgmr.msra.gmra.mxu2 %v4825_v0  ;;  %v8285_v50 = vpop.permute.xlu2 %4487  ;;  %v4475_v0 = vrot.slane %v4470_v13, 4 }
 0xb00   : > { %5099 = vmatpush.xpose.msra.mxu3 %v4974_v61  ;;  %5077 = vmatpush.xpose.msra.mxu2 %v5002_v39  ;;  %v4489_v42 = vperm.slane %v8285_v50, 0  ;;  %v4477_v31 = vrot.slane %v4458_v53, 4  ;;  %v4490_v47 = vperm.slane %v8285_v50, 1  ;;  %v4491_v15 = vperm.slane %v8285_v50, 2 }
 0xb01   : > { %v4476_v27 = vsel %vm648_vm6, %v4475_v0, %v4458_v53 }
 0xb02   : > { %v4493_v21 = vadd.f32 %v4489_v42, %v4476_v27  ;;  %v4478_v2 = vsel %vm648_vm6, %v4470_v13, %v4477_v31 }
 0xb03   : > { %v4494_v36 = vadd.f32 %v4490_v47, %v4478_v2 }
 0xb07   : > { %5007 = vmatmul.f32.vlgmr.msrb.gmra.mxu3 %v4976_v33  ;;  %4981 = vmatmul.f32.vlgmr.msrb.gmra.mxu2 %v4980_v22 }
 0xb0f   : > { %5101 = vmatmul.f32.vlgmr.msra.gmra.mxu3 %v4976_v33  ;;  %5079 = vmatmul.f32.vlgmr.msra.gmra.mxu2 %v4976_v33 }
 0xb4e   : > { %v4752_v20 = vpop.f32.mrf.mxu1 }
 0xb50   : > { %v4728_v61 = vpop.f32.mrf.mxu0 }
 0xb57   : > { %v4856_v63 = vpop.f32.mrf.mxu1 }
 0xb58   : > { %v4830_v39 = vpop.f32.mrf.mxu0 }
 0xb59   : > { %v4857_v1 = vadd.f32 %v4856_v63, %v4830_v39 }
 0xb5a   : > { %v4552_v38 = vpop.f32.mrf.mxu3  ;;  %v4526_v28 = vpop.f32.mrf.mxu2 }
 0xb5b   : > { %v4553_v29 = vadd.f32 %v4552_v38, %v4526_v28  ;;  %v4454_v38 = vsel %vm648_vm6, %v4438_v16, %v4453_v58 }
 0xb5c   : > { %v4462_v18 = vperm.slane %v4454_v38, %v7512_v9 }
 0xb5e   : > { %v4480_v16 = vsel %vm648_vm6, %v4479_v49, %v4462_v18  ;;  %v4481_v27 = vrot.slane %v4462_v18, 4 }
 0xb5f   : > { %v4950_v52 = vpop.f32.mrf.mxu1  ;;  %v4495_v53 = vadd.f32 %v4491_v15, %v4480_v16 }
 0xb60   : > { %v4928_v4 = vpop.f32.mrf.mxu0 }
 0xb62   : > { %v4600_v12 = vpop.f32.mrf.mxu3  ;;  %v4576_v5 = vpop.f32.mrf.mxu2 }
 0xb63   : > { %v4577_v34 = vadd.f32 %v4576_v5, %v4553_v29 }
 0xb65   : > { %v4601_v8 = vadd.f32 %v4600_v12, %v4577_v34 }
 0xb68   : > { %v5032_v0 = vpop.f32.mrf.mxu0 }
 0xb6a   : > { %v4646_v40 = vpop.f32.mrf.mxu3  ;;  %v4624_v44 = vpop.f32.mrf.mxu2 }
 0xb6b   : > { %v4625_v43 = vadd.f32 %v4624_v44, %v4601_v8  ;;  %v5056_v44 = vpop.f32.mrf.mxu1 }
 0xb6d   : > { %v4647_v17 = vadd.f32 %v4646_v40, %v4625_v43 }
 0xb6f   : > { %v5105_v37 = vmul.f32 0.35355338, %v4647_v17 }
 0xb71   : > { %v5109_v48 = vadd.f32 %v5105_v37, %v4493_v21  ;;  %v4492_v37 = vperm.slane %v8285_v50, 3 }
 0xb72   : > { %v4704_v55 = vpop.f32.mrf.mxu3  ;;  %v4678_v51 = vpop.f32.mrf.mxu2 }
 0xb73   : > { %v4705_v56 = vadd.f32 %v4704_v55, %v4678_v51  ;;  %v8294_v33 = vadd.f32 %v8291_v19, %v5109_v48  ;;  %v4482_v55 = vsel %vm648_vm6, %v4474_v10, %v4481_v27 }
 0xb74   : > { %v4496_v51 = vadd.f32 %v4492_v37, %v4482_v55 }
 0xb75   : > { %v4729_v59 = vadd.f32 %v4728_v61, %v4705_v56  ;;  %v5117_v32 = vsel %vm1454_vm7, %v8294_v33, -inf }
 0xb76   : > { %5118 = vmax.xlane.f32.xlu1 %v5117_v32 }
 0xb77   : > { %v4753_v57 = vadd.f32 %v4752_v20, %v4729_v59 }
 0xb7a   : > { %v4798_v41 = vpop.f32.mrf.mxu3  ;;  %v4776_v22 = vpop.f32.mrf.mxu2 }
 0xb7b   : > { %v4777_v45 = vadd.f32 %v4776_v22, %v4753_v57 }
 0xb7d   : > { %v4799_v7 = vadd.f32 %v4798_v41, %v4777_v45  ;;  %v3753_v41 = vpop.permute.xlu0 %3752 }
 0xb7f   : > { %v5106_v6 = vmul.f32 0.35355338, %v4799_v7 }
 0xb81   : > { %v5110_v54 = vadd.f32 %v5106_v6, %v4494_v36 }
 0xb82   : > { %v4904_v23 = vpop.f32.mrf.mxu3  ;;  %v4880_v14 = vpop.f32.mrf.mxu2 }
 0xb83   : > { %v4881_v28 = vadd.f32 %v4880_v14, %v4857_v1  ;;  %v5114_v60 = vadd.f32 %v8291_v19, %v5110_v54 }
 0xb85   : > { %v4905_v12 = vadd.f32 %v4904_v23, %v4881_v28  ;;  %v5120_v26 = vsel %vm1454_vm7, %v5114_v60, -inf }
 0xb86   : > { %5121 = vmax.xlane.f32.xlu0 %v5120_v26 }
 0xb87   : > { %v4929_v35 = vadd.f32 %v4928_v4, %v4905_v12 }
 0xb89   : > { %v4951_v29 = vadd.f32 %v4950_v52, %v4929_v35  ;;  %v3878_v52 = vrot.slane %v3753_v41, 4 }
 0xb8a   : > { %v5008_v5 = vpop.f32.mrf.mxu3  ;;  %v4982_v13 = vpop.f32.mrf.mxu2 }
 0xb8b   : > { %v5107_v30 = vmul.f32 0.35355338, %v4951_v29  ;;  %v5009_v34 = vadd.f32 %v5008_v5, %v4982_v13 }
 0xb8d   : > { %v5033_v40 = vadd.f32 %v5032_v0, %v5009_v34  ;;  %v5111_v8 = vadd.f32 %v5107_v30, %v4495_v53 }
 0xb8f   : > { %v5057_v42 = vadd.f32 %v5056_v44, %v5033_v40  ;;  %v5115_v43 = vadd.f32 %v8291_v19, %v5111_v8 }
 0xb91   : > { %v5123_v17 = vsel %vm1454_vm7, %v5115_v43, -inf }
 0xb92   : > { %v5080_v61 = vpop.f32.mrf.mxu2  ;;  %5124 = vmax.xlane.f32.xlu2 %v5123_v17  ;;  %v5102_v21 = vpop.f32.mrf.mxu3 }
 0xb93   : > { %v5081_v20 = vadd.f32 %v5080_v61, %v5057_v42 }
 0xb95   : > { %v5103_v48 = vadd.f32 %v5102_v21, %v5081_v20 }
 0xb97   : > { %v5108_v56 = vmul.f32 0.35355338, %v5103_v48 }
 0xb99   : > { %v5112_v59 = vadd.f32 %v5108_v56, %v4496_v51 }
 0xb9a   : > { %3761 = vrot.lane.b32.xlu0 %v8122_v46, %s7031_s20 }
 0xb9b   : > { %v5116_v32 = vadd.f32 %v8291_v19, %v5112_v59 }
 0xb9d   : > { %v5126_v57 = vsel %vm1454_vm7, %v5116_v32, -inf }
 0xb9e   : > { %5127 = vmax.xlane.f32.xlu1 %v5126_v57 }
 0xbaa   : > { %3755 = vrot.lane.b32.xlu2 %v8122_v46, %s8609_s23 }
 0xbb7   : > { %3758 = vrot.lane.b32.xlu1 %v8122_v46, %s8610_s30  ;;  %s6704_s30 = sshll.u32 %s7101_s8, 3  ;;  %s6553_s8 = scalar_lea.sflag [#allocation4], %s7192_s26 }
 0xbe9   : > { %v5119_v50 = vpop.xlane.xlu1 %5118 }
 0xbea   : > { %v5129_v39 = vsub.f32 %v8294_v33, %v5119_v50 }
 0xbec   : > { %v5133_v31 = vmul.f32 1.442695, %v5129_v39 }
 0xbee   : > { %6824 = vpow2.f32 %v5133_v31 }
 0xbf4   : > { %v8321_v25 = vpop.eup %6824 }
 0xbf5   : > { %v5141_v19 = vsel %vm1454_vm7, %v8321_v25, 0.0 }
 0xbf6   : > { %5142 = vadd.xlane.f32.xlu2 %v5141_v19 }
 0xbf9   : > { %v5122_v63 = vpop.xlane.xlu0 %5121 }
 0xbfa   : > { %v5130_v22 = vsub.f32 %v5114_v60, %v5122_v63 }
 0xbfc   : > { %v5135_v47 = vmul.f32 1.442695, %v5130_v22 }
 0xbfe   : > { %6826 = vpow2.f32 %v5135_v47 }
 0xc04   : > { %v8325_v45 = vpop.eup %6826 }
 0xc05   : > { %v5125_v2 = vpop.xlane.xlu2 %5124  ;;  %v5144_v46 = vsel %vm1454_vm7, %v8325_v45, 0.0 }
 0xc06   : > { %v5131_v33 = vsub.f32 %v5115_v43, %v5125_v2  ;;  %5145 = vadd.xlane.f32.xlu0 %v5144_v46 }
 0xc08   : > { %v5137_v62 = vmul.f32 1.442695, %v5131_v33 }
 0xc0a   : > { %6828 = vpow2.f32 %v5137_v62 }
 0xc0c   : > { %v3762_v54 = vpop.permute.xlu0 %3761 }
 0xc0d   : > { %v3756_v38 = vpop.permute.xlu2 %3755  ;;  %v3888_v14 = vrot.slane %v3762_v54, 4 }
 0xc0e   : > { %v3890_v4 = vrot.slane %v3756_v38, 4 }
 0xc0f   : > { %v3889_v60 = vsel %vm648_vm6, %v3888_v14, %v3756_v38 }
 0xc10   : > { %v8329_v58 = vpop.eup %6828  ;;  %v3891_v28 = vsel %vm648_vm6, %v3762_v54, %v3890_v4  ;;  %v3895_v18 = vperm.slane %v3889_v60, %v7499_v11 }
 0xc11   : > { %v5128_v7 = vpop.xlane.xlu1 %5127  ;;  %v5147_v36 = vsel %vm1454_vm7, %v8329_v58, 0.0  ;;  %v3899_v49 = vperm.slane %v3891_v28, %v7499_v11 }
 0xc12   : > { %v5132_v6 = vsub.f32 %v5116_v32, %v5128_v7  ;;  %5148 = vadd.xlane.f32.xlu1 %v5147_v36  ;;  %v3900_v29 = vrot.slane %v3895_v18, 4 }
 0xc13   : > { %v3912_v35 = vrot.slane %v3899_v49, 4 }
 0xc14   : > { %v5139_v10 = vmul.f32 1.442695, %v5132_v6 }
 0xc16   : > { %6830 = vpow2.f32 %v5139_v10 }
 0xc1c   : > { %v8333_v23 = vpop.eup %6830 }
 0xc1d   : > { %v5150_v1 = vsel %vm1454_vm7, %v8333_v23, 0.0 }
 0xc1e   : > { %5151 = vadd.xlane.f32.xlu2 %v5150_v1 }
 0xc29   : > { %v3759_v12 = vpop.permute.xlu1 %3758 }
 0xc2a   : > { %v3876_v26 = vrot.slane %v3759_v12, 4  ;;  %v3879_v15 = vsel %vm648_vm6, %v3759_v12, %v3878_v52 }
 0xc2b   : > { %v3887_v5 = vperm.slane %v3879_v15, %v7499_v11 }
 0xc2c   : > { %v3877_v16 = vsel %vm648_vm6, %v3876_v26, %v3753_v41 }
 0xc2d   : > { %v3883_v13 = vperm.slane %v3877_v16, %v7499_v11  ;;  %v3913_v30 = vsel %vm648_vm6, %v3912_v35, %v3887_v5  ;;  %v3914_v34 = vrot.slane %v3887_v5, 4 }
 0xc2e   : > { %v3919_v53 = vperm.slane %v3913_v30, %v7512_v9 }
 0xc2f   : > { %v3901_v0 = vsel %vm648_vm6, %v3900_v29, %v3883_v13  ;;  %v3902_v40 = vrot.slane %v3883_v13, 4  ;;  %v3915_v8 = vsel %vm648_vm6, %v3899_v49, %v3914_v34 }
 0xc30   : > { %v3907_v44 = vperm.slane %v3901_v0, %v7512_v9  ;;  %v3923_v42 = vperm.slane %v3915_v8, %v7512_v9  ;;  %v3928_v17 = vrot.slane %v3919_v53, 4 }
 0xc31   : > { %v3903_v43 = vsel %vm648_vm6, %v3895_v18, %v3902_v40 }
 0xc32   : > { %v3911_v27 = vperm.slane %v3903_v43, %v7512_v9  ;;  %v3930_v61 = vrot.slane %v3923_v42, 4  ;;  %v3924_v21 = vrot.slane %v3907_v44, 4  ;;  %v3929_v51 = vsel %vm648_vm6, 0.0, %v3928_v17 }
 0xc34   : > { %v3926_v37 = vrot.slane %v3911_v27, 4  ;;  %v3931_v20 = vsel %vm648_vm6, 0.0, %v3930_v61  ;;  %v4055_v59 = vsel %vm648_vm6, %v3930_v61, %v3919_v53  ;;  %v3925_v57 = vsel %vm648_vm6, 0.0, %v3924_v21 }
 0xc35   : > { %v4060_v55 = vrot.slane %v3931_v20, 4  ;;  %v4059_v19 = vperm.slane %v4055_v59, %v7499_v11 }
 0xc36   : > { %v3927_v48 = vsel %vm648_vm6, 0.0, %v3926_v37  ;;  %v4044_v39 = vsel %vm648_vm6, %v3926_v37, %v3907_v44 }
 0xc37   : > { %v4049_v56 = vrot.slane %v3927_v48, 4  ;;  %v4061_v32 = vsel %vm648_vm6, %v4060_v55, %v3929_v51  ;;  %v4048_v22 = vperm.slane %v4044_v39, %v7499_v11  ;;  %v4080_v12 = vrot.slane %v4059_v19, 4 }
 0xc38   : > { %v4065_v50 = vperm.slane %v4061_v32, %v7499_v11 }
 0xc39   : > { %v4050_v31 = vsel %vm648_vm6, %v4049_v56, %v3925_v57  ;;  %v4068_v26 = vrot.slane %v4048_v22, 4 }
 0xc3a   : > { %v4054_v41 = vperm.slane %v4050_v31, %v7499_v11  ;;  %v4078_v63 = vrot.slane %v4065_v50, 4  ;;  %v4081_v15 = vsel %vm648_vm6, %v4065_v50, %v4080_v12 }
 0xc3b   : > { %v4089_v35 = vperm.slane %v4081_v15, %v7512_v9 }
 0xc3c   : > { %v4066_v47 = vrot.slane %v4054_v41, 4  ;;  %v4079_v2 = vsel %vm648_vm6, %v4078_v63, %v4059_v19  ;;  %v4069_v5 = vsel %vm648_vm6, %v4054_v41, %v4068_v26 }
 0xc3d   : > { %v4085_v46 = vperm.slane %v4079_v2, %v7512_v9  ;;  %v4077_v16 = vperm.slane %v4069_v5, %v7512_v9  ;;  %v4094_v29 = vrot.slane %v4089_v35, 4 }
 0xc3e   : > { %v4067_v33 = vsel %vm648_vm6, %v4066_v47, %v4048_v22 }
 0xc3f   : > { %v4073_v62 = vperm.slane %v4067_v33, %v7512_v9  ;;  %v4090_v7 = vrot.slane %v4085_v46, 4  ;;  %v4095_v30 = vsel %vm648_vm6, %v4094_v29, %v4077_v16  ;;  %v4096_v27 = vrot.slane %v4077_v16, 4 }
 0xc40   : > { %v5477_v34 = vand.u32 4294901760, %v4095_v30 }
 0xc41   : > { %v4091_v36 = vsel %vm648_vm6, %v4090_v7, %v4073_v62  ;;  %v4092_v6 = vrot.slane %v4073_v62, 4 }
 0xc42   : > { %v5179_v10 = vand.u32 4294901760, %v4091_v36  ;;  %v5504_v40 = vsub.f32 %v4095_v30, %v5477_v34 }
 0xc43   : > { %v4093_v38 = vsel %vm648_vm6, %v4085_v46, %v4092_v6 }
 0xc44   : > { %5180 = vmatpush.msra.mxu0 %v5179_v10  ;;  %5256 = vmatpush.msrb.mxu3 %v5179_v10  ;;  %v5206_v1 = vsub.f32 %v4091_v36, %v5179_v10  ;;  %v5328_v54 = vand.u32 4294901760, %v4093_v38  ;;  %v5505_v42 = vand.u32 4294901760, %v5504_v40 }
 0xc46   : > { %5233 = vmatpush.msrb.mxu2 %v5206_v1  ;;  %v5355_v4 = vsub.f32 %v4093_v38, %v5328_v54  ;;  %v5207_v14 = vand.u32 4294901760, %v5206_v1  ;;  %v5506_v21 = vsub.f32 %v5504_v40, %v5505_v42 }
 0xc48   : > { %5329 = vmatpush.msra.mxu2 %v5328_v54  ;;  %5282 = vmatpush.msrb.mxu0 %v5207_v14  ;;  %v5208_v28 = vsub.f32 %v5206_v1, %v5207_v14  ;;  %v5356_v60 = vand.u32 4294901760, %v5355_v4  ;;  %v5507_v55 = vand.u32 4294901760, %v5506_v21 }
 0xc4a   : > { %v5209_v49 = vand.u32 4294901760, %v5208_v28  ;;  %v5357_v52 = vsub.f32 %v5355_v4, %v5356_v60 }
 0xc4c   : > { %5210 = vmatpush.msra.mxu1 %v5209_v49  ;;  %v5358_v18 = vand.u32 4294901760, %v5357_v52 }
 0xc4e   : > { %5304 = vmatpush.msrb.mxu1 %v5179_v10  ;;  %5359 = vmatpush.msra.mxu3 %v5358_v18 }
 0xc69   : > { %v5143_v13 = vpop.xlane.xlu2 %5142 }
 0xc6a   : > { %6832 = vrcp.f32 %v5143_v13 }
 0xc70   : > { %v6833_v53 = vpop.eup %6832 }
 0xc71   : > { %v5157_v0 = vmul.f32 %v6833_v53, %v8321_v25  ;;  %v4097_v25 = vsel %vm648_vm6, %v4089_v35, %v4096_v27 }
 0xc72   : > { %v5626_v48 = vand.u32 4294901760, %v4097_v25 }
 0xc73   : > { %v5162_v8 = vsel %vm1454_vm7, %v5157_v0, 0 }
 0xc74   : > { %v5181_v44 = vand.u32 4294901760, %v5162_v8  ;;  %v5653_v59 = vsub.f32 %v4097_v25, %v5626_v48 }
 0xc76   : > { %v5182_v43 = vsub.f32 %v5162_v8, %v5181_v44  ;;  %5212 = vmatmul.f32.vlgmr.msra.gmra.mxu1 %v5181_v44  ;;  %v5654_v31 = vand.u32 4294901760, %v5653_v59 }
 0xc77   : > { %5405 = vmatpush.msra.mxu1 %v5328_v54 }
 0xc78   : > { %5236 = vmatmul.f32.vlgmr.msrb.gmra.mxu2 %v5182_v43  ;;  %v5183_v17 = vand.u32 4294901760, %v5182_v43  ;;  %v5655_v63 = vsub.f32 %v5653_v59, %v5654_v31 }
 0xc79   : > { %5431 = vmatpush.msrb.mxu2 %v5356_v60  ;;  %v5146_v61 = vpop.xlane.xlu0 %5145 }
 0xc7a   : > { %6834 = vrcp.f32 %v5146_v61  ;;  %5260 = vmatmul.f32.vlgmr.msrb.gmra.mxu3 %v5183_v17  ;;  %v5184_v37 = vsub.f32 %v5182_v43, %v5183_v17  ;;  %v5656_v2 = vand.u32 4294901760, %v5655_v63 }
 0xc7b   : > { %5453 = vmatpush.msrb.mxu3 %v5328_v54 }
 0xc7c   : > { %v5185_v20 = vand.u32 4294901760, %v5184_v37 }
 0xc7e   : > { %5186 = vmatmul.f32.vlgmr.msra.gmra.mxu0 %v5185_v20  ;;  %5306 = vmatmul.f32.vlgmr.msrb.gmra.mxu1 %v5181_v44 }
 0xc7f   : > { %5382 = vmatpush.msra.mxu0 %v5355_v4  ;;  %5508 = vmatpush.msrb.mxu1 %v5507_v55 }
 0xc80   : > { %v6835_v51 = vpop.eup %6834 }
 0xc81   : > { %v5158_v56 = vmul.f32 %v6835_v51, %v8325_v45 }
 0xc83   : > { %v5311_v32 = vsel %vm1454_vm7, %v5158_v56, 0 }
 0xc84   : > { %v5330_v57 = vand.u32 4294901760, %v5311_v32 }
 0xc85   : > { %v5149_v50 = vpop.xlane.xlu1 %5148 }
 0xc86   : > { %v5331_v39 = vsub.f32 %v5311_v32, %v5330_v57  ;;  %6836 = vrcp.f32 %v5149_v50  ;;  %5284 = vmatmul.f32.vlgmr.msrb.gmra.mxu0 %v5181_v44  ;;  %5361 = vmatmul.f32.vlgmr.msra.gmra.mxu3 %v5330_v57 }
 0xc87   : > { %5478 = vmatpush.msrb.mxu0 %v5477_v34  ;;  %5554 = vmatpush.msra.mxu3 %v5477_v34 }
 0xc88   : > { %v5332_v41 = vand.u32 4294901760, %v5331_v39 }
 0xc8a   : > { %5409 = vmatmul.f32.vlgmr.msra.gmra.mxu1 %v5332_v41  ;;  %v5333_v19 = vsub.f32 %v5331_v39, %v5332_v41 }
 0xc8b   : > { %5602 = vmatpush.msra.mxu1 %v5477_v34 }
 0xc8c   : > { %v6837_v22 = vpop.eup %6836  ;;  %v5334_v47 = vand.u32 4294901760, %v5333_v19 }
 0xc8d   : > { %v5159_v45 = vmul.f32 %v6837_v22, %v8329_v58 }
 0xc8e   : > { %5335 = vmatmul.f32.vlgmr.msra.gmra.mxu2 %v5334_v47  ;;  %5385 = vmatmul.f32.vlgmr.msra.gmra.mxu0 %v5331_v39 }
 0xc8f   : > { %v5460_v46 = vsel %vm1454_vm7, %v5159_v45, 0  ;;  %5455 = vmatmul.f32.vlgmr.msrb.gmra.mxu3 %v5330_v57  ;;  %5531 = vmatpush.msra.mxu2 %v5504_v40 }
 0xc90   : > { %v5479_v33 = vand.u32 4294901760, %v5460_v46  ;;  %5580 = vmatpush.msra.mxu0 %v5505_v42  ;;  %5657 = vmatpush.msrb.mxu3 %v5656_v2 }
 0xc91   : > { %v5152_v62 = vpop.xlane.xlu2 %5151 }
 0xc92   : > { %v5480_v7 = vsub.f32 %v5460_v46, %v5479_v33  ;;  %6838 = vrcp.f32 %v5152_v62  ;;  %5510 = vmatmul.f32.vlgmr.msrb.gmra.mxu1 %v5479_v33 }
 0xc93   : > { %5703 = vmatpush.msrb.mxu1 %v5626_v48 }
 0xc94   : > { %v5481_v36 = vand.u32 4294901760, %v5480_v7 }
 0xc96   : > { %5433 = vmatmul.f32.vlgmr.msrb.gmra.mxu2 %v5330_v57  ;;  %v5482_v6 = vsub.f32 %v5480_v7, %v5481_v36 }
 0xc97   : > { %5558 = vmatmul.f32.vlgmr.msra.gmra.mxu3 %v5481_v36  ;;  %5627 = vmatpush.msrb.mxu2 %v5626_v48 }
 0xc98   : > { %v6839_v58 = vpop.eup %6838  ;;  %5751 = vmatpush.msra.mxu3 %v5626_v48  ;;  %v5483_v10 = vand.u32 4294901760, %v5482_v6 }
 0xc99   : > { %v5160_v38 = vmul.f32 %v6839_v58, %v8333_v23 }
 0xc9a   : > { %5484 = vmatmul.f32.vlgmr.msrb.gmra.mxu0 %v5483_v10  ;;  %5604 = vmatmul.f32.vlgmr.msra.gmra.mxu1 %v5479_v33 }
 0xc9b   : > { %v5609_v1 = vsel %vm1454_vm7, %v5160_v38, 0  ;;  %5680 = vmatpush.msrb.mxu0 %v5653_v59 }
 0xc9c   : > { %v5628_v54 = vand.u32 4294901760, %v5609_v1 }
 0xc9e   : > { %v5629_v4 = vsub.f32 %v5609_v1, %v5628_v54  ;;  %5534 = vmatmul.f32.vlgmr.msra.gmra.mxu2 %v5480_v7 }
 0xc9f   : > { %5659 = vmatmul.f32.vlgmr.msrb.gmra.mxu3 %v5628_v54  ;;  %5729 = vmatpush.msra.mxu2 %v5654_v31 }
 0xca0   : > { %v5630_v14 = vand.u32 4294901760, %v5629_v4 }
 0xca2   : > { %5582 = vmatmul.f32.vlgmr.msra.gmra.mxu0 %v5479_v33  ;;  %5707 = vmatmul.f32.vlgmr.msrb.gmra.mxu1 %v5630_v14  ;;  %v5631_v28 = vsub.f32 %v5629_v4, %v5630_v14 }
 0xca4   : > { %v5632_v60 = vand.u32 4294901760, %v5631_v28 }
 0xca6   : > { %5633 = vmatmul.f32.vlgmr.msrb.gmra.mxu2 %v5632_v60 }
 0xca7   : > { %5753 = vmatmul.f32.vlgmr.msra.gmra.mxu3 %v5628_v54 }
 0xcaa   : > { %5683 = vmatmul.f32.vlgmr.msrb.gmra.mxu0 %v5629_v4 }
 0xcae   : > { %5731 = vmatmul.f32.vlgmr.msra.gmra.mxu2 %v5628_v54 }
 0xcf3   : > { %v5213_v49 = vpop.f32.mrf.mxu1 }
 0xcfb   : > { %v5187_v23 = vpop.f32.mrf.mxu0  ;;  %v5237_v12 = vpop.f32.mrf.mxu2 }
 0xcfc   : > { %v5307_v26 = vpop.f32.mrf.mxu1  ;;  %v5214_v53 = vadd.f32 %v5213_v49, %v5187_v23 }
 0xcfd   : > { %v5261_v52 = vpop.f32.mrf.mxu3 }
 0xcfe   : > { %v5238_v40 = vadd.f32 %v5237_v12, %v5214_v53 }
 0xd00   : > { %v5262_v17 = vadd.f32 %v5261_v52, %v5238_v40 }
 0xd03   : > { %v5285_v18 = vpop.f32.mrf.mxu0 }
 0xd04   : > { %v5286_v37 = vadd.f32 %v5285_v18, %v5262_v17 }
 0xd06   : > { %v5308_v51 = vadd.f32 %v5307_v26, %v5286_v37 }
 0xd07   : > { %v5410_v5 = vpop.f32.mrf.mxu1 }
 0xd08   : > { %v5759_v31 = vrot.slane %v5308_v51, 4 }
 0xd09   : > { %v5362_v15 = vpop.f32.mrf.mxu3 }
 0xd0b   : > { %v5386_v35 = vpop.f32.mrf.mxu0 }
 0xd0f   : > { %v5511_v34 = vpop.f32.mrf.mxu1 }
 0xd11   : > { %v5336_v16 = vpop.f32.mrf.mxu2 }
 0xd12   : > { %v5456_v29 = vpop.f32.mrf.mxu3  ;;  %v5363_v43 = vadd.f32 %v5362_v15, %v5336_v16 }
 0xd14   : > { %v5387_v25 = vadd.f32 %v5386_v35, %v5363_v43 }
 0xd16   : > { %v5411_v56 = vadd.f32 %v5410_v5, %v5387_v25 }
 0xd17   : > { %v5485_v13 = vpop.f32.mrf.mxu0  ;;  %v5605_v21 = vpop.f32.mrf.mxu1 }
 0xd18   : > { %v5512_v8 = vadd.f32 %v5511_v34, %v5485_v13 }
 0xd19   : > { %v5434_v30 = vpop.f32.mrf.mxu2 }
 0xd1a   : > { %v5559_v0 = vpop.f32.mrf.mxu3  ;;  %v5435_v50 = vadd.f32 %v5434_v30, %v5411_v56 }
 0xd1c   : > { %v5457_v63 = vadd.f32 %v5456_v29, %v5435_v50 }
 0xd1e   : > { %v5771_v7 = vrot.slane %v5457_v63, 4 }
 0xd1f   : > { %v5583_v44 = vpop.f32.mrf.mxu0  ;;  %v5708_v19 = vpop.f32.mrf.mxu1 }
 0xd21   : > { %v5535_v42 = vpop.f32.mrf.mxu2 }
 0xd22   : > { %v5536_v27 = vadd.f32 %v5535_v42, %v5512_v8  ;;  %v5660_v55 = vpop.f32.mrf.mxu3 }
 0xd24   : > { %v5560_v61 = vadd.f32 %v5559_v0, %v5536_v27 }
 0xd26   : > { %v5584_v20 = vadd.f32 %v5583_v44, %v5560_v61 }
 0xd27   : > { %v5684_v57 = vpop.f32.mrf.mxu0 }
 0xd28   : > { %v5606_v59 = vadd.f32 %v5605_v21, %v5584_v20 }
 0xd29   : > { %v5634_v48 = vpop.f32.mrf.mxu2 }
 0xd2a   : > { %v5661_v32 = vadd.f32 %v5660_v55, %v5634_v48  ;;  %v5757_v41 = vrot.slane %v5606_v59, 4  ;;  %v5760_v22 = vsel %vm648_vm6, %v5606_v59, %v5759_v31  ;;  %v5754_v62 = vpop.f32.mrf.mxu3 }
 0xd2b   : > { %v5768_v33 = vperm.slane %v5760_v22, %v7499_v11 }
 0xd2c   : > { %v5685_v39 = vadd.f32 %v5684_v57, %v5661_v32  ;;  %v5758_v2 = vsel %vm648_vm6, %v5757_v41, %v5308_v51 }
 0xd2d   : > { %v5764_v6 = vperm.slane %v5758_v2, %v7499_v11  ;;  %v5795_v38 = vrot.slane %v5768_v33, 4 }
 0xd2e   : > { %v5709_v47 = vadd.f32 %v5708_v19, %v5685_v39 }
 0xd2f   : > { %v5783_v4 = vrot.slane %v5764_v6, 4 }
 0xd31   : > { %v5732_v45 = vpop.f32.mrf.mxu2 }
 0xd32   : > { %v5733_v46 = vadd.f32 %v5732_v45, %v5709_v47 }
 0xd34   : > { %v5755_v36 = vadd.f32 %v5754_v62, %v5733_v46 }
 0xd36   : > { %v5769_v58 = vrot.slane %v5755_v36, 4  ;;  %v5772_v10 = vsel %vm648_vm6, %v5755_v36, %v5771_v7  ;;  %v6688_v36 = vld [vmem:[%s8581_s3 + $0x28] sm:$0xff] }
 0xd37   : > { %v5780_v1 = vperm.slane %v5772_v10, %v7499_v11  ;;  %v5906_v10 = vand.u32 4294901760, %v6688_v36 }
 0xd38   : > { %v5770_v54 = vsel %vm648_vm6, %v5769_v58, %v5457_v63 }
 0xd39   : > { %v5776_v14 = vperm.slane %v5770_v54, %v7499_v11  ;;  %v5793_v28 = vrot.slane %v5780_v1, 4  ;;  %v5796_v60 = vsel %vm648_vm6, %v5780_v1, %v5795_v38  ;;  %v6687_v38 = vld [vmem:[%s8581_s3 + $0x20] sm:$0xff] }
 0xd3a   : > { %v5804_v23 = vperm.slane %v5796_v60, %v7512_v9 }
 0xd3b   : > { %v5781_v49 = vrot.slane %v5776_v14, 4  ;;  %v5784_v52 = vsel %vm648_vm6, %v5776_v14, %v5783_v4  ;;  %v5794_v18 = vsel %vm648_vm6, %v5793_v28, %v5768_v33  ;;  %v6689_v33 = vld [vmem:[%s8581_s3 + $0x30] sm:$0xff]  ;;  %v5944_v4 = vsub.f32 %v6688_v36, %v5906_v10 }
 0xd3c   : > { %v5792_v12 = vperm.slane %v5784_v52, %v7512_v9  ;;  %v5800_v26 = vperm.slane %v5794_v18, %v7512_v9  ;;  %v5811_v15 = vrot.slane %v5804_v23, 4  ;;  %v5904_v7 = vand.u32 4294901760, %v6689_v33 }
 0xd3d   : > { %v5782_v35 = vsel %vm648_vm6, %v5781_v49, %v5764_v6  ;;  %v5908_v14 = vand.u32 4294901760, %v6687_v38  ;;  %v5945_v23 = vand.u32 4294901760, %v5944_v4 }
 0xd3e   : > { %v5788_v5 = vperm.slane %v5782_v35, %v7512_v9  ;;  %v5807_v16 = vrot.slane %v5792_v12, 4  ;;  %v5809_v29 = vrot.slane %v5800_v26, 4  ;;  %v5812_v13 = vsel %vm648_vm6, 0.0, %v5811_v15 }
 0xd3f   : > { %v5829_v30 = vrot.slane %v5812_v13, 4  ;;  %v5824_v34 = vsel %vm648_vm6, %v5811_v15, %v5800_v26  ;;  %v5938_v58 = vsub.f32 %v6689_v33, %v5904_v7  ;;  %v5950_v49 = vsub.f32 %v6687_v38, %v5908_v14 }
 0xd40   : > { %v5805_v53 = vrot.slane %v5788_v5, 4  ;;  %v5808_v0 = vsel %vm648_vm6, 0.0, %v5807_v16  ;;  %v5810_v40 = vsel %vm648_vm6, 0.0, %v5809_v29  ;;  %v5813_v8 = vsel %vm648_vm6, %v5807_v16, %v5788_v5 }
 0xd41   : > { %v5817_v44 = vperm.slane %v5813_v8, %v7499_v11  ;;  %v5818_v42 = vrot.slane %v5808_v0, 4  ;;  %v5828_v43 = vperm.slane %v5824_v34, %v7499_v11  ;;  %v5830_v27 = vsel %vm648_vm6, %v5829_v30, %v5810_v40 }
 0xd42   : > { %v5806_v17 = vsel %vm648_vm6, 0.0, %v5805_v53  ;;  %v5834_v61 = vperm.slane %v5830_v27, %v7499_v11  ;;  %v5939_v54 = vand.u32 4294901760, %v5938_v58  ;;  %v5946_v18 = vsub.f32 %v5944_v4, %v5945_v23 }
 0xd43   : > { %v5819_v21 = vsel %vm648_vm6, %v5818_v42, %v5806_v17  ;;  %v5837_v37 = vrot.slane %v5817_v44, 4  ;;  %v5849_v25 = vrot.slane %v5828_v43, 4  ;;  %v5951_v12 = vand.u32 4294901760, %v5950_v49 }
 0xd44   : > { %v5823_v20 = vperm.slane %v5819_v21, %v7499_v11  ;;  %v5847_v55 = vrot.slane %v5834_v61, 4  ;;  %v5940_v60 = vsub.f32 %v5938_v58, %v5939_v54  ;;  %v5947_v26 = vand.u32 4294901760, %v5946_v18 }
 0xd45   : > { %v5850_v48 = vsel %vm648_vm6, %v5834_v61, %v5849_v25  ;;  %v5952_v15 = vsub.f32 %v5950_v49, %v5951_v12 }
 0xd46   : > { %v5838_v51 = vsel %vm648_vm6, %v5823_v20, %v5837_v37  ;;  %v5858_v56 = vperm.slane %v5850_v48, %v7512_v9  ;;  %v5835_v59 = vrot.slane %v5823_v20, 4  ;;  %v5848_v32 = vsel %vm648_vm6, %v5847_v55, %v5828_v43 }
 0xd47   : > { %v5846_v57 = vperm.slane %v5838_v51, %v7512_v9  ;;  %v5854_v50 = vperm.slane %v5848_v32, %v7512_v9  ;;  %v5941_v52 = vand.u32 4294901760, %v5940_v60  ;;  %v5953_v35 = vand.u32 4294901760, %v5952_v15 }
 0xd48   : > { %v5863_v39 = vrot.slane %v5858_v56, 4  ;;  %v5836_v31 = vsel %vm648_vm6, %v5835_v59, %v5817_v44 }
 0xd49   : > { %v5865_v41 = vrot.slane %v5846_v57, 4  ;;  %v5842_v11 = vperm.slane %v5836_v31, %v7512_v9  ;;  %v5859_v19 = vrot.slane %v5854_v50, 4  ;;  %v6690_v9 = vld [vmem:[%s8581_s3 + $0x38] sm:$0xff] }
 0xd4a   : > { %v5864_v63 = vsel %vm648_vm6, %v5863_v39, %v5846_v57  ;;  %v5902_v46 = vand.u32 4294901760, %v6690_v9 }
 0xd4b   : > { %5872 = vrot.lane.b32.xlu2 %v5864_v63, %s8611_s10  ;;  %v5866_v22 = vsel %vm648_vm6, %v5858_v56, %v5865_v41  ;;  %v5861_v47 = vrot.slane %v5842_v11, 4  ;;  %v5860_v45 = vsel %vm648_vm6, %v5859_v19, %v5842_v11  ;;  %v8444_v56 = vld [vmem:[#allocation7 + $0x10] sm:$0xff] }
 0xd4c   : > { %5876 = vrot.lane.b32.xlu1 %v5866_v22, %s8612_s13  ;;  %v5932_v62 = vsub.f32 %v6690_v9, %v5902_v46  ;;  %6003 = vmatpush.msrb.mxu3 %v5902_v46  ;;  %v6076_v59 = vperm.slane %v8444_v56, 4  ;;  %v6693_v22 = vld [vmem:[%s8582_s4 + $0x30] sm:$0xff] }
 0xd4d   : > { %v5862_v2 = vsel %vm648_vm6, %v5854_v50, %v5861_v47  ;;  %5903 = vmatpush.msra.mxu0 %v5902_v46 }
 0xd4e   : > { %5868 = vrot.lane.b32.xlu0 %v5862_v2, %s8613_s6  ;;  %v5933_v6 = vand.u32 4294901760, %v5932_v62  ;;  %5974 = vmatpush.msrb.mxu2 %v5932_v62  ;;  %v6692_v2 = vld [vmem:[%s8582_s4 + $0x28] sm:$0xff]  ;;  %s6563_s6 = scalar_lea.hbm %s8585_s7, %s6704_s30 }
 0xd4f   : > { %6005 = vmatpush.msrb.mxu3 %v5904_v7  ;;  %5905 = vmatpush.msra.mxu0 %v5904_v7  ;;  %v6129_v33 = vand.u32 4294901760, %v6692_v2  ;;  %s6567_s27 = sshll.u32 %s6563_s6, 4  ;;  %s6568_s27 = int_to_ptr.hbm [resolvable:$true] %s6567_s27 }
 0xd50   : > { %v5934_v1 = vsub.f32 %v5932_v62, %v5933_v6  ;;  %5977 = vmatpush.msrb.mxu2 %v5938_v58  ;;  %v6691_v62 = vld [vmem:[%s8582_s4 + $0x20] sm:$0xff]  ;;  %s6953_s9 = sshra.s32 %s6568_s27, 4  ;;  %s6954_s9 = int_to_ptr.hbm [resolvable:$true] %s6953_s9 }
 0xd51   : > { %6007 = vmatpush.msrb.mxu3 %v5906_v10  ;;  %5907 = vmatpush.msra.mxu0 %v5906_v10  ;;  %v6131_v58 = vand.u32 4294901760, %v6691_v62  ;;  %s6955_s20 = scalar_lea.hbm %s6954_s9, 8  ;;  %p6960_p7 = scmp.lt.s32.totalorder %s6954_s9, %s8585_s7 }
 0xd52   : > { %v5935_v28 = vand.u32 4294901760, %v5934_v1  ;;  %5980 = vmatpush.msrb.mxu2 %v5944_v4  ;;  %p6956_p1 = scmp.ne.s32.totalorder %s6954_s9, %s6955_s20  ;;  %p6961_p9 = scmp.lt.s32.totalorder %s6959_s18, %s6955_s20 }
 0xd53   : > { %6009 = vmatpush.msrb.mxu3 %v5908_v14  ;;  %5909 = vmatpush.msra.mxu0 %v5908_v14 }
 0xd54   : > { %5936 = vmatpush.msra.mxu1 %v5935_v28  ;;  %5983 = vmatpush.msrb.mxu2 %v5950_v49  ;;  %p6957_p3 = pnand %p6956_p1, %p7141_p0  ;;  %p6962_p8 = por %p6961_p9, %p6960_p7 }
 0xd55   : > { %6032 = vmatpush.msrb.mxu0 %v5933_v6  ;;  %v6167_v6 = vsub.f32 %v6692_v2, %v6129_v33 }
 0xd56   : > { %5942 = vmatpush.msra.mxu1 %v5941_v52  ;;  %p6958_p13 = pneg %p6957_p3 }
 0xd57   : > { %6036 = vmatpush.msrb.mxu0 %v5939_v54  ;;  %v6168_v1 = vand.u32 4294901760, %v6167_v6  ;;  %v6173_v54 = vsub.f32 %v6691_v62, %v6131_v58  ;;  %v6696_v62 = vld [vmem:[%s8583_s5 + $0x48] sm:$0xff] }
 0xd58   : > { %5948 = vmatpush.msra.mxu1 %v5947_v26  ;;  %p6963_p10 = pnand %p6962_p8, %p6958_p13 }
 0xd59   : > { %6040 = vmatpush.msrb.mxu0 %v5945_v23  ;;  %v6174_v28 = vand.u32 4294901760, %v6173_v54 }
 0xd5a   : > { %5954 = vmatpush.msra.mxu1 %v5953_v35 }
 0xd5b   : > { %6044 = vmatpush.msrb.mxu0 %v5951_v12  ;;  %v6175_v23 = vsub.f32 %v6173_v54, %v6174_v28 }
 0xd5c   : > { %6063 = vmatpush.msrb.mxu1 %v5902_v46 }
 0xd5d   : > { %v6176_v18 = vand.u32 4294901760, %v6175_v23 }
 0xd5e   : > { %6065 = vmatpush.msrb.mxu1 %v5904_v7 }
 0xd60   : > { %6067 = vmatpush.msrb.mxu1 %v5906_v10 }
 0xd62   : > { %6069 = vmatpush.msrb.mxu1 %v5908_v14  ;;  %v6169_v14 = vsub.f32 %v6167_v6, %v6168_v1 }
 0xd64   : > { %v6170_v60 = vand.u32 4294901760, %v6169_v14 }
 0xda5   : > { %v5873_v16 = vpop.permute.xlu2 %5872 }
 0xdbe   : > { %v5877_v13 = vpop.permute.xlu1 %5876 }
 0xdc0   : > { %v5869_v5 = vpop.permute.xlu0 %5868 }
 0xdc1   : > { %v5879_v29 = vsel %vm1454_vm7, %v5860_v45, %v5869_v5  ;;  %v6127_v45 = vand.u32 4294901760, %v6693_v22 }
 0xdc2   : > { %v5880_v30 = vsel %vm1097_vm2, %v5879_v29, %v5873_v16 }
 0xdc3   : > { %v5881_v34 = vsel %vm2839_vm8, %v5880_v30, %v5877_v13  ;;  %v6161_v46 = vsub.f32 %v6693_v22, %v6127_v45  ;;  %v6102_v30 = vperm.slane %v8444_v56, 3 }
 0xdc4   : > { %v5888_v53 = vsel %vm387_vm0, %v5881_v34, 0 }
 0xdc5   : > { %v5910_v0 = vand.u32 4294901760, %v5888_v53  ;;  %v6162_v36 = vand.u32 4294901760, %v6161_v46 }
 0xdc7   : > { %v5911_v40 = vsub.f32 %v5888_v53, %v5910_v0  ;;  %5956 = vmatmul.f32.vlgmr.msra.gmra.mxu1 %v5910_v0  ;;  %v6163_v38 = vsub.f32 %v6161_v46, %v6162_v36 }
 0xdc9   : > { %5986 = vmatmul.f32.vlgmr.msrb.gmra.mxu2 %v5911_v40  ;;  %v5912_v8 = vand.u32 4294901760, %v5911_v40  ;;  %v6164_v4 = vand.u32 4294901760, %v6163_v38  ;;  %v6695_v38 = vld [vmem:[%s8583_s5 + $0x40] sm:$0xff] }
 0xdca   : > { %v6333_v14 = vand.u32 4294901760, %v6695_v38 }
 0xdcb   : > { %6013 = vmatmul.f32.vlgmr.msrb.gmra.mxu3 %v5912_v8  ;;  %v5913_v44 = vsub.f32 %v5911_v40, %v5912_v8 }
 0xdcd   : > { %v5914_v42 = vand.u32 4294901760, %v5913_v44 }
 0xdcf   : > { %5915 = vmatmul.f32.vlgmr.msra.gmra.mxu0 %v5914_v42  ;;  %6071 = vmatmul.f32.vlgmr.msrb.gmra.mxu1 %v5910_v0 }
 0xdd7   : > { %6046 = vmatmul.f32.vlgmr.msrb.gmra.mxu0 %v5910_v0 }
 0xe44   : > { %v5957_v43 = vpop.f32.mrf.mxu1 }
 0xe4c   : > { %v5916_v27 = vpop.f32.mrf.mxu0  ;;  %v5987_v61 = vpop.f32.mrf.mxu2 }
 0xe4d   : > { %v5958_v17 = vadd.f32 %v5957_v43, %v5916_v27  ;;  %v6072_v48 = vpop.f32.mrf.mxu1 }
 0xe4e   : > { %v6014_v37 = vpop.f32.mrf.mxu3 }
 0xe4f   : > { %v5988_v21 = vadd.f32 %v5987_v61, %v5958_v17  ;;  %v6702_v17 = vld [vmem:[%s8583_s5 + $0x78] sm:$0xff] }
 0xe50   : > { %v8479_v61 = vand.u32 4294901760, %v6702_v17 }
 0xe51   : > { %v6015_v25 = vadd.f32 %v6014_v37, %v5988_v21  ;;  %v6701_v21 = vld [vmem:[%s8583_s5 + $0x70] sm:$0xff] }
 0xe52   : > { %v8485_v37 = vsub.f32 %v6702_v17, %v8479_v61 }
 0xe54   : > { %v6047_v20 = vpop.f32.mrf.mxu0 }
 0xe55   : > { %v6048_v55 = vadd.f32 %v6047_v20, %v6015_v25  ;;  %v8487_v25 = vand.u32 4294901760, %v6701_v21  ;;  %v6700_v20 = vld [vmem:[%s8583_s5 + $0x68] sm:$0xff] }
 0xe57   : > { %v6073_v51 = vadd.f32 %v6072_v48, %v6048_v55  ;;  %v6354_v55 = vand.u32 4294901760, %v8485_v37  ;;  %v8496_v48 = vsub.f32 %v6701_v21, %v8487_v25 }
 0xe59   : > { %v6075_v32 = vadd.f32 %v6073_v51, %v8056_v3  ;;  %v6694_v3 = vld [vmem:[%s8582_s4 + $0x38] sm:$0xff]  ;;  %v8498_v51 = vand.u32 4294901760, %v6700_v20 }
 0xe5a   : > { %v6125_v63 = vand.u32 4294901760, %v6694_v3 }
 0xe5b   : > { %v8448_v57 = vadd.f32 %v6076_v59, %v6075_v32  ;;  %v6699_v59 = vld [vmem:[%s8583_s5 + $0x60] sm:$0xff]  ;;  %v6355_v32 = vsub.f32 %v8485_v37, %v6354_v55 }
 0xe5c   : > { %v6155_v47 = vsub.f32 %v6694_v3, %v6125_v63  ;;  %6226 = vmatpush.msra.mxu1 %v6125_v63  ;;  %6126 = vmatpush.msra.mxu2 %v6125_v63 }
 0xe5d   : > { %v6078_v50 = vsel %vm387_vm0, %v8448_v57, 0.0 }
 0xe5e   : > { %6079 = vadd.xlane.f32.xlu0 %v6078_v50  ;;  %v6156_v9 = vand.u32 4294901760, %v6155_v47  ;;  %6197 = vmatpush.msra.mxu0 %v6155_v47  ;;  %v6360_v50 = vand.u32 4294901760, %v8496_v48 }
 0xe5f   : > { %6228 = vmatpush.msra.mxu1 %v6127_v45  ;;  %6128 = vmatpush.msra.mxu2 %v6127_v45 }
 0xe60   : > { %v6157_v7 = vsub.f32 %v6155_v47, %v6156_v9  ;;  %6200 = vmatpush.msra.mxu0 %v6161_v46  ;;  %v6697_v47 = vld [vmem:[%s8583_s5 + $0x50] sm:$0xff] }
 0xe61   : > { %6230 = vmatpush.msra.mxu1 %v6129_v33  ;;  %6130 = vmatpush.msra.mxu2 %v6129_v33  ;;  %v6329_v46 = vand.u32 4294901760, %v6697_v47 }
 0xe62   : > { %v6158_v10 = vand.u32 4294901760, %v6157_v7  ;;  %6203 = vmatpush.msra.mxu0 %v6167_v6 }
 0xe63   : > { %6232 = vmatpush.msra.mxu1 %v6131_v58  ;;  %6132 = vmatpush.msra.mxu2 %v6131_v58  ;;  %v6383_v6 = vsub.f32 %v6697_v47, %v6329_v46 }
 0xe64   : > { %6159 = vmatpush.msra.mxu3 %v6158_v10  ;;  %6206 = vmatpush.msra.mxu0 %v6173_v54 }
 0xe65   : > { %6255 = vmatpush.msrb.mxu2 %v6156_v9  ;;  %v6384_v54 = vand.u32 4294901760, %v6383_v6 }
 0xe66   : > { %6165 = vmatpush.msra.mxu3 %v6164_v4  ;;  %6320 = vmatpush.msrb.mxu0 %v8479_v61 }
 0xe67   : > { %6259 = vmatpush.msrb.mxu2 %v6162_v36 }
 0xe68   : > { %6171 = vmatpush.msra.mxu3 %v6170_v60  ;;  %6322 = vmatpush.msrb.mxu0 %v8487_v25  ;;  %v6385_v60 = vsub.f32 %v6383_v6, %v6384_v54 }
 0xe69   : > { %6263 = vmatpush.msrb.mxu2 %v6168_v1 }
 0xe6a   : > { %6177 = vmatpush.msra.mxu3 %v6176_v18  ;;  %6324 = vmatpush.msrb.mxu0 %v8498_v51  ;;  %v6386_v18 = vand.u32 4294901760, %v6385_v60 }
 0xe6b   : > { %6267 = vmatpush.msrb.mxu2 %v6174_v28 }
 0xe6c   : > { %6286 = vmatpush.msrb.mxu3 %v6125_v63 }
 0xe6e   : > { %6288 = vmatpush.msrb.mxu3 %v6127_v45 }
 0xe70   : > { %6290 = vmatpush.msrb.mxu3 %v6129_v33 }
 0xe72   : > { %6292 = vmatpush.msrb.mxu3 %v6131_v58  ;;  %v6331_v58 = vand.u32 4294901760, %v6696_v62 }
 0xe74   : > { %v6389_v4 = vsub.f32 %v6696_v62, %v6331_v58 }
 0xe76   : > { %v6390_v23 = vand.u32 4294901760, %v6389_v4 }
 0xed1   : > { %v6080_v39 = vpop.xlane.xlu0 %6079 }
 0xed2   : > { %v6081_v31 = vmul.f32 %v6080_v39, %v7219_v24  ;;  %v8509_v39 = vsub.f32 %v6700_v20, %v8498_v51 }
 0xed4   : > { %v8454_v41 = vsub.f32 %v8448_v57, %v6081_v31  ;;  %v8511_v31 = vand.u32 4294901760, %v6699_v59  ;;  %v6366_v3 = vand.u32 4294901760, %v8509_v39 }
 0xed6   : > { %v6083_v11 = vmul.f32 %v8454_v41, %v8454_v41  ;;  %v6371_v63 = vsub.f32 %v6699_v59, %v8511_v31  ;;  %6326 = vmatpush.msrb.mxu0 %v8511_v31  ;;  %v6367_v2 = vsub.f32 %v8509_v39, %v6366_v3 }
 0xed8   : > { %v6084_v19 = vsel %vm387_vm0, %v6083_v11, 0.0  ;;  %v6356_v11 = vand.u32 4294901760, %v6355_v32  ;;  %v6372_v9 = vand.u32 4294901760, %v6371_v63  ;;  %v6368_v7 = vand.u32 4294901760, %v6367_v2 }
 0xed9   : > { %6085 = vadd.xlane.f32.xlu2 %v6084_v19  ;;  %v6361_v19 = vsub.f32 %v8496_v48, %v6360_v50 }
 0xeda   : > { %6357 = vmatpush.msrb.mxu1 %v6356_v11  ;;  %v6373_v36 = vsub.f32 %v6371_v63, %v6372_v9 }
 0xedb   : > { %v6362_v45 = vand.u32 4294901760, %v6361_v19 }
 0xedc   : > { %v6374_v1 = vand.u32 4294901760, %v6373_v36 }
 0xedd   : > { %6363 = vmatpush.msrb.mxu1 %v6362_v45 }
 0xedf   : > { %6369 = vmatpush.msrb.mxu1 %v6368_v7 }
 0xee1   : > { %6375 = vmatpush.msrb.mxu1 %v6374_v1 }
 0xf4c   : > { %v6086_v49 = vpop.xlane.xlu2 %6085 }
 0xf4d   : > { %v6087_v52 = vmul.f32 %v6086_v49, %v7219_v24  ;;  %v6100_v24 = vperm.slane %v8444_v56, 2  ;;  %v6395_v49 = vsub.f32 %v6695_v38, %v6333_v14 }
 0xf4f   : > { %v6088_v12 = vadd.f32 1e-05, %v6087_v52 }
 0xf51   : > { %6840 = vrsqrt.f32 %v6088_v12  ;;  %vm6095_vm2 = vweird.f32 %v6088_v12 }
 0xf57   : > { %v6841_v26 = vpop.eup %6840 }
 0xf58   : > { %v6090_v15 = vmul.f32 %v6841_v26, %v6088_v12  ;;  %vm6096_vm1 = vweird.f32 %v6841_v26  ;;  %v6391_v12 = vsub.f32 %v6389_v4, %v6390_v23 }
 0xf59   : > { %vm6097_vm3 = vmor %vm6095_vm2, %vm6096_vm1 }
 0xf5a   : > { %v6091_v35 = vmul.f32 %v6841_v26, %v6090_v15  ;;  %v6392_v15 = vand.u32 4294901760, %v6391_v12 }
 0xf5c   : > { %v6092_v5 = vmul.f32 0.5, %v6091_v35 }
 0xf5e   : > { %v6093_v16 = vsub.f32 1.5, %v6092_v5 }
 0xf60   : > { %v6094_v29 = vmul.f32 %v6841_v26, %v6093_v16  ;;  %v6109_v16 = vperm.slane %v8444_v56, 6 }
 0xf62   : > { %v6098_v13 = vsel %vm6097_vm3, %v6841_v26, %v6094_v29  ;;  %v6396_v26 = vand.u32 4294901760, %v6395_v49 }
 0xf63   : > { %v6099_v34 = vmul.f32 %v6098_v13, %v8454_v41  ;;  %v6698_v41 = vld [vmem:[%s8583_s5 + $0x58] sm:$0xff] }
 0xf64   : > { %v6327_v22 = vand.u32 4294901760, %v6698_v41  ;;  %v6397_v35 = vsub.f32 %v6395_v49, %v6396_v26 }
 0xf65   : > { %v6101_v53 = vmul.f32 %v6100_v24, %v6099_v34 }
 0xf66   : > { %v6377_v33 = vsub.f32 %v6698_v41, %v6327_v22  ;;  %6328 = vmatpush.msrb.mxu0 %v6327_v22  ;;  %v6398_v5 = vand.u32 4294901760, %v6397_v35 }
 0xf67   : > { %v6103_v0 = vadd.f32 %v6102_v30, %v6101_v53 }
 0xf68   : > { %v6378_v10 = vand.u32 4294901760, %v6377_v33  ;;  %6330 = vmatpush.msrb.mxu0 %v6329_v46 }
 0xf69   : > { %v6111_v40 = vsel %vm387_vm0, %v6103_v0, 0 }
 0xf6a   : > { %v6133_v8 = vand.u32 4294901760, %v6111_v40  ;;  %v6379_v28 = vsub.f32 %v6377_v33, %v6378_v10  ;;  %6332 = vmatpush.msrb.mxu0 %v6331_v58 }
 0xf6c   : > { %6179 = vmatmul.f32.vlgmr.msra.gmra.mxu3 %v6133_v8  ;;  %v6134_v44 = vsub.f32 %v6111_v40, %v6133_v8  ;;  %v6380_v52 = vand.u32 4294901760, %v6379_v28  ;;  %6334 = vmatpush.msrb.mxu0 %v6333_v14 }
 0xf6d   : > { %6452 = vmatpush.msra.mxu3 %v8479_v61 }
 0xf6e   : > { %6209 = vmatmul.f32.vlgmr.msra.gmra.mxu0 %v6134_v44  ;;  %v6135_v42 = vand.u32 4294901760, %v6134_v44  ;;  %6381 = vmatpush.msrb.mxu1 %v6380_v52 }
 0xf6f   : > { %6454 = vmatpush.msra.mxu3 %v8487_v25  ;;  %6485 = vmatpush.msra.mxu0 %v6354_v55 }
 0xf70   : > { %6236 = vmatmul.f32.vlgmr.msra.gmra.mxu1 %v6135_v42  ;;  %v6136_v43 = vsub.f32 %v6134_v44, %v6135_v42 }
 0xf71   : > { %6456 = vmatpush.msra.mxu3 %v8498_v51  ;;  %6489 = vmatpush.msra.mxu0 %v6360_v50 }
 0xf72   : > { %v6137_v27 = vand.u32 4294901760, %v6136_v43  ;;  %6387 = vmatpush.msrb.mxu1 %v6386_v18 }
 0xf73   : > { %6458 = vmatpush.msra.mxu3 %v8511_v31  ;;  %6493 = vmatpush.msra.mxu0 %v6366_v3  ;;  %v6549_v3 = vperm.slane %v8444_v56, 5 }
 0xf74   : > { %6138 = vmatmul.f32.vlgmr.msra.gmra.mxu2 %v6137_v27  ;;  %6294 = vmatmul.f32.vlgmr.msrb.gmra.mxu3 %v6133_v8 }
 0xf75   : > { %6415 = vmatpush.msra.mxu2 %v8485_v37  ;;  %6460 = vmatpush.msra.mxu3 %v6327_v22 }
 0xf76   : > { %6393 = vmatpush.msrb.mxu1 %v6392_v15  ;;  %6497 = vmatpush.msra.mxu0 %v6372_v9 }
 0xf77   : > { %6418 = vmatpush.msra.mxu2 %v8496_v48  ;;  %6462 = vmatpush.msra.mxu3 %v6329_v46 }
 0xf78   : > { %6399 = vmatpush.msrb.mxu1 %v6398_v5  ;;  %6501 = vmatpush.msra.mxu0 %v6378_v10 }
 0xf79   : > { %6421 = vmatpush.msra.mxu2 %v8509_v39  ;;  %6464 = vmatpush.msra.mxu3 %v6331_v58 }
 0xf7a   : > { %6528 = vmatpush.msra.mxu1 %v8479_v61  ;;  %6505 = vmatpush.msra.mxu0 %v6384_v54 }
 0xf7b   : > { %6424 = vmatpush.msra.mxu2 %v6371_v63  ;;  %6466 = vmatpush.msra.mxu3 %v6333_v14 }
 0xf7c   : > { %6269 = vmatmul.f32.vlgmr.msrb.gmra.mxu2 %v6133_v8  ;;  %6530 = vmatpush.msra.mxu1 %v8487_v25 }
 0xf7d   : > { %6427 = vmatpush.msra.mxu2 %v6377_v33  ;;  %6509 = vmatpush.msra.mxu0 %v6390_v23 }
 0xf7e   : > { %6532 = vmatpush.msra.mxu1 %v8498_v51 }
 0xf7f   : > { %6430 = vmatpush.msra.mxu2 %v6383_v6  ;;  %6513 = vmatpush.msra.mxu0 %v6396_v26 }
 0xf80   : > { %6534 = vmatpush.msra.mxu1 %v8511_v31 }
 0xf81   : > { %6433 = vmatpush.msra.mxu2 %v6389_v4 }
 0xf82   : > { %6536 = vmatpush.msra.mxu1 %v6327_v22 }
 0xf83   : > { %6436 = vmatpush.msra.mxu2 %v6395_v49 }
 0xf84   : > { %6538 = vmatpush.msra.mxu1 %v6329_v46 }
 0xf86   : > { %6540 = vmatpush.msra.mxu1 %v6331_v58 }
 0xf88   : > { %6542 = vmatpush.msra.mxu1 %v6333_v14 }
 0xfeb   : > { %v6210_v34 = vpop.f32.mrf.mxu0 }
 0xfed   : > { %v6237_v0 = vpop.f32.mrf.mxu1 }
 0xfef   : > { %v6180_v29 = vpop.f32.mrf.mxu3 }
 0xff7   : > { %v6139_v24 = vpop.f32.mrf.mxu2  ;;  %v6295_v42 = vpop.f32.mrf.mxu3 }
 0xff8   : > { %v6140_v13 = vadd.f32 %v6139_v24, %v6109_v16 }
 0xffa   : > { %v6181_v30 = vadd.f32 %v6180_v29, %v6140_v13 }
 0xffc   : > { %v6211_v53 = vadd.f32 %v6210_v34, %v6181_v30 }
 0xffe   : > { %v6238_v40 = vadd.f32 %v6237_v0, %v6211_v53 }
 0xfff   : > { %v6270_v8 = vpop.f32.mrf.mxu2 }
0x1000   : > { %v6271_v44 = vadd.f32 %v6270_v8, %v6238_v40 }
0x1002   : > { %v6296_v43 = vadd.f32 %v6295_v42, %v6271_v44 }
0x1004   : > { %v6298_v27 = vmax.f32 %v6296_v43, 0.0 }
0x1006   : > { %v6309_v17 = vsel %vm3264_vm12, %v6298_v27, 0 }
0x1007   : > { %v6335_v61 = vand.u32 4294901760, %v6309_v17 }
0x1009   : > { %v6336_v21 = vsub.f32 %v6309_v17, %v6335_v61  ;;  %6401 = vmatmul.f32.vlgmr.msrb.gmra.mxu1 %v6335_v61 }
0x100b   : > { %v6337_v37 = vand.u32 4294901760, %v6336_v21  ;;  %6439 = vmatmul.f32.vlgmr.msra.gmra.mxu2 %v6336_v21 }
0x100d   : > { %v6338_v25 = vsub.f32 %v6336_v21, %v6337_v37  ;;  %6470 = vmatmul.f32.vlgmr.msra.gmra.mxu3 %v6337_v37 }
0x100f   : > { %v6339_v20 = vand.u32 4294901760, %v6338_v25 }
0x1011   : > { %6340 = vmatmul.f32.vlgmr.msrb.gmra.mxu0 %v6339_v20  ;;  %6544 = vmatmul.f32.vlgmr.msra.gmra.mxu1 %v6335_v61 }
0x1019   : > { %6515 = vmatmul.f32.vlgmr.msra.gmra.mxu0 %v6335_v61 }
0x1086   : > { %v6402_v55 = vpop.f32.mrf.mxu1 }
0x108e   : > { %v6341_v48 = vpop.f32.mrf.mxu0  ;;  %v6440_v59 = vpop.f32.mrf.mxu2 }
0x108f   : > { %v6403_v51 = vadd.f32 %v6402_v55, %v6341_v48  ;;  %v6545_v11 = vpop.f32.mrf.mxu1 }
0x1090   : > { %v6471_v50 = vpop.f32.mrf.mxu3 }
0x1091   : > { %v6441_v32 = vadd.f32 %v6440_v59, %v6403_v51 }
0x1093   : > { %v6472_v39 = vadd.f32 %v6471_v50, %v6441_v32 }
0x1096   : > { %v6516_v31 = vpop.f32.mrf.mxu0 }
0x1097   : > { %v6517_v41 = vadd.f32 %v6516_v31, %v6472_v39 }
0x1099   : > { %v6546_v19 = vadd.f32 %v6545_v11, %v6517_v41 }
0x109b   : > { %v6548_v63 = vadd.f32 %v6546_v19, %v8448_v57 }
0x109d   : > { %v6550_v22 = vadd.f32 %v6549_v3, %v6548_v63 }
0x109f   : > { %6551 = vst.msk [vmem:[%s350_s15] sm:$0xff] %vm387_vm0, %v6550_v22 }
0x10a0   : > { %6966 = shalt.err (!%p6963_p10)
}
0x10a1   : > { %6715 = dma.vmem_to_hbm [thread:$0]  (%p7141_p0), %s6566_s28, 128, %s6568_s27, %s6553_s8  }
0x10a2 PF: > { %s8615_s17 = sld [smem:[#allocation14_spill]]  ;;  %s6579_s22 = sand.u32 1, %s7001_s24  }
0x10a3   : > { %s6580_s19 = scalar_lea.sflag [#allocation4], %s6579_s22 }
0x10a8   : > { %p8616_p12 = scmp.ge.s32.totalorder %s8615_s17, 2 }
0x10aa   : > { %p6729_p5 = pnand %p8616_p12, %p7147_p6 }
0x10ac   : > { %p6730_p11 = pneg %p6729_p5 }
0x10ae   : > { %6996 = dma.done.wait (%p6730_p11), %s6580_s19, 128  }
0x10af   : > { %6998 = vsyncadd (%p6730_p11), %s6580_s19, 4294967168  ;;  %s8617_s27 = sld [smem:[#allocation15_spill]]  ;;  %s8620_s24 = smov %s7005_s25 }
0x10b0   : > { %s8618_s11 = sld [smem:[#allocation13_spill]] }
0x10b1   : > { %s8619_s26 = sld [smem:[#allocation16_spill]] }
0x10b5   : > { %p23_p2 = scmp.ge.s32.totalorder %s8617_s27, 4  }
0x10b6   : > { %s8621_s25 = smov %s8618_s11 }
0x10b7   :  { %25 = sbr.rel (!%p23_p2) target bundleno = 9 (0x9), region = 115 }
0x10bc   :  { %6586 = vsyncpa [#allocation3], 1 }
0x10bd   :  { %6588 = vsyncpa [#allocation3 + $0x1], 1 }
0x10be   :  { %6589 = vsyncpa [#allocation6], 1 }
0x10bf   :  { %6591 = vsyncpa [#allocation6 + $0x1], 1 }
0x10c0   :  { %6592 = vsyncpa [#allocation4], 1 }
0x10c1   :  { %6594 = vsyncpa [#allocation4 + $0x1], 1 }

</bundles_post_ra>
